<compile_context>
chip_gen: v7x
topology: tpu7x:2x2x1
jax: 0.10.0
libtpu: 0.0.40
codegen_flags: <defaults>
</compile_context>

<pallas_src>
import jax
import jax.numpy as jnp
from jax.experimental import pallas as pl
from jax.experimental.pallas import tpu as pltpu


def _round_up(a, m):
    return pl.cdiv(a, m) * m


def _select_block_kernel(
    # batch-blocked inputs (leading block dim = BB), bf16
    x_ref, hprev_ref, h_ref, c_ref, Hf_ref, Gf_ref,
    # sentinel weights (pre-transposed (in, out)), bf16
    wxs_ref, whs_ref,
    # switchable-attention weights (reconstructed), bf16
    wHsw_ref, wGsw_ref, wqsw_ref,
    # adaptive attention (Atten) weights: wv/wg/ws bf16, whv row f32
    wv_ref, wg_ref, ws_ref, whv_ref,
    # mlp head: weight tile (Hd, TN) bf16, bias tile (1, TN) f32
    wm_ref, bm_ref,
    # outputs
    scores_ref, aux_ref, sw_ref,
    # scratch: head input (c_hat + hiddens), carried across vocab tiles
    head_in_ref,
):
    f32 = jnp.float32
    bf16 = jnp.bfloat16

    BB, T, _ = x_ref.shape
    Hd = h_ref.shape[-1]
    L = Hf_ref.shape[1]
    AUXW = aux_ref.shape[-1]
    SWW = sw_ref.shape[-1]

    j = pl.program_id(1)  # vocab tile index (inner, "arbitrary" axis)

    # Everything except the vocab-tiled head is computed once per batch block,
    # on the first vocab tile, then reused from VMEM scratch for the other tiles.
    @pl.when(j == 0)
    def _context():
        x2 = x_ref[...].reshape(BB * T, -1)               # (BB*T, 2E) bf16
        hp2 = hprev_ref[...].reshape(BB * T, Hd)          # (BB*T, H)  bf16
        h2 = h_ref[...].reshape(BB * T, Hd)               # (BB*T, H)  bf16
        c2 = c_ref[...].reshape(BB * T, Hd).astype(f32)   # (BB*T, H)  f32

        # ---------------- Sentinel (dropout = identity in eval) -------------
        gate = (jnp.dot(x2, wxs_ref[...], preferred_element_type=f32)
                + jnp.dot(hp2, whs_ref[...], preferred_element_type=f32))
        s2 = jax.nn.sigmoid(gate) * jnp.tanh(c2)          # (BB*T, H) f32

        # ------------- SwitchableAttention (reconstructed) ------------------
        projH = jnp.dot(Hf_ref[...].reshape(BB * L, -1), wHsw_ref[...],
                        preferred_element_type=f32).reshape(BB, L, Hd)
        projG = jnp.dot(Gf_ref[...].reshape(BB * L, -1), wGsw_ref[...],
                        preferred_element_type=f32).reshape(BB, L, Hd)
        xq = jnp.mean(x_ref[...].astype(f32), axis=1)     # (BB, 2E)
        q = jnp.dot(xq.astype(bf16), wqsw_ref[...],
                    preferred_element_type=f32)           # (BB, H)
        logits = jnp.sum(projH * q[:, None, :], axis=-1, keepdims=True)  # (BB,L,1)
        sw = jax.nn.sigmoid(logits)                       # (BB, L, 1)
        V = sw * projH + (1.0 - sw) * projG               # (BB, L, H) switch_output
        # Lane-dense store (128-wide); wrapper slices back to (B, L, 1).
        sw_ref[...] = jnp.broadcast_to(sw, (BB, L, SWW)).astype(sw_ref.dtype)

        # ------------- Atten: adaptive attention with sentinel --------------
        K = wv_ref.shape[-1]
        Vv = jnp.dot(V.reshape(BB * L, Hd).astype(bf16), wv_ref[...],
                     preferred_element_type=f32).reshape(BB, L, K)
        hg = jnp.dot(h2, wg_ref[...], preferred_element_type=f32)       # (BB*T, K)
        ss = jnp.dot(s2.astype(bf16), ws_ref[...],
                     preferred_element_type=f32)                        # (BB*T, K)
        whv = whv_ref[...]                                              # (1, K) f32

        cv = jnp.tanh(Vv[:, None, :, :] + hg.reshape(BB, T, 1, K))      # (BB,T,L,K)
        z = jnp.sum(cv * whv, axis=-1).reshape(BB * T, L)               # (BB*T, L)
        zs = jnp.sum(jnp.tanh(ss + hg) * whv, axis=-1, keepdims=True)   # (BB*T, 1)

        # softmax over regions -> alpha  (reciprocal on EUP slot)
        zm = jnp.max(z, axis=-1, keepdims=True)
        ze = jnp.exp(z - zm)
        alpha = ze * pl.reciprocal(jnp.sum(ze, axis=-1, keepdims=True), approx=True)

        # extended softmax over [regions, sentinel] -> beta (sentinel column)
        m_ext = jnp.maximum(zm, zs)
        e_s = jnp.exp(zs - m_ext)
        denom = jnp.sum(jnp.exp(z - m_ext), axis=-1, keepdims=True) + e_s
        beta = e_s * pl.reciprocal(denom, approx=True)                  # (BB*T, 1)

        c_t = jnp.einsum('btl,blh->bth', alpha.reshape(BB, T, L), V,
                         preferred_element_type=f32).reshape(BB * T, Hd)
        c_hat = beta * s2 + (1.0 - beta) * c_t                          # (BB*T, H)

        # Head input, carried as bf16 for the MXU across vocab tiles.
        head_in_ref[...] = (c_hat + h2.astype(f32)).astype(bf16)

        # Lane-dense packed aux output: [alpha | beta | 0-pad] along lanes.
        parts = [alpha, beta]
        if AUXW > L + 1:
            parts.append(jnp.zeros((BB * T, AUXW - L - 1), f32))
        aux = jnp.concatenate(parts, axis=-1)
        aux_ref[...] = aux.reshape(BB, T, AUXW).astype(aux_ref.dtype)

    # ---------------- mlp head, one (H, TN) vocab tile per grid step --------
    scores = jnp.dot(head_in_ref[...], wm_ref[...],
                     preferred_element_type=jnp.float32) + bm_ref[...]
    scores_ref[...] = scores.reshape(scores_ref.shape).astype(scores_ref.dtype)


def select_block_forward(params, x, hiddens, cells, G, H,
                         *, vocab_tile=1024, interpret=False):
    B, T, _ = x.shape
    Hd = hiddens.shape[-1]
    _, L, _ = H.shape
    K = params["atten_wv"].shape[1]
    vocab = params["mlp_w"].shape[1]
    bf16 = jnp.bfloat16

    # init_hidden -> h0 zeros; shift hiddens by one step (exact semantics, glue).
    h0 = jnp.zeros((B, 1, Hd), dtype=hiddens.dtype)
    hiddens_t_1 = jnp.concatenate([h0, hiddens[:, :-1, :]], axis=1) if T > 1 else h0

    # --- batch blocking: aim for MXU M-dim (BB*T) >= 128, cap the (BB,T,L,K)
    #     attention intermediate at ~4 MiB.
    BB = max(1, min(B, pl.cdiv(128, T)))
    while BB > 1 and BB * T * L * K * 4 > (4 << 20):
        BB = pl.cdiv(BB, 2)
    B_pad = _round_up(B, BB)
    nb = B_pad // BB

    # --- vocab tiling: lane-dense scores (multiple of 128), mlp weight streamed.
    V128 = _round_up(vocab, 128)
    TN = _round_up(min(vocab_tile, V128), 128)
    V_pad = _round_up(vocab, TN)
    nj = V_pad // TN

    AUXW = _round_up(L + 1, 128)  # packed [alpha | beta] lane width
    SWW = 128                     # lane-dense switch-weight slab

    def pad_batch(a):
        if B_pad == B:
            return a
        return jnp.concatenate(
            [a, jnp.zeros((B_pad - B,) + a.shape[1:], a.dtype)], axis=0)

    # bf16 activations / weights feed the MXU; elementwise math stays f32 in-kernel.
    x_b = pad_batch(x.astype(bf16))
    hp_b = pad_batch(hiddens_t_1.astype(bf16))
    h_b = pad_batch(hiddens.astype(bf16))
    c_b = pad_batch(cells.astype(bf16))
    H_b = pad_batch(H.astype(bf16))
    G_b = pad_batch(G.astype(bf16))

    wm = params["mlp_w"].astype(bf16)
    bm = params["mlp_b"].astype(jnp.float32)
    if V_pad != vocab:
        wm = jnp.pad(wm, ((0, 0), (0, V_pad - vocab)))
        bm = jnp.pad(bm, ((0, 0), (0, V_pad - vocab)))

    in_arrays = (
        x_b, hp_b, h_b, c_b, H_b, G_b,
        params["sent_wx_T"].astype(bf16), params["sent_wh_T"].astype(bf16),
        params["sw_wH"].astype(bf16), params["sw_wG"].astype(bf16),
        params["sw_wq"].astype(bf16),
        params["atten_wv"].astype(bf16), params["atten_wg"].astype(bf16),
        params["atten_ws"].astype(bf16), params["atten_wh"].astype(jnp.float32),
        wm, bm,
    )

    def batch_spec(shape):
        nrest = len(shape) - 1
        return pl.BlockSpec((BB,) + shape[1:],
                            lambda b, j, _n=nrest: (b,) + (0,) * _n)

    def weight_spec(shape):
        nd = len(shape)
        return pl.BlockSpec(shape, lambda b, j, _n=nd: (0,) * _n)

    in_specs = (
        [batch_spec(a.shape) for a in in_arrays[:6]]
        + [weight_spec(a.shape) for a in in_arrays[6:15]]
        + [pl.BlockSpec((Hd, TN), lambda b, j: (0, j)),   # mlp weight: streamed tiles
           pl.BlockSpec((1, TN), lambda b, j: (0, j))]    # mlp bias tile
    )

    out_shape = (
        jax.ShapeDtypeStruct((B_pad, T, V_pad), jnp.float32),  # scores (padded)
        jax.ShapeDtypeStruct((B_pad, T, AUXW), jnp.float32),   # packed [alpha | beta]
        jax.ShapeDtypeStruct((B_pad, L, SWW), jnp.float32),    # switch_weights (lane-dense)
    )
    out_specs = (
        pl.BlockSpec((BB, T, TN), lambda b, j: (b, 0, j)),
        pl.BlockSpec((BB, T, AUXW), lambda b, j: (b, 0, 0)),
        pl.BlockSpec((BB, L, SWW), lambda b, j: (b, 0, 0)),
    )

    scores_p, aux_p, sw_p = pl.pallas_call(
        _select_block_kernel,
        out_shape=out_shape,
        grid_spec=pltpu.PrefetchScalarGridSpec(
            num_scalar_prefetch=0,
            grid=(nb, nj),
            in_specs=in_specs,
            out_specs=out_specs,
            scratch_shapes=[pltpu.VMEM((BB * T, Hd), bf16)],
        ),
        compiler_params=pltpu.CompilerParams(
            # batch blocks parallel (megacore); vocab tiles carry scratch -> arbitrary.
            dimension_semantics=("parallel", "arbitrary"),
            vmem_limit_bytes=56 * 1024 * 1024,  # stays under v7x 64 MiB physical VMEM
        ),
        interpret=interpret,
    )(*in_arrays)

    scores = scores_p[:B, :, :vocab]
    atten_weights = aux_p[:B, :, :L]
    beta = aux_p[:B, :, L:L + 1]
    switch_weights = sw_p[:B, :, :1]
    return scores, atten_weights, beta, switch_weights


def init_params(key, embed_size, hidden_size, vocab_size, attn_k):
    ks = jax.random.split(key, 16)
    n = lambda k, shape: (0.1 * jax.random.normal(k, shape, dtype=jnp.float32))
    twoE = 2 * embed_size
    return {
        # Sentinel: nn.Linear(2E, H, bias=False) weights are (H, 2E) in torch;
        # stored pre-transposed (in, out) to avoid in-kernel transposes.
        "sent_wx_T": n(ks[0], (twoE, hidden_size)),
        "sent_wh_T": n(ks[1], (hidden_size, hidden_size)),
        # SwitchableAttention (reconstructed): project H/G regions, query from x.
        "sw_wH": n(ks[2], (embed_size, hidden_size)),
        "sw_wG": n(ks[3], (embed_size, hidden_size)),
        "sw_wq": n(ks[4], (twoE, hidden_size)),
        # Atten (adaptive attention with sentinel).
        "atten_wv": n(ks[5], (hidden_size, attn_k)),
        "atten_wg": n(ks[6], (hidden_size, attn_k)),
        "atten_ws": n(ks[7], (hidden_size, attn_k)),
        "atten_wh": n(ks[8], (1, attn_k)),
        # mlp: nn.Linear(H, vocab) -> pre-transposed weight + bias row.
        "mlp_w": n(ks[9], (hidden_size, vocab_size)),
        "mlp_b": n(ks[10], (1, vocab_size)),
    }


if __name__ == "__main__":
    B, T = 2, 8
    embed_size, hidden_size, vocab_size = 16, 16, 40
    L, attn_k = 10, 32

    key = jax.random.PRNGKey(0)
    k_in, k_p = jax.random.split(key)
    kx, kh, kc, kG, kH = jax.random.split(k_in, 5)

    x = jax.random.normal(kx, (B, T, 2 * embed_size), dtype=jnp.float32)
    hiddens = jax.random.normal(kh, (B, T, hidden_size), dtype=jnp.float32)
    cells = jax.random.normal(kc, (B, T, hidden_size), dtype=jnp.float32)
    G = jax.random.normal(kG, (B, L, embed_size), dtype=jnp.float32)
    Hfeat = jax.random.normal(kH, (B, L, embed_size), dtype=jnp.float32)

    params = init_params(k_p, embed_size, hidden_size, vocab_size, attn_k)

    scores, atten_weights, beta, switch_weights = jax.block_until_ready(
        select_block_forward(params, x, hiddens, cells, G, Hfeat)
    )

    assert scores.shape == (B, T, vocab_size)
    assert atten_weights.shape == (B, T, L)
    assert beta.shape == (B, T, 1)
    assert switch_weights.shape == (B, L, 1)
    assert bool(jnp.all(jnp.isfinite(scores)))
    assert bool(jnp.all(jnp.isfinite(atten_weights)))
    assert bool(jnp.all(jnp.isfinite(beta)))
    assert bool(jnp.all(jnp.isfinite(switch_weights)))
    print("KERNEL_OK")
</pallas_src>

<mosaic_0001>
module attributes {stable_mosaic.version = 11 : i64} {
  func.func @_select_block_kernel(%arg0: i32, %arg1: i32, %arg2: memref<2x8x32xbf16, #tpu.memory_space<vmem>>, %arg3: memref<2x8x16xbf16, #tpu.memory_space<vmem>>, %arg4: memref<2x8x16xbf16, #tpu.memory_space<vmem>>, %arg5: memref<2x8x16xbf16, #tpu.memory_space<vmem>>, %arg6: memref<2x10x16xbf16, #tpu.memory_space<vmem>>, %arg7: memref<2x10x16xbf16, #tpu.memory_space<vmem>>, %arg8: memref<32x16xbf16, #tpu.memory_space<vmem>>, %arg9: memref<16x16xbf16, #tpu.memory_space<vmem>>, %arg10: memref<16x16xbf16, #tpu.memory_space<vmem>>, %arg11: memref<16x16xbf16, #tpu.memory_space<vmem>>, %arg12: memref<32x16xbf16, #tpu.memory_space<vmem>>, %arg13: memref<16x32xbf16, #tpu.memory_space<vmem>>, %arg14: memref<16x32xbf16, #tpu.memory_space<vmem>>, %arg15: memref<16x32xbf16, #tpu.memory_space<vmem>>, %arg16: memref<1x32xf32, #tpu.memory_space<vmem>>, %arg17: memref<16x128xbf16, #tpu.memory_space<vmem>>, %arg18: memref<1x128xf32, #tpu.memory_space<vmem>>, %arg19: memref<2x8x128xf32, #tpu.memory_space<vmem>>, %arg20: memref<2x8x128xf32, #tpu.memory_space<vmem>>, %arg21: memref<2x10x128xf32, #tpu.memory_space<vmem>>, %arg22: memref<16x16xbf16, #tpu.memory_space<vmem>>) attributes {dimension_semantics = [#tpu.dimension_semantics<parallel>, #tpu.dimension_semantics<arbitrary>], iteration_bounds = array<i64: 1, 1>, scalar_prefetch = 0 : i64, scratch_operands = 1 : i64, tpu.core_type = #tpu.core_type<tc>, window_params = [{transform_indices = @transform_0, window_bounds = array<i64: 2, 8, 32>}, {transform_indices = @transform_1, window_bounds = array<i64: 2, 8, 16>}, {transform_indices = @transform_2, window_bounds = array<i64: 2, 8, 16>}, {transform_indices = @transform_3, window_bounds = array<i64: 2, 8, 16>}, {transform_indices = @transform_4, window_bounds = array<i64: 2, 10, 16>}, {transform_indices = @transform_5, window_bounds = array<i64: 2, 10, 16>}, {pipeline_mode = #tpu.pipeline_mode<synchronous>, transform_indices = @transform_6, window_bounds = array<i64: 32, 16>}, {pipeline_mode = #tpu.pipeline_mode<synchronous>, transform_indices = @transform_7, window_bounds = array<i64: 16, 16>}, {pipeline_mode = #tpu.pipeline_mode<synchronous>, transform_indices = @transform_8, window_bounds = array<i64: 16, 16>}, {pipeline_mode = #tpu.pipeline_mode<synchronous>, transform_indices = @transform_9, window_bounds = array<i64: 16, 16>}, {pipeline_mode = #tpu.pipeline_mode<synchronous>, transform_indices = @transform_10, window_bounds = array<i64: 32, 16>}, {pipeline_mode = #tpu.pipeline_mode<synchronous>, transform_indices = @transform_11, window_bounds = array<i64: 16, 32>}, {pipeline_mode = #tpu.pipeline_mode<synchronous>, transform_indices = @transform_12, window_bounds = array<i64: 16, 32>}, {pipeline_mode = #tpu.pipeline_mode<synchronous>, transform_indices = @transform_13, window_bounds = array<i64: 16, 32>}, {pipeline_mode = #tpu.pipeline_mode<synchronous>, transform_indices = @transform_14, window_bounds = array<i64: 1, 32>}, {transform_indices = @transform_15, window_bounds = array<i64: 16, 128>}, {transform_indices = @transform_16, window_bounds = array<i64: 1, 128>}, {transform_indices = @transform_17, window_bounds = array<i64: 2, 8, 128>}, {transform_indices = @transform_18, window_bounds = array<i64: 2, 8, 128>}, {transform_indices = @transform_19, window_bounds = array<i64: 2, 10, 128>}]} {
    %c0_i32 = arith.constant 0 : i32
    %0 = arith.cmpi eq, %arg1, %c0_i32 : i32
    %1 = arith.extui %0 : i1 to i32
    %c0_i32_0 = arith.constant 0 : i32
    %2 = arith.cmpi ne, %1, %c0_i32_0 : i32
    scf.if %2 {
      %c0_9 = arith.constant 0 : index
      %c0_10 = arith.constant 0 : index
      %c0_11 = arith.constant 0 : index
      %11 = vector.load %arg2[%c0_9, %c0_10, %c0_11] : memref<2x8x32xbf16, #tpu.memory_space<vmem>>, vector<2x8x32xbf16>
      %12 = vector.shape_cast %11 : vector<2x8x32xbf16> to vector<16x32xbf16>
      %c0_12 = arith.constant 0 : index
      %c0_13 = arith.constant 0 : index
      %c0_14 = arith.constant 0 : index
      %13 = vector.load %arg3[%c0_12, %c0_13, %c0_14] : memref<2x8x16xbf16, #tpu.memory_space<vmem>>, vector<2x8x16xbf16>
      %14 = vector.shape_cast %13 : vector<2x8x16xbf16> to vector<16x16xbf16>
      %c0_15 = arith.constant 0 : index
      %c0_16 = arith.constant 0 : index
      %c0_17 = arith.constant 0 : index
      %15 = vector.load %arg4[%c0_15, %c0_16, %c0_17] : memref<2x8x16xbf16, #tpu.memory_space<vmem>>, vector<2x8x16xbf16>
      %16 = vector.shape_cast %15 : vector<2x8x16xbf16> to vector<16x16xbf16>
      %c0_18 = arith.constant 0 : index
      %c0_19 = arith.constant 0 : index
      %c0_20 = arith.constant 0 : index
      %17 = vector.load %arg5[%c0_18, %c0_19, %c0_20] : memref<2x8x16xbf16, #tpu.memory_space<vmem>>, vector<2x8x16xbf16>
      %18 = vector.shape_cast %17 : vector<2x8x16xbf16> to vector<16x16xbf16>
      %19 = arith.extf %18 : vector<16x16xbf16> to vector<16x16xf32>
      %c0_21 = arith.constant 0 : index
      %c0_22 = arith.constant 0 : index
      %20 = vector.load %arg8[%c0_21, %c0_22] : memref<32x16xbf16, #tpu.memory_space<vmem>>, vector<32x16xbf16>
      %cst_23 = arith.constant dense<0.000000e+00> : vector<16x16xf32>
      %21 = tpu.matmul %12, %20, %cst_23 {dimension_numbers = #tpu.dot_dimension_numbers<[1], [0], [0], [1], [0, 0, 1, 1], [], []>} : vector<16x32xbf16>, vector<32x16xbf16>, vector<16x16xf32> -> vector<16x16xf32>
      %c0_24 = arith.constant 0 : index
      %c0_25 = arith.constant 0 : index
      %22 = vector.load %arg9[%c0_24, %c0_25] : memref<16x16xbf16, #tpu.memory_space<vmem>>, vector<16x16xbf16>
      %cst_26 = arith.constant dense<0.000000e+00> : vector<16x16xf32>
      %23 = tpu.matmul %14, %22, %cst_26 {dimension_numbers = #tpu.dot_dimension_numbers<[1], [0], [0], [1], [0, 0, 1, 1], [], []>} : vector<16x16xbf16>, vector<16x16xbf16>, vector<16x16xf32> -> vector<16x16xf32>
      %24 = arith.addf %21, %23 : vector<16x16xf32>
      %25 = arith.negf %24 : vector<16x16xf32>
      %26 = math.exp %25 : vector<16x16xf32>
      %cst_27 = arith.constant 1.000000e+00 : f32
      %27 = vector.broadcast %cst_27 : f32 to vector<16x16xf32>
      %28 = arith.addf %27, %26 : vector<16x16xf32>
      %29 = arith.divf %27, %28 : vector<16x16xf32>
      %30 = math.tanh %19 : vector<16x16xf32>
      %31 = arith.mulf %29, %30 : vector<16x16xf32>
      %c0_28 = arith.constant 0 : index
      %c0_29 = arith.constant 0 : index
      %c0_30 = arith.constant 0 : index
      %32 = vector.load %arg6[%c0_28, %c0_29, %c0_30] : memref<2x10x16xbf16, #tpu.memory_space<vmem>>, vector<2x10x16xbf16>
      %33 = vector.shape_cast %32 : vector<2x10x16xbf16> to vector<20x16xbf16>
      %c0_31 = arith.constant 0 : index
      %c0_32 = arith.constant 0 : index
      %34 = vector.load %arg10[%c0_31, %c0_32] : memref<16x16xbf16, #tpu.memory_space<vmem>>, vector<16x16xbf16>
      %cst_33 = arith.constant dense<0.000000e+00> : vector<20x16xf32>
      %35 = tpu.matmul %33, %34, %cst_33 {dimension_numbers = #tpu.dot_dimension_numbers<[1], [0], [0], [1], [0, 0, 1, 1], [], []>} : vector<20x16xbf16>, vector<16x16xbf16>, vector<20x16xf32> -> vector<20x16xf32>
      %36 = vector.shape_cast %35 : vector<20x16xf32> to vector<2x10x16xf32>
      %c0_34 = arith.constant 0 : index
      %c0_35 = arith.constant 0 : index
      %c0_36 = arith.constant 0 : index
      %37 = vector.load %arg7[%c0_34, %c0_35, %c0_36] : memref<2x10x16xbf16, #tpu.memory_space<vmem>>, vector<2x10x16xbf16>
      %38 = vector.shape_cast %37 : vector<2x10x16xbf16> to vector<20x16xbf16>
      %c0_37 = arith.constant 0 : index
      %c0_38 = arith.constant 0 : index
      %39 = vector.load %arg11[%c0_37, %c0_38] : memref<16x16xbf16, #tpu.memory_space<vmem>>, vector<16x16xbf16>
      %cst_39 = arith.constant dense<0.000000e+00> : vector<20x16xf32>
      %40 = tpu.matmul %38, %39, %cst_39 {dimension_numbers = #tpu.dot_dimension_numbers<[1], [0], [0], [1], [0, 0, 1, 1], [], []>} : vector<20x16xbf16>, vector<16x16xbf16>, vector<20x16xf32> -> vector<20x16xf32>
      %41 = vector.shape_cast %40 : vector<20x16xf32> to vector<2x10x16xf32>
      %c0_40 = arith.constant 0 : index
      %c0_41 = arith.constant 0 : index
      %c0_42 = arith.constant 0 : index
      %42 = vector.load %arg2[%c0_40, %c0_41, %c0_42] : memref<2x8x32xbf16, #tpu.memory_space<vmem>>, vector<2x8x32xbf16>
      %43 = arith.extf %42 : vector<2x8x32xbf16> to vector<2x8x32xf32>
      %cst_43 = arith.constant dense<0.000000e+00> : vector<2x32xf32>
      %44 = vector.multi_reduction <add>, %43, %cst_43 [1] : vector<2x8x32xf32> to vector<2x32xf32>
      %cst_44 = arith.constant 8.000000e+00 : f32
      %45 = vector.broadcast %cst_44 : f32 to vector<2x32xf32>
      %46 = arith.divf %44, %45 : vector<2x32xf32>
      %47 = arith.truncf %46 : vector<2x32xf32> to vector<2x32xbf16>
      %c0_45 = arith.constant 0 : index
      %c0_46 = arith.constant 0 : index
      %48 = vector.load %arg12[%c0_45, %c0_46] : memref<32x16xbf16, #tpu.memory_space<vmem>>, vector<32x16xbf16>
      %cst_47 = arith.constant dense<0.000000e+00> : vector<2x16xf32>
      %49 = tpu.matmul %47, %48, %cst_47 {dimension_numbers = #tpu.dot_dimension_numbers<[1], [0], [0], [1], [0, 0, 1, 1], [], []>} : vector<2x32xbf16>, vector<32x16xbf16>, vector<2x16xf32> -> vector<2x16xf32>
      %50 = vector.shape_cast %49 : vector<2x16xf32> to vector<2x1x16xf32>
      %51 = vector.broadcast %50 : vector<2x1x16xf32> to vector<2x10x16xf32>
      %52 = arith.mulf %36, %51 : vector<2x10x16xf32>
      %cst_48 = arith.constant dense<0.000000e+00> : vector<2x10xf32>
      %53 = vector.multi_reduction <add>, %52, %cst_48 [2] : vector<2x10x16xf32> to vector<2x10xf32>
      %54 = vector.shape_cast %53 : vector<2x10xf32> to vector<2x10x1xf32>
      %55 = arith.negf %54 : vector<2x10x1xf32>
      %56 = math.exp %55 : vector<2x10x1xf32>
      %cst_49 = arith.constant 1.000000e+00 : f32
      %57 = vector.broadcast %cst_49 : f32 to vector<2x10x1xf32>
      %58 = arith.addf %57, %56 : vector<2x10x1xf32>
      %59 = arith.divf %57, %58 : vector<2x10x1xf32>
      %60 = vector.broadcast %59 : vector<2x10x1xf32> to vector<2x10x16xf32>
      %61 = arith.mulf %60, %36 : vector<2x10x16xf32>
      %cst_50 = arith.constant 1.000000e+00 : f32
      %62 = vector.broadcast %cst_50 : f32 to vector<2x10x1xf32>
      %63 = arith.subf %62, %59 : vector<2x10x1xf32>
      %64 = vector.broadcast %63 : vector<2x10x1xf32> to vector<2x10x16xf32>
      %65 = arith.mulf %64, %41 : vector<2x10x16xf32>
      %66 = arith.addf %61, %65 : vector<2x10x16xf32>
      %67 = vector.shape_cast %59 : vector<2x10x1xf32> to vector<2x10x1xf32>
      %68 = vector.broadcast %67 : vector<2x10x1xf32> to vector<2x10x128xf32>
      %c0_51 = arith.constant 0 : index
      %c0_52 = arith.constant 0 : index
      %c0_53 = arith.constant 0 : index
      %69 = vector.load %arg21[%c0_51, %c0_52, %c0_53] : memref<2x10x128xf32, #tpu.memory_space<vmem>>, vector<2x10x128xf32>
      tpu.vector_store %arg21[%c0_51, %c0_52, %c0_53], %68 {strides = array<i32>} : memref<2x10x128xf32, #tpu.memory_space<vmem>>, vector<2x10x128xf32>,
      %70 = vector.shape_cast %66 : vector<2x10x16xf32> to vector<20x16xf32>
      %71 = arith.truncf %70 : vector<20x16xf32> to vector<20x16xbf16>
      %c0_54 = arith.constant 0 : index
      %c0_55 = arith.constant 0 : index
      %72 = vector.load %arg13[%c0_54, %c0_55] : memref<16x32xbf16, #tpu.memory_space<vmem>>, vector<16x32xbf16>
      %cst_56 = arith.constant dense<0.000000e+00> : vector<20x32xf32>
      %73 = tpu.matmul %71, %72, %cst_56 {dimension_numbers = #tpu.dot_dimension_numbers<[1], [0], [0], [1], [0, 0, 1, 1], [], []>} : vector<20x16xbf16>, vector<16x32xbf16>, vector<20x32xf32> -> vector<20x32xf32>
      %74 = vector.shape_cast %73 : vector<20x32xf32> to vector<2x10x32xf32>
      %c0_57 = arith.constant 0 : index
      %c0_58 = arith.constant 0 : index
      %75 = vector.load %arg14[%c0_57, %c0_58] : memref<16x32xbf16, #tpu.memory_space<vmem>>, vector<16x32xbf16>
      %cst_59 = arith.constant dense<0.000000e+00> : vector<16x32xf32>
      %76 = tpu.matmul %16, %75, %cst_59 {dimension_numbers = #tpu.dot_dimension_numbers<[1], [0], [0], [1], [0, 0, 1, 1], [], []>} : vector<16x16xbf16>, vector<16x32xbf16>, vector<16x32xf32> -> vector<16x32xf32>
      %77 = arith.truncf %31 : vector<16x16xf32> to vector<16x16xbf16>
      %c0_60 = arith.constant 0 : index
      %c0_61 = arith.constant 0 : index
      %78 = vector.load %arg15[%c0_60, %c0_61] : memref<16x32xbf16, #tpu.memory_space<vmem>>, vector<16x32xbf16>
      %cst_62 = arith.constant dense<0.000000e+00> : vector<16x32xf32>
      %79 = tpu.matmul %77, %78, %cst_62 {dimension_numbers = #tpu.dot_dimension_numbers<[1], [0], [0], [1], [0, 0, 1, 1], [], []>} : vector<16x16xbf16>, vector<16x32xbf16>, vector<16x32xf32> -> vector<16x32xf32>
      %c0_63 = arith.constant 0 : index
      %c0_64 = arith.constant 0 : index
      %80 = vector.load %arg16[%c0_63, %c0_64] : memref<1x32xf32, #tpu.memory_space<vmem>>, vector<1x32xf32>
      %81 = vector.shape_cast %74 : vector<2x10x32xf32> to vector<2x1x10x32xf32>
      %82 = vector.shape_cast %76 : vector<16x32xf32> to vector<2x8x1x32xf32>
      %83 = vector.broadcast %81 : vector<2x1x10x32xf32> to vector<2x8x10x32xf32>
      %84 = vector.broadcast %82 : vector<2x8x1x32xf32> to vector<2x8x10x32xf32>
      %85 = arith.addf %83, %84 : vector<2x8x10x32xf32>
      %86 = math.tanh %85 : vector<2x8x10x32xf32>
      %87 = vector.shape_cast %80 : vector<1x32xf32> to vector<1x1x1x32xf32>
      %88 = vector.broadcast %87 : vector<1x1x1x32xf32> to vector<2x8x10x32xf32>
      %89 = arith.mulf %86, %88 : vector<2x8x10x32xf32>
      %cst_65 = arith.constant dense<0.000000e+00> : vector<2x8x10xf32>
      %90 = vector.multi_reduction <add>, %89, %cst_65 [3] : vector<2x8x10x32xf32> to vector<2x8x10xf32>
      %91 = vector.shape_cast %90 : vector<2x8x10xf32> to vector<16x10xf32>
      %92 = arith.addf %79, %76 : vector<16x32xf32>
      %93 = math.tanh %92 : vector<16x32xf32>
      %94 = vector.broadcast %80 : vector<1x32xf32> to vector<16x32xf32>
      %95 = arith.mulf %93, %94 : vector<16x32xf32>
      %cst_66 = arith.constant dense<0.000000e+00> : vector<16xf32>
      %96 = vector.multi_reduction <add>, %95, %cst_66 [1] : vector<16x32xf32> to vector<16xf32>
      %97 = vector.shape_cast %96 : vector<16xf32> to vector<16x1xf32>
      %cst_67 = arith.constant dense<0xFF800000> : vector<16xf32>
      %98 = vector.multi_reduction <maximumf>, %91, %cst_67 [1] : vector<16x10xf32> to vector<16xf32>
      %99 = vector.shape_cast %98 : vector<16xf32> to vector<16x1xf32>
      %100 = vector.broadcast %99 : vector<16x1xf32> to vector<16x10xf32>
      %101 = arith.subf %91, %100 : vector<16x10xf32>
      %102 = math.exp %101 : vector<16x10xf32>
      %cst_68 = arith.constant dense<0.000000e+00> : vector<16xf32>
      %103 = vector.multi_reduction <add>, %102, %cst_68 [1] : vector<16x10xf32> to vector<16xf32>
      %104 = vector.shape_cast %103 : vector<16xf32> to vector<16x1xf32>
      %105 = tpu.reciprocal %104 {approx = true} : vector<16x1xf32> -> vector<16x1xf32>
      %106 = vector.broadcast %105 : vector<16x1xf32> to vector<16x10xf32>
      %107 = arith.mulf %102, %106 : vector<16x10xf32>
      %108 = arith.maximumf %99, %97 : vector<16x1xf32>
      %109 = arith.subf %97, %108 : vector<16x1xf32>
      %110 = math.exp %109 : vector<16x1xf32>
      %111 = vector.broadcast %108 : vector<16x1xf32> to vector<16x10xf32>
      %112 = arith.subf %91, %111 : vector<16x10xf32>
      %113 = math.exp %112 : vector<16x10xf32>
      %cst_69 = arith.constant dense<0.000000e+00> : vector<16xf32>
      %114 = vector.multi_reduction <add>, %113, %cst_69 [1] : vector<16x10xf32> to vector<16xf32>
      %115 = vector.shape_cast %114 : vector<16xf32> to vector<16x1xf32>
      %116 = arith.addf %115, %110 : vector<16x1xf32>
      %117 = tpu.reciprocal %116 {approx = true} : vector<16x1xf32> -> vector<16x1xf32>
      %118 = arith.mulf %110, %117 : vector<16x1xf32>
      %119 = vector.shape_cast %107 : vector<16x10xf32> to vector<2x8x10xf32>
      "tpu.trace_start"() <{level = 10 : i32, message = "btl,blh->bth"}> : () -> ()
      %cst_70 = arith.constant dense<0.000000e+00> : vector<2x8x16xf32>
      %120 = tpu.matmul %119, %66, %cst_70 {dimension_numbers = #tpu.dot_dimension_numbers<[2], [1], [1], [2], [0, 0, 0, 1, 1, 2], [0], [0]>} : vector<2x8x10xf32>, vector<2x10x16xf32>, vector<2x8x16xf32> -> vector<2x8x16xf32>
      "tpu.trace_stop"() : () -> ()
      %121 = vector.shape_cast %120 : vector<2x8x16xf32> to vector<16x16xf32>
      %122 = vector.broadcast %118 : vector<16x1xf32> to vector<16x16xf32>
      %123 = arith.mulf %122, %31 : vector<16x16xf32>
      %cst_71 = arith.constant 1.000000e+00 : f32
      %124 = vector.broadcast %cst_71 : f32 to vector<16x1xf32>
      %125 = arith.subf %124, %118 : vector<16x1xf32>
      %126 = vector.broadcast %125 : vector<16x1xf32> to vector<16x16xf32>
      %127 = arith.mulf %126, %121 : vector<16x16xf32>
      %128 = arith.addf %123, %127 : vector<16x16xf32>
      %129 = arith.extf %16 : vector<16x16xbf16> to vector<16x16xf32>
      %130 = arith.addf %128, %129 : vector<16x16xf32>
      %131 = arith.truncf %130 : vector<16x16xf32> to vector<16x16xbf16>
      %c0_72 = arith.constant 0 : index
      %c0_73 = arith.constant 0 : index
      %132 = vector.load %arg22[%c0_72, %c0_73] : memref<16x16xbf16, #tpu.memory_space<vmem>>, vector<16x16xbf16>
      tpu.vector_store %arg22[%c0_72, %c0_73], %131 {strides = array<i32>} : memref<16x16xbf16, #tpu.memory_space<vmem>>, vector<16x16xbf16>,
      %cst_74 = arith.constant 0.000000e+00 : f32
      %133 = vector.broadcast %cst_74 : f32 to vector<16x117xf32>
      %134 = tpu.concatenate %107, %118, %133 in 1 : vector<16x10xf32>, vector<16x1xf32>, vector<16x117xf32> -> vector<16x128xf32>
      %135 = vector.shape_cast %134 : vector<16x128xf32> to vector<2x8x128xf32>
      %c0_75 = arith.constant 0 : index
      %c0_76 = arith.constant 0 : index
      %c0_77 = arith.constant 0 : index
      %136 = vector.load %arg20[%c0_75, %c0_76, %c0_77] : memref<2x8x128xf32, #tpu.memory_space<vmem>>, vector<2x8x128xf32>
      tpu.vector_store %arg20[%c0_75, %c0_76, %c0_77], %135 {strides = array<i32>} : memref<2x8x128xf32, #tpu.memory_space<vmem>>, vector<2x8x128xf32>,
    } else {
    }
    %c0 = arith.constant 0 : index
    %c0_1 = arith.constant 0 : index
    %3 = vector.load %arg22[%c0, %c0_1] : memref<16x16xbf16, #tpu.memory_space<vmem>>, vector<16x16xbf16>
    %c0_2 = arith.constant 0 : index
    %c0_3 = arith.constant 0 : index
    %4 = vector.load %arg17[%c0_2, %c0_3] : memref<16x128xbf16, #tpu.memory_space<vmem>>, vector<16x128xbf16>
    %cst = arith.constant dense<0.000000e+00> : vector<16x128xf32>
    %5 = tpu.matmul %3, %4, %cst {dimension_numbers = #tpu.dot_dimension_numbers<[1], [0], [0], [1], [0, 0, 1, 1], [], []>} : vector<16x16xbf16>, vector<16x128xbf16>, vector<16x128xf32> -> vector<16x128xf32>
    %c0_4 = arith.constant 0 : index
    %c0_5 = arith.constant 0 : index
    %6 = vector.load %arg18[%c0_4, %c0_5] : memref<1x128xf32, #tpu.memory_space<vmem>>, vector<1x128xf32>
    %7 = vector.broadcast %6 : vector<1x128xf32> to vector<16x128xf32>
    %8 = arith.addf %5, %7 : vector<16x128xf32>
    %9 = vector.shape_cast %8 : vector<16x128xf32> to vector<2x8x128xf32>
    %c0_6 = arith.constant 0 : index
    %c0_7 = arith.constant 0 : index
    %c0_8 = arith.constant 0 : index
    %10 = vector.load %arg19[%c0_6, %c0_7, %c0_8] : memref<2x8x128xf32, #tpu.memory_space<vmem>>, vector<2x8x128xf32>
    tpu.vector_store %arg19[%c0_6, %c0_7, %c0_8], %9 {strides = array<i32>} : memref<2x8x128xf32, #tpu.memory_space<vmem>>, vector<2x8x128xf32>,
    return
  }
  func.func @transform_0(%arg0: i32, %arg1: i32) -> (i32, i32, i32) {
    %c0_i32 = arith.constant 0 : i32
    %c0_i32_0 = arith.constant 0 : i32
    %c0_i32_1 = arith.constant 0 : i32
    return %arg0, %c0_i32, %c0_i32_0 : i32, i32, i32
  }
  func.func @transform_1(%arg0: i32, %arg1: i32) -> (i32, i32, i32) {
    %c0_i32 = arith.constant 0 : i32
    %c0_i32_0 = arith.constant 0 : i32
    %c0_i32_1 = arith.constant 0 : i32
    return %arg0, %c0_i32, %c0_i32_0 : i32, i32, i32
  }
  func.func @transform_2(%arg0: i32, %arg1: i32) -> (i32, i32, i32) {
    %c0_i32 = arith.constant 0 : i32
    %c0_i32_0 = arith.constant 0 : i32
    %c0_i32_1 = arith.constant 0 : i32
    return %arg0, %c0_i32, %c0_i32_0 : i32, i32, i32
  }
  func.func @transform_3(%arg0: i32, %arg1: i32) -> (i32, i32, i32) {
    %c0_i32 = arith.constant 0 : i32
    %c0_i32_0 = arith.constant 0 : i32
    %c0_i32_1 = arith.constant 0 : i32
    return %arg0, %c0_i32, %c0_i32_0 : i32, i32, i32
  }
  func.func @transform_4(%arg0: i32, %arg1: i32) -> (i32, i32, i32) {
    %c0_i32 = arith.constant 0 : i32
    %c0_i32_0 = arith.constant 0 : i32
    %c0_i32_1 = arith.constant 0 : i32
    return %arg0, %c0_i32, %c0_i32_0 : i32, i32, i32
  }
  func.func @transform_5(%arg0: i32, %arg1: i32) -> (i32, i32, i32) {
    %c0_i32 = arith.constant 0 : i32
    %c0_i32_0 = arith.constant 0 : i32
    %c0_i32_1 = arith.constant 0 : i32
    return %arg0, %c0_i32, %c0_i32_0 : i32, i32, i32
  }
  func.func @transform_6(%arg0: i32, %arg1: i32) -> (i32, i32) {
    %c0_i32 = arith.constant 0 : i32
    %c0_i32_0 = arith.constant 0 : i32
    %c0_i32_1 = arith.constant 0 : i32
    return %c0_i32, %c0_i32_0 : i32, i32
  }
  func.func @transform_7(%arg0: i32, %arg1: i32) -> (i32, i32) {
    %c0_i32 = arith.constant 0 : i32
    %c0_i32_0 = arith.constant 0 : i32
    %c0_i32_1 = arith.constant 0 : i32
    return %c0_i32, %c0_i32_0 : i32, i32
  }
  func.func @transform_8(%arg0: i32, %arg1: i32) -> (i32, i32) {
    %c0_i32 = arith.constant 0 : i32
    %c0_i32_0 = arith.constant 0 : i32
    %c0_i32_1 = arith.constant 0 : i32
    return %c0_i32, %c0_i32_0 : i32, i32
  }
  func.func @transform_9(%arg0: i32, %arg1: i32) -> (i32, i32) {
    %c0_i32 = arith.constant 0 : i32
    %c0_i32_0 = arith.constant 0 : i32
    %c0_i32_1 = arith.constant 0 : i32
    return %c0_i32, %c0_i32_0 : i32, i32
  }
  func.func @transform_10(%arg0: i32, %arg1: i32) -> (i32, i32) {
    %c0_i32 = arith.constant 0 : i32
    %c0_i32_0 = arith.constant 0 : i32
    %c0_i32_1 = arith.constant 0 : i32
    return %c0_i32, %c0_i32_0 : i32, i32
  }
  func.func @transform_11(%arg0: i32, %arg1: i32) -> (i32, i32) {
    %c0_i32 = arith.constant 0 : i32
    %c0_i32_0 = arith.constant 0 : i32
    %c0_i32_1 = arith.constant 0 : i32
    return %c0_i32, %c0_i32_0 : i32, i32
  }
  func.func @transform_12(%arg0: i32, %arg1: i32) -> (i32, i32) {
    %c0_i32 = arith.constant 0 : i32
    %c0_i32_0 = arith.constant 0 : i32
    %c0_i32_1 = arith.constant 0 : i32
    return %c0_i32, %c0_i32_0 : i32, i32
  }
  func.func @transform_13(%arg0: i32, %arg1: i32) -> (i32, i32) {
    %c0_i32 = arith.constant 0 : i32
    %c0_i32_0 = arith.constant 0 : i32
    %c0_i32_1 = arith.constant 0 : i32
    return %c0_i32, %c0_i32_0 : i32, i32
  }
  func.func @transform_14(%arg0: i32, %arg1: i32) -> (i32, i32) {
    %c0_i32 = arith.constant 0 : i32
    %c0_i32_0 = arith.constant 0 : i32
    %c0_i32_1 = arith.constant 0 : i32
    return %c0_i32, %c0_i32_0 : i32, i32
  }
  func.func @transform_15(%arg0: i32, %arg1: i32) -> (i32, i32) {
    %c0_i32 = arith.constant 0 : i32
    %c0_i32_0 = arith.constant 0 : i32
    return %c0_i32, %arg1 : i32, i32
  }
  func.func @transform_16(%arg0: i32, %arg1: i32) -> (i32, i32) {
    %c0_i32 = arith.constant 0 : i32
    %c0_i32_0 = arith.constant 0 : i32
    return %c0_i32, %arg1 : i32, i32
  }
  func.func @transform_17(%arg0: i32, %arg1: i32) -> (i32, i32, i32) {
    %c0_i32 = arith.constant 0 : i32
    %c0_i32_0 = arith.constant 0 : i32
    return %arg0, %c0_i32, %arg1 : i32, i32, i32
  }
  func.func @transform_18(%arg0: i32, %arg1: i32) -> (i32, i32, i32) {
    %c0_i32 = arith.constant 0 : i32
    %c0_i32_0 = arith.constant 0 : i32
    %c0_i32_1 = arith.constant 0 : i32
    return %arg0, %c0_i32, %c0_i32_0 : i32, i32, i32
  }
  func.func @transform_19(%arg0: i32, %arg1: i32) -> (i32, i32, i32) {
    %c0_i32 = arith.constant 0 : i32
    %c0_i32_0 = arith.constant 0 : i32
    %c0_i32_1 = arith.constant 0 : i32
    return %arg0, %c0_i32, %c0_i32_0 : i32, i32, i32
  }
}

</mosaic_0001>

<bundles_post_ra>
// kernel: tpu_custom_call.1
= control target key start
LH: loop header
LB: loop body
LE: loop exit
PB: predicated region body
PF: predicated region fallthrough
CT: control target
= control target key end

     0   :  { %s7220_s0 = inlined_call_operand.vmem [shape: bf16[2,8,32], index: 0, kind: input, shape index: {}]   ;;  %s7221_s1 = inlined_call_operand.vmem [shape: bf16[2,8,16], index: 1, kind: input, shape index: {}]   ;;  %s7222_s2 = inlined_call_operand.vmem [shape: bf16[2,8,16], index: 2, kind: input, shape index: {}]   ;;  %s7223_s3 = inlined_call_operand.vmem [shape: bf16[2,8,16], index: 3, kind: input, shape index: {}]   ;;  %s7224_s4 = inlined_call_operand.vmem [shape: bf16[2,10,16], index: 4, kind: input, shape index: {}]   ;;  %s7225_s5 = inlined_call_operand.vmem [shape: bf16[2,10,16], index: 5, kind: input, shape index: {}]   ;;  %s7226_s6 = inlined_call_operand.vmem [shape: bf16[32,16], index: 6, kind: input, shape index: {}]   ;;  %s7227_s7 = inlined_call_operand.vmem [shape: bf16[16,16], index: 7, kind: input, shape index: {}]   ;;  %s7228_s8 = inlined_call_operand.vmem [shape: bf16[16,16], index: 8, kind: input, shape index: {}]   ;;  %s7229_s9 = inlined_call_operand.vmem [shape: bf16[16,16], index: 9, kind: input, shape index: {}]   ;;  %s7230_s10 = inlined_call_operand.vmem [shape: bf16[32,16], index: 10, kind: input, shape index: {}]   ;;  %s7231_s11 = inlined_call_operand.vmem [shape: bf16[16,32], index: 11, kind: input, shape index: {}]   ;;  %s7232_s12 = inlined_call_operand.vmem [shape: bf16[16,32], index: 12, kind: input, shape index: {}]   ;;  %s7233_s13 = inlined_call_operand.vmem [shape: bf16[16,32], index: 13, kind: input, shape index: {}]   ;;  %s7234_s14 = inlined_call_operand.vmem [shape: f32[1,32], index: 14, kind: input, shape index: {}]   ;;  %s7235_s15 = inlined_call_operand.vmem [shape: bf16[16,128], index: 15, kind: input, shape index: {}]   ;;  %s7236_s16 = inlined_call_operand.vmem [shape: f32[1,128], index: 16, kind: input, shape index: {}]   ;;  %s7237_s17 = inlined_call_operand.hbm [shape: f32[2,8,128], index: 17, kind: output, shape index: {0}]   ;;  %s7238_s18 = inlined_call_operand.hbm [shape: f32[2,8,128], index: 18, kind: output, shape index: {1}]   ;;  %s7239_s19 = inlined_call_operand.vmem [shape: f32[2,10,128], index: 19, kind: output, shape index: {2}]  }
   0x1   :  { %7312 = sst [smem:[#allocation55_spill]] %s7220_s0 }
   0x2   :  { %7313 = sst [smem:[#allocation56_spill]] %s7221_s1 }
   0x3   :  { %7314 = sst [smem:[#allocation57_spill]] %s7222_s2 }
   0x4   :  { %7315 = sst [smem:[#allocation58_spill]] %s7223_s3 }
   0x5   :  { %25 = vsyncpa [#allocation4], 0  ;;  %v4844_v0 = vld [vmem:[%s7227_s7] sm:$0xff]   ;;  %v7241_v1 = vmov 0.0   ;;  %s7316_s1 = sld [smem:[#allocation56_spill]]  ;;  %vm5243_vm0 = vmmov 0   ;;  %v7242_v4 = vlaneseq }
   0x6   :  { %4747 = vmatprep.subr.bf16.mxu0 %v7241_v1  ;;  %4749 = vmatprep.mubr.msk.bf16.mxu0 %vm5243_vm0, %v7241_v1  ;;  %vm93_vm1 = vcmask 130048   ;;  %v4846_v3 = vld [vmem:[%s7226_s6] sm:$0xff]   ;;  %s7317_s24 = sld [smem:[#allocation55_spill]]  ;;  %vm155_vm2 = vcmask 261120   ;;  %v4847_v6 = vld [vmem:[%s7226_s6 + $0x8] sm:$0xff]   ;;  %vm765_vm3 = vcmask 1041409  }
   0x7   :  { %4748 = vmatpush3.bf16.msra.mxu0 %v4844_v0  ;;  %v4850_v9 = vld [vmem:[%s7228_s8] sm:$0xff]   ;;  %v5382_v12 = vshrl.u32 %v7242_v4, 7  ;;  %v5244_v17 = vmov 1966171168   ;;  %v4851_v44 = vld [vmem:[%s7230_s10 + $0x8] sm:$0xff]  }
   0x8   :  { %4753 = vmatprep.subr.bf16.mxu0 %v7241_v1  ;;  %v5387_v13 = vld [vmem:[%s7229_s9] sm:$0xff]   ;;  %4761 = vmatprep.subr.bf16.mxu1 %v4850_v9  ;;  %v233_v18 = vunpack.c.l.s4 %v5244_v17  ;;  %v4677_v21 = vld.sshfl [vmem:[%s7224_s4 + $0x8] sm:$0x33 pattern:$0x75316420] }
   0x9   :  { %7318 = vst [vmem:[#allocation9_spill] sm:$0xff] %v5382_v12  ;;  %v4675_v16 = vld.sshfl [vmem:[%s7224_s4] sm:$0x33 pattern:$0x75316420]  ;;  %4762 = vmatpush3.bf16.msra.mxu1 %v4850_v9  ;;  %v269_v25 = vcombine.high %v4677_v21, %v4677_v21 }
   0xa   :  { %v231_v22 = vcombine.high %v4675_v16, %v4675_v16  ;;  %v234_v23 = vunpack.c.0.s8 %v233_v18  ;;  %4767 = vmatprep.subr.bf16.mxu1 %v5387_v13  ;;  %v4676_v24 = vld.sshfl [vmem:[%s7224_s4 + $0x4] sm:$0x1 pattern:$0x75316420] }
   0xb   :  { %v4845_v2 = vld [vmem:[%s7316_s1] sm:$0xff]   ;;  %v4678_v29 = vld.sshfl [vmem:[%s7224_s4 + $0xc] sm:$0x1 pattern:$0x75316420] }
   0xc   :  { %v66_v5 = vld [vmem:[%s7317_s24] sm:$0xff]   ;;  %4750 = vmatmul.mubr.msk.bf16.vlgmr.msra.gmra.mrb[0].mxu0 %vm93_vm1, %v4845_v2  ;;  %v5401_v28 = vsub.s32 %v234_v23, %v5382_v12 }
   0xd   :  { %v736_v7 = vunpack.c.l.bf16 %v66_v5  ;;  %v737_v8 = vunpack.c.h.bf16 %v66_v5  ;;  %4754 = vmatpush3.bf16.msra.mxu0 %v4846_v3  ;;  %4757 = vmatprep.mubr.msk.bf16.mxu0 %vm5243_vm0, %v7241_v1  ;;  %v4849_v32 = vld [vmem:[%s7230_s10] sm:$0xff]  }
   0xe   :  { %4755 = vmatprep.subr.bf16.mxu0 %v7241_v1  ;;  %v238_v33 = vrot.slane %v4675_v16, %v5401_v28  ;;  %v245_v34 = vrot.slane %v231_v22, %v5401_v28  ;;  %v261_v35 = vrot.slane %v4676_v24, %v5401_v28  ;;  %v276_v36 = vrot.slane %v4677_v21, %v5401_v28  ;;  %v4683_v38 = vld.sshfl [vmem:[%s7225_s5] sm:$0x33 pattern:$0x75316420] }
   0xf   :  { %v738_v10 = vsel %vm155_vm2, %v736_v7, 0.0  ;;  %v745_v11 = vsel %vm155_vm2, %v737_v8, 0.0  ;;  %v283_v37 = vrot.slane %v269_v25, %v5401_v28  ;;  %v299_v41 = vrot.slane %v4678_v29, %v5401_v28  ;;  %v4684_v43 = vld.sshfl [vmem:[%s7225_s5 + $0x4] sm:$0x1 pattern:$0x75316420] }
  0x10   :  { %v739_v14 = vrot.slane %v738_v10, 4  ;;  %v746_v15 = vrot.slane %v745_v11, 4  ;;  %v302_v39 = vcombine.low %v238_v33, %v245_v34  ;;  %v4679_v40 = vcombine.high %v238_v33, %v245_v34 }
  0x11   :  { %4756 = vmatpush3.bf16.msra.mxu0 %v4847_v6  ;;  %v284_v45 = vcombine.high %v276_v36, %v276_v36  ;;  %v304_v46 = vcombine.low %v261_v35, %v276_v36  ;;  %v285_v47 = vcombine.high %v283_v37, %v283_v37 }
  0x12   :  { %v740_v19 = vadd.f32 %v739_v14, %v738_v10  ;;  %v747_v20 = vadd.f32 %v746_v15, %v745_v11  ;;  %4773 = vmatprep.subr.bf16.mxu0 %v7241_v1  ;;  %v312_v49 = vrot.slane %v302_v39, %v5401_v28  ;;  %v319_v50 = vrot.slane %v4679_v40, %v5401_v28 }
  0x14   :  { %v741_v26 = vrot.slane %v740_v19, 2  ;;  %v748_v27 = vrot.slane %v747_v20, 2 }
  0x16   :  { %v742_v30 = vadd.f32 %v741_v26, %v740_v19  ;;  %v749_v31 = vadd.f32 %v748_v27, %v747_v20 }
  0x18   :  { %v743_v42 = vrot.slane %v742_v30, 1  ;;  %4758 = vmatmul.mubr.msk.bf16.vlgmr.msra.gmra.mrb[0].mxu0 %vm155_vm2, %v66_v5  ;;  %v750_v48 = vrot.slane %v749_v31, 1 }
  0x19   :  { %4774 = vmatpush3.bf16.msra.mxu0 %v4849_v32  ;;  %4777 = vmatprep.mubr.msk.bf16.mxu0 %vm5243_vm0, %v7241_v1 }
  0x1a   :  { %v744_v51 = vadd.f32 %v743_v42, %v742_v30 }
  0x1b   :  { %26 = vsyncpa [#allocation6], 0  ;;  %4775 = vmatprep.subr.bf16.mxu0 %v7241_v1  ;;  %v305_v52 = vcombine.low %v283_v37, %v284_v45  ;;  %v326_v53 = vrot.slane %v304_v46, %v5401_v28  ;;  %v351_v54 = vcombine.low %v285_v47, %v299_v41  ;;  %v751_v55 = vadd.f32 %v750_v48, %v749_v31  ;;  %v4685_v56 = vld.sshfl [vmem:[%s7225_s5 + $0x8] sm:$0x33 pattern:$0x75316420] }
  0x1c   :  { %v334_v57 = vcombine.low %v312_v49, %v319_v50  ;;  %v753_v58 = vmul.f32 0.125, %v744_v51  ;;  %v496_v59 = vcombine.high %v4683_v38, %v4683_v38  ;;  %v503_v60 = vrot.slane %v4683_v38, %v5401_v28  ;;  %v4686_v11 = vld.sshfl [vmem:[%s7225_s5 + $0xc] sm:$0x1 pattern:$0x75316420]  ;;  %s7320_s8 = sld [smem:[#allocation57_spill]] }
  0x1d   :  { %v333_v61 = vrot.slane %v305_v52, %v5401_v28  ;;  %v358_v62 = vrot.slane %v351_v54, %v5401_v28  ;;  %v754_v63 = vmul.f32 0.125, %v751_v55  ;;  %v526_v0 = vrot.slane %v4684_v43, %v5401_v28  ;;  %4776 = vmatpush3.bf16.msra.mxu0 %v4851_v44  ;;  %s7322_s23 = sld [smem:[#allocation58_spill]]  ;;  %s5249_s5 = smov [#allocation5]  }
  0x1e   :  { %v342_v2 = vrot.slane %v334_v57, %v5401_v28  ;;  %v755_v3 = vpack.c.bf16 %v753_v58, %v753_v58  ;;  %v510_v5 = vrot.slane %v496_v59, %v5401_v28  ;;  %v534_v6 = vcombine.high %v4685_v56, %v4685_v56  ;;  %4787 = vmatprep.subr.bf16.mxu0 %v7241_v1  ;;  %s4647_s28 = sshll.u32 %s5249_s5, 4  ;;  %s4648_s28 = int_to_ptr.vmem [resolvable:$true] %s4647_s28 }
  0x1f   :  { %v335_v7 = vcombine.low %v326_v53, %v333_v61  ;;  %v365_v8 = vrot.slane %v358_v62, %v5401_v28  ;;  %v756_v9 = vpack.c.bf16 %v754_v63, %v754_v63  ;;  %v541_v10 = vrot.slane %v4685_v56, %v5401_v28  ;;  %s5194_s29 = scalar_lea.vmem %s4648_s28, 256  ;;  %p5199_p1 = scmp.lt.s32.totalorder %s4648_s28, %s4648_s28 }
  0x20   :  { %v763_v14 = vunpack.c.l.b16 %v755_v3  ;;  %v548_v15 = vrot.slane %v534_v6, %v5401_v28  ;;  %v567_v16 = vcombine.low %v503_v60, %v510_v5  ;;  %v4687_v17 = vcombine.high %v503_v60, %v510_v5  ;;  %p5195_p0 = scmp.ne.s32.totalorder %s4648_s28, %s5194_s29  ;;  %p5200_p2 = scmp.lt.s32.totalorder %s5194_s29, %s5194_s29 }
  0x21   :  { %v349_v18 = vrot.slane %v335_v7, %v5401_v28  ;;  %v764_v19 = vunpack.c.l.b16 %v756_v9  ;;  %v549_v20 = vcombine.high %v541_v10, %v541_v10  ;;  %v569_v21 = vcombine.low %v526_v0, %v541_v10 }
  0x22   :  { %v577_v22 = vrot.slane %v567_v16, %v5401_v28  ;;  %v584_v23 = vrot.slane %v4687_v17, %v5401_v28  ;;  %v550_v24 = vcombine.high %v548_v15, %v548_v15  ;;  %v564_v25 = vrot.slane %v4686_v11, %v5401_v28  ;;  %p5201_p3 = por %p5200_p2, %p5199_p1 }
  0x23   :  { %v350_v26 = vcombine.low %v342_v2, %v349_v18  ;;  %v766_v27 = vsel %vm765_vm3, %v764_v19, %v763_v14  ;;  %v570_v29 = vcombine.low %v548_v15, %v549_v20  ;;  %v591_v30 = vrot.slane %v569_v21, %v5401_v28 }
  0x24   :  { %v767_v31 = vpack.c.b16 %v766_v27, %v766_v27  ;;  %v599_v32 = vcombine.low %v577_v22, %v584_v23  ;;  %v616_v33 = vcombine.low %v550_v24, %v564_v25  ;;  %v5476_v55 = vsub.s32 0, %v5382_v12  ;;  %p5202_p4 = pnand %p5201_p3, %p5195_p0 }
  0x25   :  { %4763 = vmatprep.mubr.msk.bf16.mxu1 %vm93_vm1, %v350_v26  ;;  %v598_v34 = vrot.slane %v570_v29, %v5401_v28  ;;  %vm971_vm4 = vcmask 123904   ;;  %vm4254_vm5 = vcmask 1041408   ;;  %vm5247_vm6 = vmmov 1  }
  0x26   :  { %4764 = vmatmul.mubr.msk.bf16.vlgmr.msra.gmra.mrb[0].mxu1 %vm93_vm1, %v365_v8  ;;  %4778 = vmatmul.mubr.msk.bf16.vlgmr.msra.gmra.mrb[4].mxu0 %vm155_vm2, %v767_v31  ;;  %v623_v35 = vrot.slane %v616_v33, %v5401_v28  ;;  %v607_v37 = vrot.slane %v599_v32, %v5401_v28  ;;  %7319 = vst [vmem:[#allocation10_spill] sm:$0xff] %v5476_v55  ;;  %vm5623_vm7 = vmpackc.low %vm4254_vm5, %vm5247_vm6  ;;  %vm2671_vm8 = vcmask 254976   ;;  %vm2869_vm9 = vcmask 130112  }
  0x27   :  { %4768 = vmatpush3.bf16.msra.mxu1 %v5387_v13  ;;  %v600_v36 = vcombine.low %v591_v30, %v598_v34  ;;  %4789 = vmatprep.mubr.msk.bf16.mxu0 %vm5243_vm0, %v7241_v1  ;;  %v5245_v13 = vmov 1983009808   ;;  %vm3007_vm10 = vcmask 1042434   ;;  %vm3009_vm11 = vcmask 1043459  }
  0x28   :  { %v630_v39 = vrot.slane %v623_v35, %v5401_v28  ;;  %v431_v44 = vunpack.c.l.s4 %v5245_v13  ;;  %vm3011_vm12 = vcmask 1044484   ;;  %vm3013_vm13 = vcmask 1045509  }
  0x29   :  { %v614_v38 = vrot.slane %v600_v36, %v5401_v28  ;;  %vm3015_vm14 = vcmask 1046534   ;;  %vm3017_vm15 = vcmask 1047559  }
  0x2a   :  { %v432_v46 = vunpack.c.0.s8 %v431_v44 }
  0x2b   :  { %v615_v40 = vcombine.low %v607_v37, %v614_v38 }
  0x2c   :  { %v5471_v47 = vsub.s32 %v432_v46, %v5382_v12 }
  0x2d   :  { %4769 = vmatprep.mubr.msk.bf16.mxu1 %vm93_vm1, %v615_v40 }
  0x2e   :  { %4770 = vmatmul.mubr.msk.bf16.vlgmr.msra.gmra.mrb[4].mxu1 %vm93_vm1, %v630_v39 }
  0xeb   :  { %v5466_v41 = vpop.f32.mrb[0].mxu0 }
  0xec   :  { %v4759_v42 = vpop.f32.mrb[1].mxu0 }
  0xed   :  { %v5468_v43 = vpop.f32.mrb[2].mxu0 }
  0xee   :  { %v4760_v45 = vpop.f32.mrb[3].mxu0 }
  0xf9   :  { %v4765_v48 = vpop.f32.mrb[0].mxu1  ;;  %v817_v49 = vpop.f32.mrb[4].mxu0 }
  0xfa   :  { %v412_v50 = vpop.f32.mrb[1].mxu1  ;;  %v830_v51 = vrot.slane %v817_v49, %v5401_v28  ;;  %v4779_v52 = vpop.f32.mrb[5].mxu0  ;;  %v469_v58 = vrot.slane %v4765_v48, %v5471_v47 }
  0xfb   :  { %v429_v53 = vcombine.high %v412_v50, %v412_v50  ;;  %v436_v54 = vrot.slane %v412_v50, %v5471_v47  ;;  %v4766_v56 = vpop.f32.mrb[2].mxu1  ;;  %v820_v57 = vpop.f32.mrb[6].mxu0 }
  0xfc   :  { %v831_v59 = vcombine.high %v830_v51, %v830_v51  ;;  %v415_v60 = vpop.f32.mrb[3].mxu1  ;;  %v4780_v61 = vpop.f32.mrb[7].mxu0  ;;  %v838_v0 = vrot.slane %v830_v51, %v5401_v28  ;;  %v5487_v10 = vcombine.high %v469_v58, %v469_v58 }
  0xfd   :  { %v443_v62 = vrot.slane %v429_v53, %v5471_v47  ;;  %v444_v63 = vcombine.high %v436_v54, %v436_v54  ;;  %v446_v2 = vcombine.high %v415_v60, %v415_v60  ;;  %v5483_v5 = vrot.slane %v415_v60, %v5471_v47 }
  0xfe   :  { %v845_v3 = vrot.slane %v831_v59, %v5401_v28  ;;  %v849_v8 = vrot.slane %v838_v0, %v5476_v55 }
  0xff   :  { %v445_v6 = vcombine.high %v443_v62, %v443_v62  ;;  %v1005_v7 = vcombine.low %v436_v54, %v444_v63  ;;  %v460_v9 = vrot.slane %v446_v2, %v5471_v47  ;;  %v461_v14 = vcombine.high %v5483_v5, %v5483_v5 }
 0x100   :  { %v853_v11 = vrot.slane %v845_v3, %v5476_v55  ;;  %v854_v17 = vcombine.high %v849_v8, %v849_v8  ;;  %v861_v18 = vrot.slane %v849_v8, %v5471_v47 }
 0x101   :  { %v1006_v15 = vcombine.low %v443_v62, %v445_v6  ;;  %v5493_v16 = vrot.slane %v1005_v7, %v5471_v47  ;;  %v462_v21 = vcombine.high %v460_v9, %v460_v9  ;;  %v1029_v22 = vcombine.low %v461_v14, %v460_v9  ;;  %v4771_v3 = vpop.f32.mrb[4].mxu1 }
 0x102   :  { %v871_v19 = vcombine.high %v853_v11, %v853_v11  ;;  %v878_v20 = vrot.slane %v853_v11, %v5471_v47  ;;  %v868_v24 = vrot.slane %v854_v17, %v5471_v47  ;;  %v900_v25 = vmul.f32 %v861_v18, %v5483_v5 }
 0x103   :  { %v5498_v23 = vrot.slane %v1006_v15, %v5471_v47  ;;  %v869_v26 = vcombine.high %v861_v18, %v861_v18  ;;  %v1030_v30 = vcombine.low %v462_v21, %v469_v58  ;;  %v5503_v31 = vrot.slane %v1029_v22, %v5471_v47 }
 0x104   :  { %v886_v27 = vcombine.high %v878_v20, %v878_v20  ;;  %v901_v29 = vmul.f32 %v878_v20, %v461_v14  ;;  %v939_v33 = vrot.slane %v900_v25, %v5471_v47  ;;  %v905_v34 = vmul.f32 %v878_v20, %v5487_v10  ;;  %v70_v25 = vld [vmem:[%s7320_s8] sm:$0xff]  }
 0x105   :  { %v1021_v32 = vcombine.low %v5493_v16, %v5498_v23  ;;  %v870_v35 = vcombine.high %v868_v24, %v868_v24  ;;  %v5510_v37 = vrot.slane %v1030_v30, %v5471_v47  ;;  %v896_v38 = vmul.f32 %v861_v18, %v436_v54 }
 0x106   :  { %v902_v36 = vmul.f32 %v886_v27, %v460_v9  ;;  %v897_v39 = vmul.f32 %v869_v26, %v444_v63  ;;  %v972_v40 = vsel %vm971_vm4, %v939_v33, 0.0  ;;  %v963_v42 = vrot.slane %v905_v34, %v5471_v47  ;;  %v4855_v26 = vld [vmem:[%s7231_s11] sm:$0xff]  }
 0x107   :  { %v898_v13 = vmul.f32 %v868_v24, %v443_v62  ;;  %v899_v44 = vmul.f32 %v870_v35, %v445_v6  ;;  %v1045_v45 = vcombine.low %v5503_v31, %v5510_v37  ;;  %973 = vadd.xlane.f32.xlu1 %v972_v40  ;;  %v885_v48 = vrot.slane %v871_v19, %v5471_v47  ;;  %v677_v6 = vpop.f32.mrb[5].mxu1  ;;  %v4853_v24 = vld [vmem:[%s7232_s12] sm:$0xff]  }
 0x108   :  { %v916_v46 = vcombine.low %v896_v38, %v897_v39  ;;  %v940_v49 = vcombine.low %v901_v29, %v902_v36  ;;  %v978_v53 = vsel %vm971_vm4, %v963_v42, 0.0  ;;  %v4772_v7 = vpop.f32.mrb[6].mxu1  ;;  %v734_v14 = vrot.slane %v4771_v3, %v5471_v47  ;;  %4788 = vmatpush3.bf16.msra.mxu0 %v4853_v24  ;;  %4781 = vmatprep.subr.bf16.mxu1 %v4855_v26 }
 0x109   :  { %v917_v50 = vcombine.low %v898_v13, %v899_v44  ;;  %v887_v51 = vcombine.high %v885_v48, %v885_v48  ;;  %v903_v52 = vmul.f32 %v885_v48, %v462_v21  ;;  %v680_v8 = vpop.f32.mrb[7].mxu1  ;;  %4813 = vmatprep.subr.bf16.mxu0 %v7241_v1  ;;  %4782 = vmatpush3.bf16.msra.mxu1 %v4855_v26  ;;  %vm3028_vm4 = vcmask 80896  }
 0x10a   :  { %v924_v54 = vrot.slane %v916_v46, %v5471_v47  ;;  %v948_v62 = vrot.slane %v940_v49, %v5471_v47  ;;  %v711_v9 = vcombine.high %v680_v8, %v680_v8  ;;  %4793 = vmatprep.subr.bf16.mxu1 %v7241_v1  ;;  %v694_v42 = vcombine.high %v677_v6, %v677_v6 }
 0x10b   :  { %v931_v56 = vrot.slane %v917_v50, %v5471_v47  ;;  %979 = vadd.xlane.f32.xlu1 %v978_v53  ;;  %v904_v57 = vmul.f32 %v887_v51, %v469_v58  ;;  %v718_v58 = vrot.slane %v680_v8, %v5471_v47  ;;  %4790 = vmatmul.mubr.msk.bf16.vlgmr.msra.gmra.mrb[8].mxu0 %vm93_vm1, %v70_v25  ;;  %v4674_v53 = vmul.f32 -1.442695, %v5468_v43 }
 0x10c   :  { %v725_v11 = vrot.slane %v711_v9, %v5471_v47  ;;  %4815 = vmatprep.mubr.msk.bf16.mxu0 %vm5243_vm0, %v7241_v1  ;;  %v701_v46 = vrot.slane %v677_v6, %v5471_v47  ;;  %v708_v48 = vrot.slane %v694_v42, %v5471_v47  ;;  %v1052_v8 = vrot.slane %v5487_v10, %v5471_v47 }
 0x10d   :  { %v932_v59 = vcombine.low %v924_v54, %v931_v56  ;;  %v941_v60 = vcombine.low %v903_v52, %v904_v57  ;;  %v726_v15 = vcombine.high %v718_v58, %v718_v58  ;;  %v735_v54 = vcombine.high %v734_v14, %v734_v14 }
 0x10e   :  { %v727_v17 = vcombine.high %v725_v11, %v725_v11  ;;  %v709_v51 = vcombine.high %v701_v46, %v701_v46  ;;  %v710_v52 = vcombine.high %v708_v48, %v708_v48  ;;  %v1088_v56 = vrot.slane %v718_v58, %v5471_v47 }
 0x10f   :  { %v968_v61 = vsel %vm93_vm1, %v932_v59, 0.0  ;;  %v955_v63 = vrot.slane %v941_v60, %v5471_v47  ;;  %v1089_v18 = vcombine.low %v726_v15, %v725_v11  ;;  %v1028_v60 = vrot.slane %v5483_v5, %v5471_v47 }
 0x110   :  { %969 = vadd.xlane.f32.xlu0 %v968_v61  ;;  %v1090_v19 = vcombine.low %v727_v17, %v734_v14  ;;  %v1065_v61 = vcombine.low %v701_v46, %v709_v51  ;;  %v1112_v43 = vrot.slane %v735_v54, %v5471_v47 }
 0x111   :  { %v956_v0 = vcombine.low %v948_v62, %v955_v63  ;;  %v1097_v20 = vrot.slane %v1089_v18, %v5471_v47  ;;  %v1066_v62 = vcombine.low %v708_v48, %v710_v52 }
 0x112   :  { %v1104_v21 = vrot.slane %v1090_v19, %v5471_v47  ;;  %v1073_v9 = vrot.slane %v1065_v61, %v5471_v47 }
 0x113   :  { %v975_v2 = vsel %vm93_vm1, %v956_v0, 0.0  ;;  %v4673_v0 = vmul.f32 -1.442695, %v5466_v41  ;;  %v1080_v41 = vrot.slane %v1066_v62, %v5471_v47 }
 0x114   :  { %976 = vadd.xlane.f32.xlu0 %v975_v2  ;;  %v5529_v22 = vcombine.low %v1097_v20, %v1104_v21  ;;  %v4715_v21 = vld [vmem:[%s7322_s23] sm:$0xff]  }
 0x115   :  { %v1081_v18 = vcombine.low %v1073_v9, %v1080_v41  ;;  %v4716_v23 = vunpack.c.l.bf16 %v4715_v21 }
 0x194   :  { %v974_v27 = vpop.xlane.xlu1 %973 }
 0x195   :  { %v4695_v29 = vmul.f32 -1.442695, %v974_v27 }
 0x197   :  { %4860 = vpow2.f32 %v4695_v29 }
 0x198   :  { %v980_v30 = vpop.xlane.xlu1 %979 }
 0x199   :  { %v4697_v33 = vmul.f32 -1.442695, %v980_v30  ;;  %v4717_v30 = vunpack.c.h.bf16 %v4715_v21 }
 0x19b   :  { %4862 = vpow2.f32 %v4697_v33 }
 0x19d   :  { %v970_v34 = vpop.xlane.xlu0 %969 }
 0x19e   :  { %v4694_v35 = vmul.f32 -1.442695, %v970_v34 }
 0x1a0   :  { %4864 = vpow2.f32 %v4694_v35 }
 0x1a1   :  { %v4861_v36 = vpop.eup %4860  ;;  %v977_v38 = vpop.xlane.xlu0 %976 }
 0x1a2   :  { %v994_v39 = vadd.f32 1.0, %v4861_v36  ;;  %v4696_v40 = vmul.f32 -1.442695, %v977_v38 }
 0x1a4   :  { %4866 = vrcp.f32 %v994_v39 }
 0x1a5   :  { %v4863_v13 = vpop.eup %4862  ;;  %4868 = vpow2.f32 %v4696_v40 }
 0x1a6   :  { %v996_v44 = vadd.f32 1.0, %v4863_v13 }
 0x1a8   :  { %4870 = vrcp.f32 %v996_v44 }
 0x1aa   :  { %v4865_v49 = vpop.eup %4864 }
 0x1ab   :  { %v993_v50 = vadd.f32 1.0, %v4865_v49 }
 0x1ad   :  { %4872 = vrcp.f32 %v993_v50 }
 0x1ae   :  { %v4867_v57 = vpop.eup %4866  ;;  %4874 = vpow2.f32 %v4674_v53 }
 0x1af   :  { %v4869_v59 = vpop.eup %4868  ;;  %1126 = vst [vmem:[%s7239_s19 + $0x8] sm:$0x3] %v4867_v57  ;;  %v1062_v63 = vsub.f32 1.0, %v4867_v57  ;;  %v1058_v3 = vmul.f32 %v4867_v57, %v1028_v60 }
 0x1b0   :  { %v995_v2 = vadd.f32 1.0, %v4869_v59 }
 0x1b1   :  { %v1118_v6 = vmul.f32 %v1088_v56, %v1062_v63 }
 0x1b2   :  { %v4871_v7 = vpop.eup %4870  ;;  %4876 = vrcp.f32 %v995_v2 }
 0x1b3   :  { %1128 = vst [vmem:[%s7239_s19 + $0x18] sm:$0x3] %v4871_v7  ;;  %v1064_v5 = vsub.f32 1.0, %v4871_v7  ;;  %v5563_v58 = vadd.f32 %v1118_v6, %v1058_v3  ;;  %4878 = vpow2.f32 %v4673_v0  ;;  %v1060_v11 = vmul.f32 %v4871_v7, %v1052_v8  ;;  %v4856_v6 = vld [vmem:[%s7233_s13] sm:$0xff]  }
 0x1b4   :  { %4880 = vtanh.f32 %v4716_v23 }
 0x1b5   :  { %v1120_v14 = vmul.f32 %v1112_v43, %v1064_v5  ;;  %v1156_v44 = vrot.slane %v5563_v58, %v5471_v47  ;;  %4882 = vtanh.f32 %v4717_v30  ;;  %v5246_v5 = vmov 0.0|0.0  }
 0x1b7   :  { %v4873_v15 = vpop.eup %4872  ;;  %v5568_v10 = vadd.f32 %v1120_v14, %v1060_v11  ;;  %v7326_v11 = vmov 0 }
 0x1b8   :  { %1125 = vst [vmem:[%s7239_s19] sm:$0xff] %v4873_v15  ;;  %v1061_v17 = vsub.f32 1.0, %v4873_v15  ;;  %v1057_v19 = vmul.f32 %v4873_v15, %v1021_v32  ;;  %v4875_v24 = vpop.eup %4874  ;;  %v7327_v11 = vsel %vm5623_vm7, 4294967295, %v7326_v11 }
 0x1b9   :  { %7321 = vst [vmem:[#allocation11_spill] sm:$0xff] %v5568_v10  ;;  %v207_v38 = vadd.f32 1.0, %v4875_v24  ;;  %v1180_v51 = vrot.slane %v5568_v10, %v5471_v47  ;;  %7328 = vst [vmem:[#allocation15_spill] sm:$0xff] %v7327_v11 }
 0x1ba   :  { %v1117_v20 = vmul.f32 %v1081_v18, %v1061_v17 }
 0x1bb   :  { %4884 = vrcp.f32 %v207_v38 }
 0x1bc   :  { %v5576_v25 = vadd.f32 %v1117_v20, %v1057_v19  ;;  %v4877_v26 = vpop.eup %4876 }
 0x1bd   :  { %1127 = vst [vmem:[%s7239_s19 + $0x10] sm:$0xff] %v4877_v26  ;;  %v1063_v29 = vsub.f32 1.0, %v4877_v26  ;;  %v4879_v33 = vpop.eup %4878  ;;  %v1059_v34 = vmul.f32 %v4877_v26, %v1045_v45 }
 0x1be   :  { %v1133_v27 = vcombine.high %v5576_v25, %v5576_v25  ;;  %v4820_v16 = vpack.c.bf16 %v5563_v58, %v5576_v25  ;;  %v1140_v32 = vrot.slane %v5576_v25, %v5471_v47  ;;  %v206_v13 = vadd.f32 1.0, %v4879_v33  ;;  %v4881_v61 = vpop.eup %4880 }
 0x1bf   :  { %v1119_v35 = vmul.f32 %v5529_v22, %v1063_v29  ;;  %v4883_v2 = vpop.eup %4882 }
 0x1c0   :  { %v1147_v36 = vrot.slane %v1133_v27, %v5471_v47  ;;  %v1148_v40 = vcombine.high %v1140_v32, %v1140_v32  ;;  %4886 = vrcp.f32 %v206_v13 }
 0x1c1   :  { %v5592_v39 = vadd.f32 %v1119_v35, %v1059_v34 }
 0x1c2   :  { %v1149_v42 = vcombine.high %v1147_v36, %v1147_v36  ;;  %v1181_v50 = vcombine.low %v1140_v32, %v1148_v40 }
 0x1c3   :  { %7323 = vst [vmem:[#allocation12_spill] sm:$0xff] %v5592_v39  ;;  %v1164_v46 = vrot.slane %v5592_v39, %v5471_v47  ;;  %v1157_v31 = vcombine.high %v5592_v39, %v5592_v39 }
 0x1c4   :  { %v1182_v37 = vcombine.low %v1147_v36, %v1149_v42  ;;  %v1189_v56 = vrot.slane %v1181_v50, %v5471_v47 }
 0x1c5   :  { %v1198_v22 = vcombine.low %v1156_v44, %v1164_v46  ;;  %v1171_v48 = vrot.slane %v1157_v31, %v5471_v47  ;;  %v1172_v49 = vcombine.high %v1164_v46, %v1164_v46  ;;  %v4885_v7 = vpop.eup %4884 }
 0x1c6   :  { %v1196_v52 = vrot.slane %v1182_v37, %v5471_v47  ;;  %v5617_v9 = vmul.f32 %v4885_v7, %v4883_v2 }
 0x1c7   :  { %v1199_v53 = vcombine.low %v1172_v49, %v1171_v48  ;;  %v1173_v54 = vcombine.high %v1171_v48, %v1171_v48  ;;  %v1206_v57 = vrot.slane %v1198_v22, %v5471_v47 }
 0x1c8   :  { %v1197_v62 = vcombine.low %v1189_v56, %v1196_v52  ;;  %7324 = vst [vmem:[#allocation13_spill] sm:$0xff] %v5617_v9 }
 0x1c9   :  { %v1213_v59 = vrot.slane %v1199_v53, %v5471_v47  ;;  %v1215_v60 = vcombine.low %v1173_v54, %v1180_v51 }
 0x1ca   :  { %v4887_v8 = vpop.eup %4886 }
 0x1cb   :  { %v1214_v63 = vcombine.low %v1206_v57, %v1213_v59  ;;  %v1222_v0 = vrot.slane %v1215_v60, %v5471_v47  ;;  %v5619_v41 = vmul.f32 %v4887_v8, %v4881_v61 }
 0x1cd   :  { %v1226_v43 = vpack.c.bf16 %v1214_v63, %v1197_v62  ;;  %v1227_v3 = vpack.c.bf16 %v1222_v0, %v1222_v0  ;;  %7325 = vst [vmem:[#allocation14_spill] sm:$0xff] %v5619_v41  ;;  %v1347_v58 = vpack.c.bf16 %v5617_v9, %v5619_v41 }
 0x1cf   :  { %4783 = vmatprep.mubr.msk.bf16.mxu1 %vm93_vm1, %v1226_v43 }
 0x1d0   :  { %4784 = vmatmul.mubr.msk.bf16.vlgmr.msra.gmra.mrb[8].mxu1 %vm93_vm1, %v1227_v3 }
 0x1d1   :  { %4794 = vmatpush3.bf16.msra.mxu1 %v4856_v6  ;;  %4795 = vmatprep.mubr.msk.bf16.mxu1 %vm5243_vm0, %v7241_v1 }
 0x1d2   :  { %4819 = vmatprep.subr.bf16.mxu1 %v5246_v5 }
 0x1d8   :  { %4796 = vmatmul.mubr.msk.bf16.vlgmr.msra.gmra.mrb[12].mxu1 %vm93_vm1, %v1347_v58 }
 0x1d9   :  { %4822 = vmatpush3.bf16.msk.msra.mxu1 %vm5623_vm7, %v4820_v16  ;;  %4803 = vmatprep.mubr.msk.f32.mxu1 %vm5243_vm0, %v7241_v1 }
 0x1da   :  { %4823 = vmatprep.subr.bf16.mxu1 %v5246_v5 }
 0x1de   :  { %v5632_v14 = vpop.f32.mrb[8].mxu0 }
 0x1df   :  { %v4791_v15 = vpop.f32.mrb[9].mxu0  ;;  %v1415_v19 = vrot.slane %v5632_v14, %v5401_v28  ;;  %v1408_v20 = vcombine.high %v5632_v14, %v5632_v14 }
 0x1e0   :  { %v5634_v17 = vpop.f32.mrb[10].mxu0 }
 0x1e1   :  { %v4792_v18 = vpop.f32.mrb[11].mxu0  ;;  %v1423_v21 = vcombine.high %v1415_v19, %v1415_v19  ;;  %v1431_v24 = vrot.slane %v1415_v19, %v5401_v28  ;;  %v1422_v25 = vrot.slane %v1408_v20, %v5401_v28  ;;  %v1457_v32 = vcombine.high %v5634_v17, %v5634_v17 }
 0x1e2   :  { %v1464_v35 = vrot.slane %v5634_v17, %v5401_v28 }
 0x1e3   :  { %v1445_v26 = vrot.slane %v1423_v21, %v5401_v28  ;;  %v1453_v27 = vcombine.high %v1431_v24, %v1431_v24  ;;  %v1424_v29 = vcombine.high %v1422_v25, %v1422_v25  ;;  %v1509_v23 = vrot.slane %v1431_v24, %v5476_v55 }
 0x1e4   :  { %v1438_v30 = vrot.slane %v1422_v25, %v5401_v28  ;;  %v1471_v42 = vrot.slane %v1457_v32, %v5401_v28  ;;  %v1472_v22 = vcombine.high %v1464_v35, %v1464_v35  ;;  %v1480_v54 = vrot.slane %v1464_v35, %v5401_v28 }
 0x1e5   :  { %v1455_v16 = vcombine.high %v1445_v26, %v1445_v26  ;;  %v1513_v33 = vrot.slane %v1445_v26, %v5476_v55  ;;  %v1517_v34 = vrot.slane %v1453_v27, %v5476_v55  ;;  %v1452_v36 = vrot.slane %v1424_v29, %v5401_v28 }
 0x1e6   :  { %v1570_v40 = vcombine.high %v1509_v23, %v1509_v23  ;;  %v1454_v13 = vcombine.high %v1438_v30, %v1438_v30  ;;  %v1525_v44 = vrot.slane %v1438_v30, %v5476_v55  ;;  %v5656_v31 = vrot.slane %v1509_v23, %v5471_v47 }
 0x1e7   :  { %v1521_v38 = vrot.slane %v1455_v16, %v5476_v55  ;;  %v1587_v46 = vcombine.high %v1513_v33, %v1513_v33  ;;  %v1604_v37 = vcombine.high %v1517_v34, %v1517_v34  ;;  %v1456_v48 = vcombine.high %v1452_v36, %v1452_v36 }
 0x1e8   :  { %v5659_v49 = vrot.slane %v1570_v40, %v5471_v47  ;;  %v5662_v50 = vrot.slane %v1513_v33, %v5471_v47  ;;  %v5665_v52 = vrot.slane %v1517_v34, %v5471_v47  ;;  %v1473_v53 = vcombine.high %v1471_v42, %v1471_v42 }
 0x1e9   :  { %v1621_v51 = vcombine.high %v1521_v38, %v1521_v38  ;;  %v1529_v56 = vrot.slane %v1452_v36, %v5476_v55  ;;  %v1533_v57 = vrot.slane %v1454_v13, %v5476_v55  ;;  %v5671_v59 = vrot.slane %v1587_v46, %v5471_v47 }
 0x1ea   :  { %v1638_v60 = vcombine.high %v1525_v44, %v1525_v44  ;;  %v1585_v61 = vcombine.high %v5656_v31, %v5656_v31  ;;  %v5676_v62 = vrot.slane %v1604_v37, %v5471_v47  ;;  %v5679_v63 = vrot.slane %v1521_v38, %v5471_v47 }
 0x1eb   :  { %v1494_v0 = vrot.slane %v1472_v22, %v5401_v28  ;;  %v1537_v2 = vrot.slane %v1456_v48, %v5476_v55  ;;  %v5688_v6 = vrot.slane %v1621_v51, %v5471_v47  ;;  %v5693_v8 = vrot.slane %v1525_v44, %v5471_v47 }
 0x1ec   :  { %v1487_v5 = vrot.slane %v1471_v42, %v5401_v28  ;;  %v1501_v58 = vrot.slane %v1473_v53, %v5401_v28  ;;  %v5700_v18 = vrot.slane %v1638_v60, %v5471_v47  ;;  %v1655_v19 = vcombine.high %v1529_v56, %v1529_v56 }
 0x1ed   :  { %v1502_v20 = vcombine.high %v1480_v54, %v1480_v54  ;;  %v1672_v25 = vcombine.high %v1533_v57, %v1533_v57  ;;  %v1504_v26 = vcombine.high %v1494_v0, %v1494_v0  ;;  %v5709_v28 = vrot.slane %v1529_v56, %v5471_v47 }
 0x1ee   :  { %v1689_v29 = vcombine.high %v1537_v2, %v1537_v2  ;;  %v1541_v16 = vrot.slane %v1480_v54, %v5476_v55  ;;  %v1503_v32 = vcombine.high %v1487_v5, %v1487_v5  ;;  %v1505_v30 = vcombine.high %v1501_v58, %v1501_v58 }
 0x1ef   :  { %v1545_v33 = vrot.slane %v1494_v0, %v5476_v55  ;;  %v5718_v35 = vrot.slane %v1655_v19, %v5471_v47  ;;  %v5721_v36 = vrot.slane %v1533_v57, %v5471_v47  ;;  %v1549_v38 = vrot.slane %v1502_v20, %v5476_v55 }
 0x1f0   :  { %v5725_v40 = vrot.slane %v1672_v25, %v5471_v47  ;;  %v5728_v42 = vrot.slane %v1537_v2, %v5471_v47  ;;  %v1553_v13 = vrot.slane %v1504_v26, %v5476_v55  ;;  %v1557_v44 = vrot.slane %v1487_v5, %v5476_v55  ;;  %v4704_v25 = vld [vmem:[%s7234_s14] ss:$0 sm:$0xff] }
 0x1f1   :  { %7329 = vst [vmem:[#allocation16_spill] sm:$0xff] %v5721_v36  ;;  %v5733_v46 = vrot.slane %v1689_v29, %v5471_v47  ;;  %v1561_v37 = vrot.slane %v1501_v58, %v5476_v55  ;;  %v1706_v22 = vcombine.high %v1541_v16, %v1541_v16  ;;  %v5737_v48 = vrot.slane %v1541_v16, %v5471_v47 }
 0x1f2   :  { %7330 = vst [vmem:[#allocation17_spill] sm:$0xff] %v5728_v42  ;;  %v1565_v53 = vrot.slane %v1503_v32, %v5476_v55  ;;  %v1569_v54 = vrot.slane %v1505_v30, %v5476_v55  ;;  %v1723_v56 = vcombine.high %v1545_v33, %v1545_v33  ;;  %v5748_v0 = vrot.slane %v1545_v33, %v5471_v47 }
 0x1f3   :  { %v1740_v2 = vcombine.high %v1549_v38, %v1549_v38  ;;  %v1757_v19 = vcombine.high %v1553_v13, %v1553_v13  ;;  %v1774_v20 = vcombine.high %v1557_v44, %v1557_v44  ;;  %v5760_v29 = vrot.slane %v1706_v22, %v5471_v47 }
 0x1f4   :  { %v1791_v32 = vcombine.high %v1561_v37, %v1561_v37  ;;  %v5765_v30 = vrot.slane %v1723_v56, %v5471_v47  ;;  %v5768_v33 = vrot.slane %v1549_v38, %v5471_v47  ;;  %v1808_v1 = vcombine.high %v1565_v53, %v1565_v53 }
 0x1f5   :  { %v1825_v45 = vcombine.high %v1569_v54, %v1569_v54  ;;  %v5773_v26 = vrot.slane %v1740_v2, %v5471_v47  ;;  %v5776_v22 = vrot.slane %v1553_v13, %v5471_v47  ;;  %v2071_v58 = vcombine.high %v4704_v25, %v4704_v25 }
 0x1f6   :  { %v5779_v16 = vrot.slane %v1757_v19, %v5471_v47  ;;  %v5782_v56 = vrot.slane %v1557_v44, %v5471_v47  ;;  %v5785_v38 = vrot.slane %v1774_v20, %v5471_v47  ;;  %v5788_v5 = vrot.slane %v1561_v37, %v5471_v47 }
 0x1f7   :  { %v1722_v2 = vcombine.high %v5760_v29, %v5760_v29  ;;  %v5793_v4 = vrot.slane %v1791_v32, %v5471_v47  ;;  %v5796_v13 = vrot.slane %v1565_v53, %v5471_v47  ;;  %v5799_v19 = vrot.slane %v1569_v54, %v5471_v47 }
 0x1f8   :  { %7331 = vst [vmem:[#allocation18_spill] sm:$0xff] %v5782_v56  ;;  %7332 = vst [vmem:[#allocation19_spill] sm:$0xff] %v5785_v38  ;;  %v1739_v44 = vcombine.high %v5765_v30, %v5765_v30  ;;  %v5806_v37 = vrot.slane %v1808_v1, %v5471_v47  ;;  %v5809_v60 = vrot.slane %v1825_v45, %v5471_v47 }
 0x1f9   :  { %7333 = vst [vmem:[#allocation20_spill] sm:$0xff] %v5788_v5  ;;  %7334 = vst [vmem:[#allocation21_spill] sm:$0xff] %v5793_v4  ;;  %v1756_v32 = vcombine.high %v5773_v26, %v5773_v26  ;;  %v5816_v54 = vrot.slane %v4704_v25, %v5471_v47  ;;  %v5819_v57 = vrot.slane %v2071_v58, %v5471_v47 }
 0x1fa   :  { %7335 = vst [vmem:[#allocation22_spill] sm:$0xff] %v5796_v13  ;;  %7336 = vst [vmem:[#allocation23_spill] sm:$0xff] %v5799_v19 }
 0x1fb   :  { %7337 = vst [vmem:[#allocation24_spill] sm:$0xff] %v5806_v37  ;;  %7338 = vst [vmem:[#allocation25_spill] sm:$0xff] %v5809_v60  ;;  %v5855_v45 = vcombine.high %v5819_v57, %v5819_v57  ;;  %v7348_v37 = vcombine.high %v5665_v52, %v5665_v52 }
 0x2a3   :  { %v4785_v34 = vpop.f32.mrb[8].mxu1 }
 0x2a4   :  { %v5836_v20 = vrot.slane %v4785_v34, %v5471_v47  ;;  %v1276_v1 = vpop.f32.mrb[9].mxu1  ;;  %v5851_v34 = vcombine.high %v5816_v54, %v5816_v54 }
 0x2a5   :  { %v1354_v23 = vcombine.high %v1276_v1, %v1276_v1  ;;  %v5843_v27 = vrot.slane %v1276_v1, %v5471_v47  ;;  %v4786_v25 = vpop.f32.mrb[10].mxu1 }
 0x2a6   :  { %7339 = vst [vmem:[#allocation26_spill] sm:$0xff] %v5836_v20  ;;  %v5847_v58 = vcombine.high %v5836_v20, %v5836_v20  ;;  %v1279_v53 = vpop.f32.mrb[11].mxu1  ;;  %v5858_v51 = vadd.f32 %v1722_v2, %v5836_v20  ;;  %v5868_v21 = vadd.f32 %v1739_v44, %v5836_v20 }
 0x2a7   :  { %v5861_v1 = vrot.slane %v1354_v23, %v5471_v47  ;;  %v5865_v25 = vcombine.high %v5843_v27, %v5843_v27  ;;  %v1371_v24 = vcombine.high %v1279_v53, %v1279_v53  ;;  %v5871_v7 = vrot.slane %v1279_v53, %v5471_v47 }
 0x2a8   :  { %7340 = vst [vmem:[#allocation27_spill] sm:$0xff] %v5847_v58  ;;  %7341 = vst [vmem:[#allocation28_spill] sm:$0xff] %v5858_v51  ;;  %v1950_v15 = vadd.f32 %v5737_v48, %v5847_v58  ;;  %v1955_v2 = vadd.f32 %v5748_v0, %v5847_v58  ;;  %v1906_v23 = vadd.f32 %v5656_v31, %v5843_v27 }
 0x2a9   :  { %7342 = vst [vmem:[#allocation29_spill] sm:$0xff] %v5868_v21  ;;  %v5881_v43 = vcombine.high %v5861_v1, %v5861_v1  ;;  %v5884_v3 = vrot.slane %v1371_v24, %v5471_v47  ;;  %v1907_v44 = vadd.f32 %v1585_v61, %v5865_v25  ;;  %v5891_v53 = vadd.f32 %v1756_v32, %v5836_v20 }
 0x2aa   :  { %4888 = vtanh.f32 %v1950_v15  ;;  %v1908_v9 = vadd.f32 %v5659_v49, %v5861_v1  ;;  %v1911_v41 = vadd.f32 %v5662_v50, %v5843_v27  ;;  %v7344_v24 = vcombine.high %v5662_v50, %v5662_v50 }
 0x2ab   :  { %7343 = vst [vmem:[#allocation30_spill] sm:$0xff] %v5891_v53  ;;  %v2808_v39 = vpop.f32.mrb[12].mxu1  ;;  %4890 = vtanh.f32 %v1955_v2  ;;  %v7345_v61 = vcombine.high %v5659_v49, %v5659_v49  ;;  %v1960_v15 = vadd.f32 %v5768_v33, %v5847_v58  ;;  %v1913_v10 = vadd.f32 %v5671_v59, %v5861_v1 }
 0x2ac   :  { %v1912_v11 = vadd.f32 %v7344_v24, %v5865_v25  ;;  %v5911_v55 = vcombine.high %v5871_v7, %v5871_v7  ;;  %v5914_v12 = vadd.f32 %v2808_v39, %v5632_v14  ;;  %v4797_v24 = vpop.f32.mrb[13].mxu1  ;;  %4892 = vtanh.f32 %v1906_v23 }
 0x2ad   :  { %v1909_v32 = vadd.f32 %v7345_v61, %v5881_v43  ;;  %v7347_v49 = vcombine.high %v5671_v59, %v5671_v59  ;;  %v2811_v61 = vpop.f32.mrb[14].mxu1  ;;  %4894 = vtanh.f32 %v1907_v44  ;;  %v1916_v60 = vadd.f32 %v5665_v52, %v5843_v27 }
 0x2ae   :  { %7346 = vst [vmem:[#allocation31_spill] sm:$0xff] %v5914_v12  ;;  %v1917_v19 = vadd.f32 %v7348_v37, %v5865_v25  ;;  %v1918_v39 = vadd.f32 %v5676_v62, %v5861_v1  ;;  %v5930_v14 = vcombine.high %v5884_v3, %v5884_v3  ;;  %v5933_v59 = vadd.f32 %v2811_v61, %v5634_v17  ;;  %v4798_v23 = vpop.f32.mrb[15].mxu1 }
 0x2af   :  { %v1914_v2 = vadd.f32 %v7347_v49, %v5881_v43  ;;  %v1965_v44 = vadd.f32 %v5776_v22, %v5847_v58  ;;  %v7350_v24 = vcombine.high %v5676_v62, %v5676_v62  ;;  %4896 = vtanh.f32 %v1908_v9 }
 0x2b0   :  { %7349 = vst [vmem:[#allocation32_spill] sm:$0xff] %v5933_v59  ;;  %v5943_v49 = vadd.f32 %v5679_v63, %v5843_v27  ;;  %v7351_v17 = vcombine.high %v5679_v63, %v5679_v63  ;;  %v5953_v23 = vadd.f32 %v5688_v6, %v5861_v1  ;;  %v1970_v12 = vadd.f32 %v5782_v56, %v5847_v58 }
 0x2b1   :  { %v1919_v37 = vadd.f32 %v7350_v24, %v5881_v43  ;;  %v7352_v9 = vcombine.high %v5688_v6, %v5688_v6  ;;  %v5965_v24 = vadd.f32 %v5788_v5, %v5847_v58  ;;  %4898 = vtanh.f32 %v1909_v32 }
 0x2b2   :  { %v5949_v61 = vadd.f32 %v7351_v17, %v5865_v25  ;;  %v5969_v17 = vadd.f32 %v5693_v8, %v5843_v27  ;;  %v7353_v59 = vcombine.high %v5693_v8, %v5693_v8  ;;  %v5979_v6 = vadd.f32 %v5700_v18, %v5861_v1 }
 0x2b3   :  { %v5961_v62 = vadd.f32 %v7352_v9, %v5881_v43  ;;  %v7354_v9 = vcombine.high %v5700_v18, %v5700_v18  ;;  %4900 = vtanh.f32 %v1960_v15  ;;  %v5989_v32 = vadd.f32 %v5796_v13, %v5847_v58 }
 0x2b4   :  { %v5975_v4 = vadd.f32 %v7353_v59, %v5865_v25  ;;  %v5993_v5 = vadd.f32 %v5709_v28, %v5843_v27  ;;  %v7355_v59 = vcombine.high %v5709_v28, %v5709_v28  ;;  %4902 = vtanh.f32 %v1911_v41  ;;  %v4889_v58 = vpop.eup %4888 }
 0x2b5   :  { %v5985_v53 = vadd.f32 %v7354_v9, %v5881_v43  ;;  %v6003_v18 = vadd.f32 %v5718_v35, %v5861_v1  ;;  %v7356_v15 = vcombine.high %v5718_v35, %v5718_v35  ;;  %v6013_v13 = vadd.f32 %v5656_v31, %v5871_v7 }
 0x2b6   :  { %v5999_v21 = vadd.f32 %v7355_v59, %v5865_v25  ;;  %4904 = vtanh.f32 %v1912_v11  ;;  %v6017_v59 = vadd.f32 %v5721_v36, %v5843_v27  ;;  %v7357_v41 = vcombine.high %v5721_v36, %v5721_v36 }
 0x2b7   :  { %v6009_v9 = vadd.f32 %v7356_v15, %v5881_v43  ;;  %v6027_v35 = vadd.f32 %v5725_v40, %v5861_v1  ;;  %v4891_v15 = vpop.eup %4890  ;;  %v2136_v31 = vmul.f32 %v4889_v58, %v5816_v54  ;;  %4906 = vtanh.f32 %v1913_v10 }
 0x2b8   :  { %v6023_v38 = vadd.f32 %v7357_v41, %v5865_v25  ;;  %v7358_v11 = vcombine.high %v5725_v40, %v5725_v40  ;;  %v6038_v56 = vadd.f32 %v5662_v50, %v5871_v7  ;;  %v4893_v41 = vpop.eup %4892  ;;  %v2141_v36 = vmul.f32 %v4891_v15, %v5816_v54 }
 0x2b9   :  { %4908 = vtanh.f32 %v1914_v2  ;;  %v6043_v20 = vadd.f32 %v5728_v42, %v5843_v27  ;;  %v7359_v10 = vcombine.high %v5728_v42, %v5728_v42  ;;  %v4895_v40 = vpop.eup %4894  ;;  %v2092_v50 = vmul.f32 %v4893_v41, %v5816_v54 }
 0x2ba   :  { %v6034_v51 = vadd.f32 %v7358_v11, %v5881_v43  ;;  %v2467_v11 = vrot.slane %v2136_v31, %v5471_v47  ;;  %4910 = vtanh.f32 %v1965_v44  ;;  %v6055_v15 = vadd.f32 %v5733_v46, %v5861_v1  ;;  %v4897_v42 = vpop.eup %4896 }
 0x2bb   :  { %v6049_v58 = vadd.f32 %v7359_v10, %v5865_v25  ;;  %v2491_v2 = vrot.slane %v2141_v36, %v5471_v47  ;;  %v2093_v27 = vmul.f32 %v4895_v40, %v5851_v34  ;;  %4912 = vtanh.f32 %v1916_v60 }
 0x2bc   :  { %v7360_v25 = vcombine.high %v5733_v46, %v5733_v46  ;;  %v2720_v31 = vsel %vm2671_vm8, %v2467_v11, 0.0  ;;  %4914 = vtanh.f32 %v1917_v19  ;;  %v6068_v44 = vadd.f32 %v5665_v52, %v5871_v7 }
 0x2bd   :  { %v6072_v36 = vadd.f32 %v5737_v48, %v5911_v55  ;;  %2721 = vadd.xlane.f32.xlu1 %v2720_v31  ;;  %v2726_v60 = vsel %vm2671_vm8, %v2491_v2, 0.0  ;;  %v2094_v1 = vmul.f32 %v4897_v42, %v5819_v57  ;;  %v2252_v46 = vcombine.low %v2092_v50, %v2093_v27 }
 0x2be   :  { %v6063_v10 = vadd.f32 %v7360_v25, %v5881_v43  ;;  %4916 = vtanh.f32 %v1918_v39  ;;  %v4899_v43 = vpop.eup %4898  ;;  %v7361_v19 = vcombine.high %v5737_v48, %v5737_v48  ;;  %v6084_v52 = vadd.f32 %v5760_v29, %v5930_v14 }
 0x2bf   :  { %4918 = vtanh.f32 %v1919_v37  ;;  %v6088_v40 = vadd.f32 %v5679_v63, %v5871_v7  ;;  %v4901_v11 = vpop.eup %4900  ;;  %v2095_v42 = vmul.f32 %v4899_v43, %v5855_v45  ;;  %v2260_v39 = vrot.slane %v2252_v46, %v5471_v47 }
 0x2c0   :  { %v6080_v41 = vadd.f32 %v7361_v19, %v5884_v3  ;;  %4920 = vtanh.f32 %v1970_v12  ;;  %v6094_v37 = vadd.f32 %v5748_v0, %v5911_v55  ;;  %v4903_v48 = vpop.eup %4902  ;;  %v2146_v50 = vmul.f32 %v4901_v11, %v5816_v54 }
 0x2c1   :  { %4922 = vtanh.f32 %v5943_v49  ;;  %v7362_v63 = vcombine.high %v5748_v0, %v5748_v0  ;;  %v6106_v2 = vadd.f32 %v5765_v30, %v5930_v14  ;;  %v4905_v12 = vpop.eup %4904  ;;  %2727 = vadd.xlane.f32.xlu1 %v2726_v60  ;;  %v2253_v27 = vcombine.low %v2094_v1, %v2095_v42 }
 0x2c2   :  { %v2097_v25 = vmul.f32 %v4903_v48, %v5816_v54  ;;  %4924 = vtanh.f32 %v5949_v61  ;;  %v6112_v49 = vadd.f32 %v5693_v8, %v5871_v7  ;;  %v4907_v31 = vpop.eup %4906  ;;  %v2515_v0 = vrot.slane %v2146_v50, %v5471_v47 }
 0x2c3   :  { %v6102_v29 = vadd.f32 %v7362_v63, %v5884_v3  ;;  %v2098_v46 = vmul.f32 %v4905_v12, %v5851_v34  ;;  %4926 = vtanh.f32 %v5953_v23  ;;  %v6119_v30 = vadd.f32 %v5768_v33, %v5911_v55  ;;  %v4909_v60 = vpop.eup %4908 }
 0x2c4   :  { %v2267_v1 = vrot.slane %v2253_v27, %v5471_v47  ;;  %v2099_v61 = vmul.f32 %v4907_v31, %v5819_v57  ;;  %4928 = vtanh.f32 %v5961_v62  ;;  %v7363_v8 = vcombine.high %v5768_v33, %v5768_v33  ;;  %v4911_v19 = vpop.eup %4910 }
 0x2c5   :  { %v2732_v23 = vsel %vm2671_vm8, %v2515_v0, 0.0  ;;  %v2100_v11 = vmul.f32 %v4909_v60, %v5855_v45  ;;  %v2276_v42 = vcombine.low %v2097_v25, %v2098_v46  ;;  %4930 = vtanh.f32 %v5965_v24  ;;  %v4913_v48 = vpop.eup %4912 }
 0x2c6   :  { %v6128_v43 = vadd.f32 %v7363_v8, %v5884_v3  ;;  %v2268_v50 = vcombine.low %v2260_v39, %v2267_v1  ;;  %2733 = vadd.xlane.f32.xlu1 %v2732_v23  ;;  %v2151_v63 = vmul.f32 %v4911_v19, %v5816_v54  ;;  %4932 = vtanh.f32 %v5969_v17  ;;  %v4915_v62 = vpop.eup %4914 }
 0x2c7   :  { %v6137_v33 = vadd.f32 %v5773_v26, %v5930_v14  ;;  %v2277_v12 = vcombine.low %v2099_v61, %v2100_v11  ;;  %v2284_v27 = vrot.slane %v2276_v42, %v5471_v47  ;;  %v2102_v31 = vmul.f32 %v4913_v48, %v5816_v54 }
 0x2c8   :  { %4934 = vtanh.f32 %v5975_v4  ;;  %v4917_v24 = vpop.eup %4916  ;;  %v2668_v39 = vsel %vm155_vm2, %v2268_v50, 0.0  ;;  %v2539_v25 = vrot.slane %v2151_v63, %v5471_v47  ;;  %v2103_v0 = vmul.f32 %v4915_v62, %v5851_v34 }
 0x2c9   :  { %4936 = vtanh.f32 %v5979_v6  ;;  %v4919_v17 = vpop.eup %4918  ;;  %2669 = vadd.xlane.f32.xlu0 %v2668_v39  ;;  %v2291_v26 = vrot.slane %v2277_v12, %v5471_v47  ;;  %v2104_v46 = vmul.f32 %v4917_v24, %v5819_v57  ;;  %v6151_v4 = vadd.f32 %v5709_v28, %v5871_v7 }
 0x2ca   :  { %4938 = vtanh.f32 %v5985_v53  ;;  %v4921_v60 = vpop.eup %4920  ;;  %v2738_v1 = vsel %vm2671_vm8, %v2539_v25, 0.0  ;;  %v2105_v61 = vmul.f32 %v4919_v17, %v5855_v45  ;;  %v2300_v8 = vcombine.low %v2102_v31, %v2103_v0 }
 0x2cb   :  { %4940 = vtanh.f32 %v5989_v32  ;;  %v4923_v6 = vpop.eup %4922  ;;  %v2292_v19 = vcombine.low %v2284_v27, %v2291_v26  ;;  %2739 = vadd.xlane.f32.xlu1 %v2738_v1  ;;  %v2156_v23 = vmul.f32 %v4921_v60, %v5816_v54  ;;  %v6160_v53 = vadd.f32 %v5776_v22, %v5911_v55 }
 0x2cc   :  { %4942 = vtanh.f32 %v5993_v5  ;;  %v4925_v28 = vpop.eup %4924  ;;  %v2301_v11 = vcombine.low %v2104_v46, %v2105_v61  ;;  %v2308_v42 = vrot.slane %v2300_v8, %v5471_v47  ;;  %v2107_v48 = vmul.f32 %v4923_v6, %v5816_v54 }
 0x2cd   :  { %4944 = vtanh.f32 %v5999_v21  ;;  %v4927_v32 = vpop.eup %4926  ;;  %v2675_v50 = vsel %vm155_vm2, %v2292_v19, 0.0  ;;  %v2563_v63 = vrot.slane %v2156_v23, %v5471_v47  ;;  %v2108_v62 = vmul.f32 %v4925_v28, %v5851_v34  ;;  %v7365_v28 = vld [vmem:[#allocation26_spill] sm:$0xff] }
 0x2ce   :  { %4946 = vtanh.f32 %v6003_v18  ;;  %v4929_v5 = vpop.eup %4928  ;;  %2676 = vadd.xlane.f32.xlu0 %v2675_v50  ;;  %v2315_v12 = vrot.slane %v2301_v11, %v5471_v47  ;;  %v2109_v27 = vmul.f32 %v4927_v32, %v5819_v57  ;;  %v7364_v21 = vcombine.high %v5776_v22, %v5776_v22 }
 0x2cf   :  { %4948 = vtanh.f32 %v6009_v9  ;;  %v4931_v24 = vpop.eup %4930  ;;  %v2744_v39 = vsel %vm2671_vm8, %v2563_v63, 0.0  ;;  %v2110_v25 = vmul.f32 %v4929_v5, %v5855_v45  ;;  %v2324_v18 = vcombine.low %v2107_v48, %v2108_v62 }
 0x2d0   :  { %v6176_v31 = vadd.f32 %v7364_v21, %v5884_v3  ;;  %4950 = vtanh.f32 %v6013_v13  ;;  %v4933_v0 = vpop.eup %4932  ;;  %v2316_v17 = vcombine.low %v2308_v42, %v2315_v12  ;;  %2745 = vadd.xlane.f32.xlu1 %v2744_v39  ;;  %v2161_v26 = vmul.f32 %v4931_v24, %v5816_v54 }
 0x2d1   :  { %4952 = vtanh.f32 %v6017_v59  ;;  %v6185_v22 = vadd.f32 %v5779_v16, %v5930_v14  ;;  %v2325_v46 = vcombine.low %v2109_v27, %v2110_v25  ;;  %v2332_v60 = vrot.slane %v2324_v18, %v5471_v47 }
 0x2d2   :  { %v4935_v9 = vpop.eup %4934  ;;  %v2112_v1 = vmul.f32 %v4933_v0, %v5816_v54  ;;  %4954 = vtanh.f32 %v6023_v38  ;;  %v2681_v61 = vsel %vm155_vm2, %v2316_v17, 0.0  ;;  %v2587_v8 = vrot.slane %v2161_v26, %v5471_v47  ;;  %v7368_v17 = vld [vmem:[#allocation18_spill] sm:$0xff] }
 0x2d3   :  { %v4937_v13 = vpop.eup %4936  ;;  %v2113_v6 = vmul.f32 %v4935_v9, %v5851_v34  ;;  %4956 = vtanh.f32 %v6027_v35  ;;  %2682 = vadd.xlane.f32.xlu0 %v2681_v61  ;;  %v2339_v19 = vrot.slane %v2325_v46, %v5471_v47  ;;  %v7366_v38 = vcombine.high %v5779_v16, %v5779_v16 }
 0x2d4   :  { %v4939_v59 = vpop.eup %4938  ;;  %v2114_v23 = vmul.f32 %v4937_v13, %v5819_v57  ;;  %4958 = vtanh.f32 %v6034_v51  ;;  %v2750_v48 = vsel %vm2671_vm8, %v2587_v8, 0.0  ;;  %v7367_v51 = vld [vmem:[#allocation16_spill] sm:$0xff] }
 0x2d5   :  { %v6201_v11 = vadd.f32 %v7366_v38, %v7365_v28  ;;  %v4941_v42 = vpop.eup %4940  ;;  %v2115_v32 = vmul.f32 %v4939_v59, %v5855_v45  ;;  %v2348_v35 = vcombine.low %v2112_v1, %v2113_v6  ;;  %4960 = vtanh.f32 %v6038_v56  ;;  %2751 = vadd.xlane.f32.xlu1 %v2750_v48 }
 0x2d6   :  { %v4943_v50 = vpop.eup %4942  ;;  %v2340_v63 = vcombine.low %v2332_v60, %v2339_v19  ;;  %v2166_v62 = vmul.f32 %v4941_v42, %v5816_v54  ;;  %4962 = vtanh.f32 %v6043_v20  ;;  %v6210_v16 = vadd.f32 %v7367_v51, %v5871_v7 }
 0x2d7   :  { %v4945_v5 = vpop.eup %4944  ;;  %v2349_v12 = vcombine.low %v2114_v23, %v2115_v32  ;;  %v2356_v27 = vrot.slane %v2348_v35, %v5471_v47  ;;  %v2117_v21 = vmul.f32 %v4943_v50, %v5816_v54  ;;  %4964 = vtanh.f32 %v6049_v58  ;;  %v7370_v35 = vld [vmem:[#allocation28_spill] sm:$0xff]  ;;  %v7371_v50 = vld [vmem:[#allocation19_spill] sm:$0xff] }
 0x2d8   :  { %v4947_v56 = vpop.eup %4946  ;;  %v2687_v24 = vsel %vm155_vm2, %v2340_v63, 0.0  ;;  %v2611_v39 = vrot.slane %v2166_v62, %v5471_v47  ;;  %v2118_v25 = vmul.f32 %v4945_v5, %v5851_v34  ;;  %4966 = vtanh.f32 %v6055_v15 }
 0x2d9   :  { %v4949_v20 = vpop.eup %4948  ;;  %2688 = vadd.xlane.f32.xlu0 %v2687_v24  ;;  %v2363_v18 = vrot.slane %v2349_v12, %v5471_v47  ;;  %v2119_v0 = vmul.f32 %v4947_v56, %v5819_v57  ;;  %4968 = vtanh.f32 %v6063_v10  ;;  %v6224_v58 = vadd.f32 %v7368_v17, %v5911_v55 }
 0x2da   :  { %v4951_v26 = vpop.eup %4950  ;;  %v2756_v9 = vsel %vm2671_vm8, %v2611_v39, 0.0  ;;  %v2120_v46 = vmul.f32 %v4949_v20, %v5855_v45  ;;  %v2372_v60 = vcombine.low %v2117_v21, %v2118_v25  ;;  %4970 = vtanh.f32 %v6068_v44 }
 0x2db   :  { %v4953_v15 = vpop.eup %4952  ;;  %v2364_v1 = vcombine.low %v2356_v27, %v2363_v18  ;;  %2757 = vadd.xlane.f32.xlu1 %v2756_v9  ;;  %v2096_v13 = vmul.f32 %v4951_v26, %v5816_v54  ;;  %4972 = vtanh.f32 %v6072_v36  ;;  %v7369_v10 = vcombine.high %v7368_v17, %v7368_v17 }
 0x2dc   :  { %v4955_v8 = vpop.eup %4954  ;;  %v2373_v6 = vcombine.low %v2119_v0, %v2120_v46  ;;  %v2380_v59 = vrot.slane %v2372_v60, %v5471_v47  ;;  %v2122_v19 = vmul.f32 %v4953_v15, %v5816_v54  ;;  %4974 = vtanh.f32 %v6080_v41  ;;  %v7373_v46 = vld [vmem:[#allocation29_spill] sm:$0xff] }
 0x2dd   :  { %v6235_v61 = vadd.f32 %v7369_v10, %v5884_v3  ;;  %v4957_v44 = vpop.eup %4956  ;;  %v2693_v23 = vsel %vm155_vm2, %v2364_v1, 0.0  ;;  %v2275_v38 = vrot.slane %v2096_v13, %v5471_v47  ;;  %v2123_v36 = vmul.f32 %v4955_v8, %v5851_v34  ;;  %v7374_v60 = vld [vmem:[#allocation17_spill] sm:$0xff] }
 0x2de   :  { %4976 = vtanh.f32 %v6084_v52  ;;  %v4959_v42 = vpop.eup %4958  ;;  %2694 = vadd.xlane.f32.xlu0 %v2693_v23  ;;  %v2387_v48 = vrot.slane %v2373_v6, %v5471_v47  ;;  %v2124_v32 = vmul.f32 %v4957_v44, %v5819_v57  ;;  %v6249_v41 = vadd.f32 %v7371_v50, %v5930_v14 }
 0x2df   :  { %4978 = vtanh.f32 %v7370_v35  ;;  %v4961_v63 = vpop.eup %4960  ;;  %v2672_v62 = vsel %vm2671_vm8, %v2275_v38, 0.0  ;;  %v2125_v51 = vmul.f32 %v4959_v42, %v5855_v45  ;;  %v2396_v5 = vcombine.low %v2122_v19, %v2123_v36 }
 0x2e0   :  { %4980 = vtanh.f32 %v6088_v40  ;;  %v4963_v52 = vpop.eup %4962  ;;  %v2388_v12 = vcombine.low %v2380_v59, %v2387_v48  ;;  %2673 = vadd.xlane.f32.xlu1 %v2672_v62  ;;  %v2101_v27 = vmul.f32 %v4961_v63, %v5816_v54  ;;  %v7372_v21 = vcombine.high %v7371_v50, %v7371_v50  ;;  %v7375_v59 = vld [vmem:[#allocation20_spill] sm:$0xff]  ;;  %v7376_v50 = vld [vmem:[#allocation30_spill] sm:$0xff] }
 0x2e1   :  { %4982 = vtanh.f32 %v6094_v37  ;;  %v4965_v24 = vpop.eup %4964  ;;  %v2397_v39 = vcombine.low %v2124_v32, %v2125_v51  ;;  %v2404_v25 = vrot.slane %v2396_v5, %v5471_v47  ;;  %v2127_v20 = vmul.f32 %v4963_v52, %v5816_v54 }
 0x2e2   :  { %v6260_v56 = vadd.f32 %v7372_v21, %v7365_v28  ;;  %4984 = vtanh.f32 %v6102_v29  ;;  %v4967_v40 = vpop.eup %4966  ;;  %v2699_v18 = vsel %vm155_vm2, %v2388_v12, 0.0  ;;  %v2299_v0 = vrot.slane %v2101_v27, %v5471_v47  ;;  %v7378_v21 = vld [vmem:[#allocation21_spill] sm:$0xff] }
 0x2e3   :  { %v2128_v37 = vmul.f32 %v4965_v24, %v5851_v34  ;;  %4986 = vtanh.f32 %v6106_v2  ;;  %v4969_v17 = vpop.eup %4968  ;;  %2700 = vadd.xlane.f32.xlu0 %v2699_v18  ;;  %v2411_v26 = vrot.slane %v2397_v39, %v5471_v47  ;;  %v2129_v9 = vmul.f32 %v4967_v40, %v5819_v57 }
 0x2e4   :  { %4988 = vtanh.f32 %v7373_v46  ;;  %v6274_v29 = vadd.f32 %v7374_v60, %v5871_v7  ;;  %v4971_v15 = vpop.eup %4970  ;;  %v2678_v1 = vsel %vm2671_vm8, %v2299_v0, 0.0  ;;  %v2130_v13 = vmul.f32 %v4969_v17, %v5855_v45 }
 0x2e5   :  { %v2420_v10 = vcombine.low %v2127_v20, %v2128_v37  ;;  %4990 = vtanh.f32 %v6112_v49  ;;  %v4973_v2 = vpop.eup %4972  ;;  %v2412_v8 = vcombine.low %v2404_v25, %v2411_v26  ;;  %2679 = vadd.xlane.f32.xlu1 %v2678_v1  ;;  %v2106_v6 = vmul.f32 %v4971_v15, %v5816_v54 }
 0x2e6   :  { %4992 = vtanh.f32 %v6119_v30  ;;  %v6283_v19 = vadd.f32 %v7375_v59, %v5911_v55  ;;  %v4975_v7 = vpop.eup %4974  ;;  %v2421_v44 = vcombine.low %v2129_v9, %v2130_v13  ;;  %v2132_v38 = vmul.f32 %v4973_v2, %v5816_v54  ;;  %v7381_v2 = vld [vmem:[#allocation23_spill] sm:$0xff] }
 0x2e7   :  { %v2428_v23 = vrot.slane %v2420_v10, %v5471_v47  ;;  %4994 = vtanh.f32 %v6128_v43  ;;  %v2705_v36 = vsel %vm155_vm2, %v2412_v8, 0.0  ;;  %v2323_v42 = vrot.slane %v2106_v6, %v5471_v47 }
 0x2e8   :  { %v4977_v49 = vpop.eup %4976  ;;  %v2133_v48 = vmul.f32 %v4975_v7, %v5851_v34  ;;  %4996 = vtanh.f32 %v6137_v33  ;;  %2706 = vadd.xlane.f32.xlu0 %v2705_v36  ;;  %v2435_v32 = vrot.slane %v2421_v44, %v5471_v47  ;;  %v7377_v43 = vcombine.high %v7375_v59, %v7375_v59 }
 0x2e9   :  { %v4979_v30 = vpop.eup %4978  ;;  %v2134_v35 = vmul.f32 %v4977_v49, %v5819_v57  ;;  %4998 = vtanh.f32 %v7376_v50  ;;  %v2684_v51 = vsel %vm2671_vm8, %v2323_v42, 0.0  ;;  %v6308_v24 = vadd.f32 %v7378_v21, %v5930_v14 }
 0x2ea   :  { %v6299_v63 = vadd.f32 %v7377_v43, %v5884_v3  ;;  %v4981_v62 = vpop.eup %4980  ;;  %v2135_v5 = vmul.f32 %v4979_v30, %v5855_v45  ;;  %v2444_v33 = vcombine.low %v2132_v38, %v2133_v48  ;;  %5000 = vtanh.f32 %v6151_v4  ;;  %2685 = vadd.xlane.f32.xlu1 %v2684_v51  ;;  %v7382_v48 = vld [vmem:[#allocation22_spill] sm:$0xff] }
 0x2eb   :  { %v4983_v52 = vpop.eup %4982  ;;  %v2436_v12 = vcombine.low %v2428_v23, %v2435_v32  ;;  %v2111_v27 = vmul.f32 %v4981_v62, %v5816_v54  ;;  %5002 = vtanh.f32 %v6160_v53 }
 0x2ec   :  { %v4985_v39 = vpop.eup %4984  ;;  %v2445_v25 = vcombine.low %v2134_v35, %v2135_v5  ;;  %v2452_v20 = vrot.slane %v2444_v33, %v5471_v47  ;;  %v2137_v40 = vmul.f32 %v4983_v52, %v5816_v54  ;;  %5004 = vtanh.f32 %v6176_v31 }
 0x2ed   :  { %v4987_v4 = vpop.eup %4986  ;;  %v2711_v18 = vsel %vm155_vm2, %v2436_v12, 0.0  ;;  %v2347_v0 = vrot.slane %v2111_v27, %v5471_v47  ;;  %v2138_v37 = vmul.f32 %v4985_v39, %v5851_v34  ;;  %5006 = vtanh.f32 %v6185_v22 }
 0x2ee   :  { %v4989_v53 = vpop.eup %4988  ;;  %2712 = vadd.xlane.f32.xlu0 %v2711_v18  ;;  %v2459_v17 = vrot.slane %v2445_v25, %v5471_v47  ;;  %v2139_v26 = vmul.f32 %v4987_v4, %v5819_v57  ;;  %5008 = vtanh.f32 %v6201_v11  ;;  %v7379_v31 = vcombine.high %v7378_v21, %v7378_v21  ;;  %v7380_v11 = vld [vmem:[#allocation27_spill] sm:$0xff] }
 0x2ef   :  { %v4991_v46 = vpop.eup %4990  ;;  %v2690_v60 = vsel %vm2671_vm8, %v2347_v0, 0.0  ;;  %v2140_v15 = vmul.f32 %v4989_v53, %v5855_v45  ;;  %v2468_v1 = vcombine.low %v2137_v40, %v2138_v37  ;;  %5010 = vtanh.f32 %v6210_v16  ;;  %v7384_v40 = vld [vmem:[#allocation24_spill] sm:$0xff] }
 0x2f0   :  { %v1974_v9 = vadd.f32 %v7379_v31, %v7365_v28  ;;  %v4993_v22 = vpop.eup %4992  ;;  %v2460_v13 = vcombine.low %v2452_v20, %v2459_v17  ;;  %2691 = vadd.xlane.f32.xlu1 %v2690_v60  ;;  %v2116_v10 = vmul.f32 %v4991_v46, %v5816_v54  ;;  %5012 = vtanh.f32 %v6224_v58 }
 0x2f1   :  { %v1985_v8 = vadd.f32 %v7381_v2, %v7380_v11  ;;  %v4995_v6 = vpop.eup %4994  ;;  %v2469_v59 = vcombine.low %v2139_v26, %v2140_v15  ;;  %v2476_v7 = vrot.slane %v2468_v1, %v5471_v47  ;;  %v2142_v44 = vmul.f32 %v4993_v22, %v5816_v54 }
 0x2f2   :  { %5014 = vtanh.f32 %v6235_v61  ;;  %v4997_v23 = vpop.eup %4996  ;;  %v2717_v16 = vsel %vm155_vm2, %v2460_v13, 0.0  ;;  %v2371_v38 = vrot.slane %v2116_v10, %v5471_v47  ;;  %v2143_v49 = vmul.f32 %v4995_v6, %v5851_v34 }
 0x2f3   :  { %5016 = vtanh.f32 %v6249_v41  ;;  %v4999_v58 = vpop.eup %4998  ;;  %2718 = vadd.xlane.f32.xlu0 %v2717_v16  ;;  %v2483_v36 = vrot.slane %v2469_v59, %v5471_v47  ;;  %v2144_v42 = vmul.f32 %v4997_v23, %v5819_v57  ;;  %v1976_v61 = vadd.f32 %v7382_v48, %v5911_v55 }
 0x2f4   :  { %5018 = vtanh.f32 %v6260_v56  ;;  %v5001_v30 = vpop.eup %5000  ;;  %v2696_v32 = vsel %vm2671_vm8, %v2371_v38, 0.0  ;;  %v2145_v35 = vmul.f32 %v4999_v58, %v5855_v45  ;;  %v2492_v50 = vcombine.low %v2142_v44, %v2143_v49 }
 0x2f5   :  { %5020 = vtanh.f32 %v6274_v29  ;;  %v5003_v41 = vpop.eup %5002  ;;  %v2484_v43 = vcombine.low %v2476_v7, %v2483_v36  ;;  %2697 = vadd.xlane.f32.xlu1 %v2696_v32  ;;  %v2121_v62 = vmul.f32 %v5001_v30, %v5816_v54  ;;  %v7383_v56 = vcombine.high %v7382_v48, %v7382_v48  ;;  %v7387_v48 = vld [vmem:[#allocation25_spill] sm:$0xff] }
 0x2f6   :  { %5022 = vtanh.f32 %v6283_v19  ;;  %v5005_v5 = vpop.eup %5004  ;;  %v2493_v33 = vcombine.low %v2144_v42, %v2145_v35  ;;  %v2500_v52 = vrot.slane %v2492_v50, %v5471_v47  ;;  %v2147_v12 = vmul.f32 %v5003_v41, %v5816_v54 }
 0x2f7   :  { %v1977_v51 = vadd.f32 %v7383_v56, %v5884_v3  ;;  %5024 = vtanh.f32 %v6299_v63  ;;  %v5007_v29 = vpop.eup %5006  ;;  %v2723_v27 = vsel %vm155_vm2, %v2484_v43, 0.0  ;;  %v2395_v21 = vrot.slane %v2121_v62, %v5471_v47 }
 0x2f8   :  { %v2148_v19 = vmul.f32 %v5005_v5, %v5851_v34  ;;  %5026 = vtanh.f32 %v6308_v24  ;;  %v5009_v39 = vpop.eup %5008  ;;  %2724 = vadd.xlane.f32.xlu0 %v2723_v27  ;;  %v2507_v25 = vrot.slane %v2493_v33, %v5471_v47  ;;  %v2149_v20 = vmul.f32 %v5007_v29, %v5819_v57 }
 0x2f9   :  { %5028 = vtanh.f32 %v1974_v9  ;;  %v1978_v4 = vadd.f32 %v7384_v40, %v5930_v14  ;;  %v5011_v63 = vpop.eup %5010  ;;  %v2702_v18 = vsel %vm2671_vm8, %v2395_v21, 0.0  ;;  %v2150_v0 = vmul.f32 %v5009_v39, %v5855_v45 }
 0x2fa   :  { %v2516_v37 = vcombine.low %v2147_v12, %v2148_v19  ;;  %5030 = vtanh.f32 %v1985_v8  ;;  %v5013_v53 = vpop.eup %5012  ;;  %v2508_v17 = vcombine.low %v2500_v52, %v2507_v25  ;;  %2703 = vadd.xlane.f32.xlu1 %v2702_v18  ;;  %v2126_v24 = vmul.f32 %v5011_v63, %v5816_v54 }
 0x2fb   :  { %v7385_v26 = vcombine.high %v7384_v40, %v7384_v40  ;;  %5032 = vtanh.f32 %v1976_v61  ;;  %v2517_v46 = vcombine.low %v2149_v20, %v2150_v0  ;;  %v2152_v15 = vmul.f32 %v5013_v53, %v5816_v54 }
 0x2fc   :  { %v5015_v9 = vpop.eup %5014  ;;  %v2524_v60 = vrot.slane %v2516_v37, %v5471_v47  ;;  %5034 = vtanh.f32 %v1977_v51  ;;  %v2729_v22 = vsel %vm155_vm2, %v2508_v17, 0.0  ;;  %v2419_v13 = vrot.slane %v2126_v24, %v5471_v47 }
 0x2fd   :  { %v1979_v31 = vadd.f32 %v7385_v26, %v7365_v28  ;;  %v5017_v1 = vpop.eup %5016  ;;  %v2153_v10 = vmul.f32 %v5015_v9, %v5851_v34  ;;  %5036 = vtanh.f32 %v1978_v4  ;;  %2730 = vadd.xlane.f32.xlu0 %v2729_v22  ;;  %v2531_v8 = vrot.slane %v2517_v46, %v5471_v47 }
 0x2fe   :  { %v5019_v11 = vpop.eup %5018  ;;  %v2154_v6 = vmul.f32 %v5017_v1, %v5819_v57  ;;  %v1981_v59 = vadd.f32 %v7381_v2, %v5911_v55  ;;  %v2708_v44 = vsel %vm2671_vm8, %v2419_v13, 0.0  ;;  %v7386_v38 = vcombine.high %v7381_v2, %v7381_v2 }
 0x2ff   :  { %5038 = vtanh.f32 %v1979_v31  ;;  %v5021_v7 = vpop.eup %5020  ;;  %v2155_v23 = vmul.f32 %v5019_v11, %v5855_v45  ;;  %v2540_v16 = vcombine.low %v2152_v15, %v2153_v10  ;;  %v2532_v36 = vcombine.low %v2524_v60, %v2531_v8  ;;  %2709 = vadd.xlane.f32.xlu1 %v2708_v44 }
 0x300   :  { %v1982_v49 = vadd.f32 %v7386_v38, %v5884_v3  ;;  %v5023_v58 = vpop.eup %5022  ;;  %v2131_v42 = vmul.f32 %v5021_v7, %v5816_v54  ;;  %v1983_v61 = vadd.f32 %v7387_v48, %v5930_v14  ;;  %v7388_v55 = vcombine.high %v7387_v48, %v7387_v48 }
 0x301   :  { %v5025_v32 = vpop.eup %5024  ;;  %v2541_v35 = vcombine.low %v2154_v6, %v2155_v23  ;;  %v2157_v50 = vmul.f32 %v5023_v58, %v5816_v54  ;;  %5040 = vtanh.f32 %v1981_v59  ;;  %v2735_v3 = vsel %vm155_vm2, %v2532_v36, 0.0 }
 0x302   :  { %v1984_v30 = vadd.f32 %v7388_v55, %v7365_v28  ;;  %v5027_v2 = vpop.eup %5026  ;;  %v2443_v41 = vrot.slane %v2131_v42, %v5471_v47  ;;  %v2158_v43 = vmul.f32 %v5025_v32, %v5851_v34  ;;  %5042 = vtanh.f32 %v1982_v49  ;;  %2736 = vadd.xlane.f32.xlu0 %v2735_v3 }
 0x303   :  { %v5029_v62 = vpop.eup %5028  ;;  %v2548_v14 = vrot.slane %v2540_v16, %v5471_v47  ;;  %v2555_v56 = vrot.slane %v2541_v35, %v5471_v47  ;;  %v2159_v28 = vmul.f32 %v5027_v2, %v5819_v57  ;;  %5044 = vtanh.f32 %v1983_v61 }
 0x304   :  { %v5031_v51 = vpop.eup %5030  ;;  %v2714_v5 = vsel %vm2671_vm8, %v2443_v41, 0.0  ;;  %v2160_v33 = vmul.f32 %v5029_v62, %v5855_v45  ;;  %v2564_v52 = vcombine.low %v2157_v50, %v2158_v43  ;;  %5046 = vtanh.f32 %v1984_v30 }
 0x305   :  { %v5033_v12 = vpop.eup %5032  ;;  %v2556_v29 = vcombine.low %v2548_v14, %v2555_v56  ;;  %2715 = vadd.xlane.f32.xlu1 %v2714_v5  ;;  %v2171_v27 = vmul.f32 %v5031_v51, %v5816_v54  ;;  %v7408_v14 = vlaneseq }
 0x306   :  { %v5035_v21 = vpop.eup %5034  ;;  %v2565_v19 = vcombine.low %v2159_v28, %v2160_v33  ;;  %v2162_v39 = vmul.f32 %v5033_v12, %v5816_v54  ;;  %v2572_v18 = vrot.slane %v2564_v52, %v5471_v47  ;;  %v7412_v52 = vld [vmem:[#allocation9_spill] sm:$0xff] }
 0x307   :  { %v5037_v25 = vpop.eup %5036  ;;  %v2741_v20 = vsel %vm155_vm2, %v2556_v29, 0.0  ;;  %v2635_v40 = vrot.slane %v2171_v27, %v5471_v47  ;;  %v2163_v4 = vmul.f32 %v5035_v21, %v5851_v34  ;;  %v2859_v56 = vand.u32 127, %v7408_v14 }
 0x308   :  { %2742 = vadd.xlane.f32.xlu0 %v2741_v20  ;;  %v2579_v0 = vrot.slane %v2565_v19, %v5471_v47  ;;  %v2164_v37 = vmul.f32 %v5037_v25, %v5819_v57 }
 0x309   :  { %v5039_v63 = vpop.eup %5038  ;;  %v2762_v53 = vsel %vm2671_vm8, %v2635_v40, 0.0  ;;  %v2588_v24 = vcombine.low %v2162_v39, %v2163_v4  ;;  %v2864_v51 = vadd.s32 4294967288, %v2859_v56  ;;  %v6473_v27 = vsub.s32 %v2859_v56, %v7412_v52 }
 0x30a   :  { %v2165_v17 = vmul.f32 %v5039_v63, %v5855_v45  ;;  %v2580_v26 = vcombine.low %v2572_v18, %v2579_v0  ;;  %2763 = vadd.xlane.f32.xlu1 %v2762_v53 }
 0x30b   :  { %v5041_v31 = vpop.eup %5040  ;;  %v2596_v22 = vrot.slane %v2588_v24, %v5471_v47  ;;  %v6468_v12 = vsub.s32 %v2864_v51, %v7412_v52 }
 0x30c   :  { %v2589_v9 = vcombine.low %v2164_v37, %v2165_v17  ;;  %v5043_v46 = vpop.eup %5042  ;;  %v2747_v60 = vsel %vm155_vm2, %v2580_v26, 0.0  ;;  %v2167_v15 = vmul.f32 %v5041_v31, %v5816_v54 }
 0x30d   :  { %v5045_v1 = vpop.eup %5044  ;;  %2748 = vadd.xlane.f32.xlu0 %v2747_v60  ;;  %v2168_v10 = vmul.f32 %v5043_v46, %v5851_v34 }
 0x30e   :  { %v2603_v13 = vrot.slane %v2589_v9, %v5471_v47  ;;  %v5047_v11 = vpop.eup %5046  ;;  %v2169_v8 = vmul.f32 %v5045_v1, %v5819_v57 }
 0x30f   :  { %v2170_v59 = vmul.f32 %v5047_v11, %v5855_v45  ;;  %v2612_v7 = vcombine.low %v2167_v15, %v2168_v10 }
 0x310   :  { %v2604_v6 = vcombine.low %v2596_v22, %v2603_v13 }
 0x311   :  { %v2613_v23 = vcombine.low %v2169_v8, %v2170_v59  ;;  %v2620_v54 = vrot.slane %v2612_v7, %v5471_v47 }
 0x312   :  { %v2753_v44 = vsel %vm155_vm2, %v2604_v6, 0.0 }
 0x313   :  { %2754 = vadd.xlane.f32.xlu0 %v2753_v44  ;;  %v2627_v16 = vrot.slane %v2613_v23, %v5471_v47 }
 0x315   :  { %v2628_v38 = vcombine.low %v2620_v54, %v2627_v16 }
 0x317   :  { %v2759_v49 = vsel %vm155_vm2, %v2628_v38, 0.0 }
 0x318   :  { %2760 = vadd.xlane.f32.xlu0 %v2759_v49 }
 0x34a   :  { %v6422_v34 = vpop.xlane.xlu1 %2721 }
 0x34b   :  { %7389 = vst [vmem:[#allocation26_spill] sm:$0xff] %v6422_v34 }
 0x34e   :  { %v6424_v58 = vpop.xlane.xlu1 %2727 }
 0x34f   :  { %7390 = vst [vmem:[#allocation16_spill] sm:$0xff] %v6424_v58 }
 0x353   :  { %v6426_v57 = vpop.xlane.xlu1 %2733 }
 0x354   :  { %7391 = vst [vmem:[#allocation18_spill] sm:$0xff] %v6426_v57 }
 0x356   :  { %v6428_v45 = vpop.xlane.xlu0 %2669 }
 0x357   :  { %7392 = vst [vmem:[#allocation28_spill] sm:$0xff] %v6428_v45  ;;  %v2863_v18 = vrot.slane %v6428_v45, %v6473_v27 }
 0x358   :  { %v6430_v36 = vpop.xlane.xlu1 %2739 }
 0x359   :  { %7393 = vst [vmem:[#allocation19_spill] sm:$0xff] %v6430_v36 }
 0x35b   :  { %v6432_v42 = vpop.xlane.xlu0 %2676 }
 0x35c   :  { %7394 = vst [vmem:[#allocation29_spill] sm:$0xff] %v6432_v42  ;;  %v2874_v39 = vrot.slane %v6432_v42, %v6473_v27 }
 0x35d   :  { %v6434_v48 = vpop.xlane.xlu1 %2745 }
 0x35e   :  { %7395 = vst [vmem:[#allocation17_spill] sm:$0xff] %v6434_v48 }
 0x360   :  { %v6436_v61 = vpop.xlane.xlu0 %2682 }
 0x361   :  { %7396 = vst [vmem:[#allocation20_spill] sm:$0xff] %v6436_v61  ;;  %v2883_v4 = vrot.slane %v6436_v61, %v6473_v27 }
 0x362   :  { %v6438_v47 = vpop.xlane.xlu1 %2751 }
 0x363   :  { %7397 = vst [vmem:[#allocation30_spill] sm:$0xff] %v6438_v47 }
 0x366   :  { %v6440_v55 = vpop.xlane.xlu0 %2688 }
 0x367   :  { %7398 = vst [vmem:[#allocation21_spill] sm:$0xff] %v6440_v55  ;;  %v2892_v0 = vrot.slane %v6440_v55, %v6473_v27 }
 0x368   :  { %v6442_v30 = vpop.xlane.xlu1 %2757 }
 0x369   :  { %7399 = vst [vmem:[#allocation27_spill] sm:$0xff] %v6442_v30 }
 0x36b   :  { %v6444_v32 = vpop.xlane.xlu0 %2694 }
 0x36c   :  { %7400 = vst [vmem:[#allocation23_spill] sm:$0xff] %v6444_v32  ;;  %v2901_v24 = vrot.slane %v6444_v32, %v6473_v27 }
 0x36d   :  { %v6446_v35 = vpop.xlane.xlu1 %2673 }
 0x36e   :  { %7401 = vst [vmem:[#allocation22_spill] sm:$0xff] %v6446_v35  ;;  %v2868_v25 = vrot.slane %v6446_v35, %v6468_v12 }
 0x370   :  { %v6448_v50 = vpop.xlane.xlu0 %2700  ;;  %v2870_v46 = vsel %vm2869_vm9, %v2868_v25, %v2863_v18 }
 0x371   :  { %7402 = vst [vmem:[#allocation24_spill] sm:$0xff] %v6448_v50  ;;  %v2910_v9 = vrot.slane %v6448_v50, %v6473_v27 }
 0x372   :  { %v6450_v2 = vpop.xlane.xlu1 %2679 }
 0x373   :  { %7403 = vst [vmem:[#allocation25_spill] sm:$0xff] %v6450_v2  ;;  %v2878_v21 = vrot.slane %v6450_v2, %v6468_v12 }
 0x375   :  { %v6452_v3 = vpop.xlane.xlu0 %2706  ;;  %v2879_v37 = vsel %vm2869_vm9, %v2878_v21, %v2874_v39  ;;  %v2950_v39 = vrot.slane %v6424_v58, %v6468_v12 }
 0x376   :  { %7404 = vst [vmem:[#allocation33_spill] sm:$0xff] %v6452_v3  ;;  %v2919_v15 = vrot.slane %v6452_v3, %v6473_v27  ;;  %v3006_v1 = vsel %vm765_vm3, %v2879_v37, %v2870_v46  ;;  %v2968_v37 = vrot.slane %v6430_v36, %v6468_v12  ;;  %v2986_v46 = vrot.slane %v6438_v47, %v6468_v12 }
 0x377   :  { %v6454_v41 = vpop.xlane.xlu1 %2685 }
 0x378   :  { %7405 = vst [vmem:[#allocation34_spill] sm:$0xff] %v6454_v41  ;;  %v2887_v19 = vrot.slane %v6454_v41, %v6468_v12 }
 0x37a   :  { %v2888_v26 = vsel %vm2869_vm9, %v2887_v19, %v2883_v4  ;;  %v2959_v4 = vrot.slane %v6426_v57, %v6468_v12 }
 0x37b   :  { %v6456_v43 = vpop.xlane.xlu0 %2712  ;;  %v3008_v10 = vsel %vm3007_vm10, %v2888_v26, %v3006_v1  ;;  %v2977_v26 = vrot.slane %v6434_v48, %v6468_v12  ;;  %v2995_v1 = vrot.slane %v6442_v30, %v6468_v12 }
 0x37c   :  { %7406 = vst [vmem:[#allocation35_spill] sm:$0xff] %v6456_v43  ;;  %v2928_v7 = vrot.slane %v6456_v43, %v6473_v27 }
 0x37d   :  { %v6458_v62 = vpop.xlane.xlu1 %2691 }
 0x37e   :  { %7407 = vst [vmem:[#allocation36_spill] sm:$0xff] %v6458_v62  ;;  %v2896_v20 = vrot.slane %v6458_v62, %v6468_v12 }
 0x380   :  { %v6461_v28 = vpop.xlane.xlu0 %2718  ;;  %v2897_v60 = vsel %vm2869_vm9, %v2896_v20, %v2892_v0  ;;  %v2941_v0 = vrot.slane %v6422_v34, %v6468_v12 }
 0x381   :  { %7409 = vst [vmem:[#allocation37_spill] sm:$0xff] %v6461_v28  ;;  %v3010_v59 = vsel %vm3009_vm11, %v2897_v60, %v3008_v10  ;;  %v2937_v25 = vrot.slane %v6461_v28, %v6473_v27 }
 0x382   :  { %v6463_v5 = vpop.xlane.xlu1 %2697 }
 0x383   :  { %7410 = vst [vmem:[#allocation38_spill] sm:$0xff] %v6463_v5  ;;  %v2905_v63 = vrot.slane %v6463_v5, %v6468_v12  ;;  %v2942_v60 = vsel %vm2869_vm9, %v2941_v0, %v2937_v25  ;;  %v5248_v25 = vmov 0  }
 0x384   :  { %4843 = vset.pattern.permute.xlu1 %v5248_v25  ;;  %4842 = vset.pattern.permute.xlu0 %v5248_v25 }
 0x385   :  { %v6465_v33 = vpop.xlane.xlu0 %2724  ;;  %v2906_v22 = vsel %vm2869_vm9, %v2905_v63, %v2901_v24 }
 0x386   :  { %7411 = vst [vmem:[#allocation39_spill] sm:$0xff] %v6465_v33  ;;  %v3012_v23 = vsel %vm3011_vm12, %v2906_v22, %v3010_v59  ;;  %v2946_v21 = vrot.slane %v6465_v33, %v6473_v27 }
 0x387   :  { %v6470_v29 = vpop.xlane.xlu1 %2703 }
 0x388   :  { %7413 = vst [vmem:[#allocation9_spill] sm:$0xff] %v6470_v29  ;;  %v2914_v53 = vrot.slane %v6470_v29, %v6468_v12 }
 0x38a   :  { %v6485_v40 = vpop.xlane.xlu0 %2730  ;;  %v2915_v11 = vsel %vm2869_vm9, %v2914_v53, %v2910_v9  ;;  %v2951_v53 = vsel %vm2869_vm9, %v2950_v39, %v2946_v21 }
 0x38b   :  { %7414 = vst [vmem:[#allocation40_spill] sm:$0xff] %v6485_v40  ;;  %v3014_v54 = vsel %vm3013_vm13, %v2915_v11, %v3012_v23  ;;  %v2955_v19 = vrot.slane %v6485_v40, %v6473_v27  ;;  %v3019_v22 = vsel %vm765_vm3, %v2951_v53, %v2942_v60 }
 0x38c   :  { %v6498_v17 = vpop.xlane.xlu1 %2709 }
 0x38d   :  { %7415 = vst [vmem:[#allocation41_spill] sm:$0xff] %v6498_v17  ;;  %v2923_v31 = vrot.slane %v6498_v17, %v6468_v12 }
 0x38f   :  { %v6513_v13 = vpop.xlane.xlu0 %2736  ;;  %v2924_v6 = vsel %vm2869_vm9, %v2923_v31, %v2919_v15  ;;  %v2960_v31 = vsel %vm2869_vm9, %v2959_v4, %v2955_v19  ;;  %v6593_v4 = vsub.s32 4, %v7412_v52 }
 0x390   :  { %7416 = vst [vmem:[#allocation42_spill] sm:$0xff] %v6513_v13  ;;  %v3016_v49 = vsel %vm3015_vm14, %v2924_v6, %v3014_v54  ;;  %v2964_v20 = vrot.slane %v6513_v13, %v6473_v27  ;;  %v3020_v6 = vsel %vm3007_vm10, %v2960_v31, %v3019_v22  ;;  %v6609_v31 = vsub.s32 2, %v7412_v52 }
 0x392   :  { %v6517_v8 = vpop.xlane.xlu1 %2715  ;;  %v2969_v15 = vsel %vm2869_vm9, %v2968_v37, %v2964_v20  ;;  %v6590_v20 = vsub.s32 1, %v7412_v52  ;;  %v7424_v37 = vld [vmem:[#allocation10_spill] sm:$0xff] }
 0x393   :  { %7417 = vst [vmem:[#allocation43_spill] sm:$0xff] %v6517_v8  ;;  %v2932_v44 = vrot.slane %v6517_v8, %v6468_v12  ;;  %v3021_v23 = vsel %vm3009_vm11, %v2969_v15, %v3020_v6  ;;  %v6615_v15 = vsub.s32 6, %v7412_v52 }
 0x395   :  { %v6527_v16 = vpop.xlane.xlu0 %2742  ;;  %v2933_v38 = vsel %vm2869_vm9, %v2932_v44, %v2928_v7 }
 0x396   :  { %7418 = vst [vmem:[#allocation44_spill] sm:$0xff] %v6527_v16  ;;  %v3018_v14 = vsel %vm3017_vm15, %v2933_v38, %v3016_v49  ;;  %v2973_v63 = vrot.slane %v6527_v16, %v6473_v27 }
 0x397   :  { %v3029_v56 = vsel %vm3028_vm4, %v3018_v14, -inf  ;;  %v6571_v11 = vpop.xlane.xlu1 %2763 }
 0x398   :  { %3030 = vmax.xlane.f32.xlu0 %v3029_v56  ;;  %v2978_v10 = vsel %vm2869_vm9, %v2977_v26, %v2973_v63  ;;  %7421 = vst [vmem:[#allocation47_spill] sm:$0xff] %v6571_v11  ;;  %v3004_v54 = vrot.slane %v6571_v11, %v6468_v12  ;;  %v6596_v63 = vsub.s32 5, %v7412_v52 }
 0x399   :  { %v3022_v49 = vsel %vm3011_vm12, %v2978_v10, %v3021_v23 }
 0x39a   :  { %v6533_v51 = vpop.xlane.xlu0 %2748 }
 0x39b   :  { %7419 = vst [vmem:[#allocation45_spill] sm:$0xff] %v6533_v51  ;;  %v2982_v24 = vrot.slane %v6533_v51, %v6473_v27 }
 0x39d   :  { %v2987_v59 = vsel %vm2869_vm9, %v2986_v46, %v2982_v24 }
 0x39e   :  { %v3023_v14 = vsel %vm3013_vm13, %v2987_v59, %v3022_v49  ;;  %v6624_v59 = vsub.s32 7, %v7412_v52 }
 0x3a0   :  { %v6549_v18 = vpop.xlane.xlu0 %2754 }
 0x3a1   :  { %7420 = vst [vmem:[#allocation46_spill] sm:$0xff] %v6549_v18  ;;  %v2991_v9 = vrot.slane %v6549_v18, %v6473_v27 }
 0x3a3   :  { %v2996_v44 = vsel %vm2869_vm9, %v2995_v1, %v2991_v9 }
 0x3a4   :  { %v3024_v21 = vsel %vm3015_vm14, %v2996_v44, %v3023_v14 }
 0x3a5   :  { %v6575_v7 = vpop.xlane.xlu0 %2760 }
 0x3a6   :  { %7422 = vst [vmem:[#allocation48_spill] sm:$0xff] %v6575_v7  ;;  %v3000_v38 = vrot.slane %v6575_v7, %v6473_v27 }
 0x3a8   :  { %v3005_v56 = vsel %vm2869_vm9, %v3004_v54, %v3000_v38 }
 0x3a9   :  { %v3025_v19 = vsel %vm3017_vm15, %v3005_v56, %v3024_v21  ;;  %v6636_v56 = vsub.s32 3, %v7412_v52 }
 0x3aa   :  { %v3032_v39 = vsel %vm3028_vm4, %v3025_v19, -inf }
 0x3ab   :  { %3033 = vmax.xlane.f32.xlu1 %v3032_v39 }
 0x425   :  { %v6598_v0 = vpop.xlane.xlu0 %3030 }
 0x426   :  { %7423 = vst [vmem:[#allocation49_spill] sm:$0xff] %v6598_v0  ;;  %v3040_v53 = vrot.slane %v6598_v0, %v7424_v37  ;;  %v3044_v24 = vrot.slane %v6598_v0, %v6590_v20  ;;  %v6606_v26 = vrot.slane %v6598_v0, %v6593_v4  ;;  %v6619_v1 = vrot.slane %v6598_v0, %v6596_v63 }
 0x427   :  { %v3048_v44 = vrot.slane %v6598_v0, %v6609_v31  ;;  %v6631_v38 = vrot.slane %v6598_v0, %v6615_v15  ;;  %v6641_v39 = vrot.slane %v6598_v0, %v6624_v59 }
 0x428   :  { %v3118_v9 = vsub.f32 %v6446_v35, %v3040_v53  ;;  %v3117_v46 = vsub.f32 %v6428_v45, %v3040_v53  ;;  %v3119_v60 = vsub.f32 %v6432_v42, %v3044_v24  ;;  %v3126_v22 = vsub.f32 %v6463_v5, %v6606_v26 }
 0x429   :  { %v3120_v54 = vsub.f32 %v6450_v2, %v3044_v24  ;;  %v3128_v14 = vsub.f32 %v6470_v29, %v6619_v1  ;;  %v3121_v19 = vsub.f32 %v6436_v61, %v3048_v44  ;;  %v3130_v53 = vsub.f32 %v6498_v17, %v6631_v38 }
 0x42a   :  { %v3151_v10 = vmul.f32 1.442695, %v3118_v9  ;;  %v3149_v6 = vmul.f32 1.442695, %v3117_v46  ;;  %v3153_v23 = vmul.f32 1.442695, %v3119_v60  ;;  %v3052_v24 = vrot.slane %v6598_v0, %v6636_v56 }
 0x42b   :  { %v3167_v49 = vmul.f32 1.442695, %v3126_v22  ;;  %v3155_v21 = vmul.f32 1.442695, %v3120_v54  ;;  %v3171_v25 = vmul.f32 1.442695, %v3128_v14  ;;  %v3122_v52 = vsub.f32 %v6454_v41, %v3048_v44 }
 0x42c   :  { %5048 = vpow2.f32 %v3151_v10  ;;  %v3157_v9 = vmul.f32 1.442695, %v3121_v19  ;;  %v3175_v46 = vmul.f32 1.442695, %v3130_v53  ;;  %v3132_v60 = vsub.f32 %v6517_v8, %v6641_v39 }
 0x42d   :  { %5050 = vpow2.f32 %v3149_v6  ;;  %v3123_v54 = vsub.f32 %v6440_v55, %v3052_v24 }
 0x42e   :  { %5052 = vpow2.f32 %v3153_v23  ;;  %v3159_v23 = vmul.f32 1.442695, %v3122_v52  ;;  %v3179_v44 = vmul.f32 1.442695, %v3132_v60 }
 0x42f   :  { %5054 = vpow2.f32 %v3167_v49  ;;  %v3161_v53 = vmul.f32 1.442695, %v3123_v54 }
 0x430   :  { %5056 = vpow2.f32 %v3155_v21 }
 0x431   :  { %5058 = vpow2.f32 %v3171_v25 }
 0x432   :  { %5060 = vpow2.f32 %v3157_v9  ;;  %v3124_v9 = vsub.f32 %v6458_v62, %v3052_v24  ;;  %v3125_v24 = vsub.f32 %v6444_v32, %v6606_v26  ;;  %v3127_v26 = vsub.f32 %v6448_v50, %v6619_v1 }
 0x433   :  { %5062 = vpow2.f32 %v3175_v46  ;;  %v3129_v1 = vsub.f32 %v6452_v3, %v6631_v38  ;;  %v3131_v38 = vsub.f32 %v6456_v43, %v6641_v39 }
 0x434   :  { %5064 = vpow2.f32 %v3159_v23  ;;  %v3163_v23 = vmul.f32 1.442695, %v3124_v9 }
 0x435   :  { %5066 = vpow2.f32 %v3179_v44 }
 0x436   :  { %v6650_v22 = vpop.eup %5048  ;;  %5068 = vpow2.f32 %v3161_v53  ;;  %v3165_v53 = vmul.f32 1.442695, %v3125_v24 }
 0x437   :  { %v6652_v10 = vpop.eup %5050  ;;  %3249 = vperm.xlu1 %4843, %v6650_v22  }
 0x438   :  { %v6655_v6 = vpop.xlane.xlu1 %3033  ;;  %3246 = vperm.xlu0 %4842, %v6652_v10   ;;  %v6667_v21 = vpop.eup %5052 }
 0x439   :  { %7425 = vst [vmem:[#allocation10_spill] sm:$0xff] %v6655_v6  ;;  %v6661_v49 = vrot.slane %v6655_v6, %v7424_v37  ;;  %v6665_v14 = vrot.slane %v6655_v6, %v6590_v20  ;;  %v6669_v19 = vpop.eup %5054  ;;  %v6680_v60 = vrot.slane %v6655_v6, %v6609_v31 }
 0x43a   :  { %v6682_v8 = vpop.eup %5056 }
 0x43b   :  { %3252 = vperm.xlu1 %4843, %v6667_v21   ;;  %v3134_v25 = vsub.f32 %v6422_v34, %v6661_v49  ;;  %v3136_v46 = vsub.f32 %v6424_v58, %v6665_v14  ;;  %v6684_v17 = vpop.eup %5058  ;;  %v3138_v44 = vsub.f32 %v6426_v57, %v6680_v60  ;;  %v3133_v39 = vsub.f32 %v6461_v28, %v6661_v49 }
 0x43c   :  { %3273 = vperm.xlu0 %4842, %v6669_v19   ;;  %v6696_v29 = vpop.eup %5060  ;;  %v3135_v49 = vsub.f32 %v6465_v33, %v6665_v14 }
 0x43d   :  { %v3183_v52 = vmul.f32 1.442695, %v3134_v25  ;;  %v3187_v54 = vmul.f32 1.442695, %v3136_v46  ;;  %v6694_v25 = vrot.slane %v6655_v6, %v6636_v56  ;;  %v6698_v5 = vpop.eup %5062  ;;  %v3191_v9 = vmul.f32 1.442695, %v3138_v44 }
 0x43e   :  { %v6708_v46 = vrot.slane %v6655_v6, %v6593_v4  ;;  %v6710_v32 = vpop.eup %5064  ;;  %v6722_v44 = vrot.slane %v6655_v6, %v6596_v63  ;;  %v3185_v55 = vmul.f32 1.442695, %v3135_v49 }
 0x43f   :  { %3255 = vperm.xlu1 %4843, %v6682_v8   ;;  %5070 = vpow2.f32 %v3183_v52  ;;  %v3140_v52 = vsub.f32 %v6430_v36, %v6694_v25  ;;  %v6712_v62 = vpop.eup %5066 }
 0x440   :  { %3279 = vperm.xlu0 %4842, %v6684_v17   ;;  %5072 = vpow2.f32 %v3163_v23  ;;  %v3169_v23 = vmul.f32 1.442695, %v3127_v26  ;;  %v6724_v50 = vpop.eup %5068 }
 0x441   :  { %5074 = vpow2.f32 %v3187_v54  ;;  %v3195_v24 = vmul.f32 1.442695, %v3140_v52  ;;  %v3142_v54 = vsub.f32 %v6434_v48, %v6708_v46  ;;  %v6736_v52 = vrot.slane %v6655_v6, %v6615_v15 }
 0x442   :  { %5076 = vpow2.f32 %v3165_v53  ;;  %v3173_v53 = vmul.f32 1.442695, %v3129_v1 }
 0x443   :  { %3258 = vperm.xlu1 %4843, %v6696_v29   ;;  %5078 = vpow2.f32 %v3191_v9  ;;  %v3199_v26 = vmul.f32 1.442695, %v3142_v54  ;;  %v3144_v9 = vsub.f32 %v6438_v47, %v6722_v44  ;;  %v3100_v54 = vrot.slane %v6655_v6, %v6624_v59 }
 0x444   :  { %3285 = vperm.xlu0 %4842, %v6698_v5   ;;  %5080 = vpow2.f32 %v3169_v23  ;;  %v3177_v23 = vmul.f32 1.442695, %v3131_v38 }
 0x445   :  { %5082 = vpow2.f32 %v3195_v24  ;;  %v3203_v1 = vmul.f32 1.442695, %v3144_v9  ;;  %v3146_v24 = vsub.f32 %v6442_v30, %v6736_v52 }
 0x446   :  { %5084 = vpow2.f32 %v3173_v53  ;;  %v3181_v53 = vmul.f32 1.442695, %v3133_v39 }
 0x447   :  { %3261 = vperm.xlu1 %4843, %v6710_v32   ;;  %5086 = vpow2.f32 %v3199_v26  ;;  %v3207_v38 = vmul.f32 1.442695, %v3146_v24  ;;  %v3148_v26 = vsub.f32 %v6571_v11, %v3100_v54  ;;  %v3139_v11 = vsub.f32 %v6513_v13, %v6694_v25 }
 0x448   :  { %3291 = vperm.xlu0 %4842, %v6712_v62   ;;  %5088 = vpow2.f32 %v3177_v23  ;;  %v3137_v23 = vsub.f32 %v6485_v40, %v6680_v60 }
 0x449   :  { %v6726_v36 = vpop.eup %5070  ;;  %5090 = vpow2.f32 %v3203_v1  ;;  %v3211_v39 = vmul.f32 1.442695, %v3148_v26  ;;  %v3193_v60 = vmul.f32 1.442695, %v3139_v11 }
 0x44a   :  { %v6738_v3 = vpop.eup %5072  ;;  %5092 = vpow2.f32 %v3181_v53  ;;  %v3189_v24 = vmul.f32 1.442695, %v3137_v23  ;;  %v3143_v23 = vsub.f32 %v6533_v51, %v6722_v44  ;;  %v3147_v44 = vsub.f32 %v6575_v7, %v3100_v54 }
 0x44b   :  { %3264 = vperm.xlu1 %4843, %v6724_v50   ;;  %v6740_v48 = vpop.eup %5074  ;;  %5094 = vpow2.f32 %v3207_v38  ;;  %v3141_v38 = vsub.f32 %v6527_v16, %v6708_v46  ;;  %v3145_v46 = vsub.f32 %v6549_v18, %v6736_v52 }
 0x44c   :  { %3297 = vperm.xlu0 %4842, %v6726_v36   ;;  %v6750_v43 = vpop.eup %5076  ;;  %5096 = vpow2.f32 %v3185_v55  ;;  %v3201_v11 = vmul.f32 1.442695, %v3143_v23  ;;  %v3209_v51 = vmul.f32 1.442695, %v3147_v44 }
 0x44d   :  { %v6752_v47 = vpop.eup %5078  ;;  %5098 = vpow2.f32 %v3211_v39  ;;  %v3197_v25 = vmul.f32 1.442695, %v3141_v38 }
 0x44e   :  { %v6759_v9 = vpop.eup %5080  ;;  %5100 = vpow2.f32 %v3189_v24 }
 0x44f   :  { %3267 = vperm.xlu1 %4843, %v6738_v3   ;;  %v6761_v30 = vpop.eup %5082  ;;  %5102 = vpow2.f32 %v3193_v60  ;;  %v3205_v60 = vmul.f32 1.442695, %v3145_v46 }
 0x450   :  { %3303 = vperm.xlu0 %4842, %v6740_v48   ;;  %v6767_v14 = vpop.eup %5084  ;;  %5104 = vpow2.f32 %v3197_v25 }
 0x451   :  { %v6769_v1 = vpop.eup %5086  ;;  %5106 = vpow2.f32 %v3201_v11 }
 0x452   :  { %v6775_v53 = vpop.eup %5088  ;;  %5108 = vpow2.f32 %v3205_v60 }
 0x453   :  { %3270 = vperm.xlu1 %4843, %v6750_v43   ;;  %v6777_v49 = vpop.eup %5090  ;;  %5110 = vpow2.f32 %v3209_v51 }
 0x454   :  { %3309 = vperm.xlu0 %4842, %v6752_v47   ;;  %v6783_v26 = vpop.eup %5092 }
 0x455   :  { %v6785_v55 = vpop.eup %5094 }
 0x456   :  { %7426 = vst [vmem:[#allocation50_spill] sm:$0xff] %v6785_v55  ;;  %v6791_v39 = vpop.eup %5096 }
 0x457   :  { %3276 = vperm.xlu1 %4843, %v6759_v9   ;;  %v6793_v24 = vpop.eup %5098 }
 0x458   :  { %3315 = vperm.xlu0 %4842, %v6761_v30   ;;  %7427 = vst [vmem:[#allocation51_spill] sm:$0xff] %v6793_v24  ;;  %v6799_v16 = vpop.eup %5100 }
 0x459   :  { %v6803_v38 = vpop.eup %5102 }
 0x45a   :  { %v6806_v13 = vpop.eup %5104 }
 0x45b   :  { %3282 = vperm.xlu1 %4843, %v6767_v14   ;;  %v6809_v52 = vpop.eup %5106 }
 0x45c   :  { %3321 = vperm.xlu0 %4842, %v6769_v1   ;;  %7428 = vst [vmem:[#allocation52_spill] sm:$0xff] %v6809_v52  ;;  %v6812_v25 = vpop.eup %5108 }
 0x45d   :  { %7429 = vst [vmem:[#allocation53_spill] sm:$0xff] %v6812_v25  ;;  %v6815_v54 = vpop.eup %5110 }
 0x45e   :  { %7430 = vst [vmem:[#allocation54_spill] sm:$0xff] %v6815_v54 }
 0x45f   :  { %3288 = vperm.xlu1 %4843, %v6775_v53  }
 0x460   :  { %3327 = vperm.xlu0 %4842, %v6777_v49  }
 0x463   :  { %3294 = vperm.xlu1 %4843, %v6783_v26  }
 0x464   :  { %3333 = vperm.xlu0 %4842, %v6785_v55  }
 0x467   :  { %3300 = vperm.xlu1 %4843, %v6791_v39  }
 0x468   :  { %3339 = vperm.xlu0 %4842, %v6793_v24  }
 0x46b   :  { %3306 = vperm.xlu1 %4843, %v6799_v16  }
 0x46f   :  { %3312 = vperm.xlu1 %4843, %v6803_v38  }
 0x473   :  { %3318 = vperm.xlu1 %4843, %v6806_v13  }
 0x477   :  { %3324 = vperm.xlu1 %4843, %v6809_v52  }
 0x47b   :  { %3330 = vperm.xlu1 %4843, %v6812_v25  }
 0x47f   :  { %3336 = vperm.xlu1 %4843, %v6815_v54  }
 0x4b6   :  { %v3250_v23 = vpop.permute.xlu1 %3249 }
 0x4b7   :  { %v3247_v11 = vpop.permute.xlu0 %3246  ;;  %v3348_v42 = vrot.slane %v3250_v23, %v6468_v12 }
 0x4b8   :  { %v3344_v45 = vrot.slane %v3247_v11, %v6473_v27 }
 0x4ba   :  { %v3253_v46 = vpop.permute.xlu1 %3252 }
 0x4bb   :  { %v3274_v60 = vpop.permute.xlu0 %3273  ;;  %v3353_v35 = vrot.slane %v3253_v46, %v6473_v27  ;;  %v3349_v46 = vsel %vm2869_vm9, %v3348_v42, %v3344_v45 }
 0x4bc   :  { %v3384_v55 = vrot.slane %v3274_v60, %v6468_v12 }
 0x4be   :  { %v3256_v44 = vpop.permute.xlu1 %3255 }
 0x4bf   :  { %v3280_v7 = vpop.permute.xlu0 %3279  ;;  %v3357_v34 = vrot.slane %v3256_v44, %v6468_v12 }
 0x4c1   :  { %v3358_v25 = vsel %vm2869_vm9, %v3357_v34, %v3353_v35 }
 0x4c2   :  { %v3259_v18 = vpop.permute.xlu1 %3258 }
 0x4c3   :  { %v3286_v51 = vpop.permute.xlu0 %3285  ;;  %v3362_v0 = vrot.slane %v3259_v18, %v6473_v27 }
 0x4c4   :  { %v3402_v34 = vrot.slane %v3286_v51, %v6468_v12 }
 0x4c6   :  { %v3262_v57 = vpop.permute.xlu1 %3261 }
 0x4c7   :  { %v3292_v41 = vpop.permute.xlu0 %3291  ;;  %v3366_v28 = vrot.slane %v3262_v57, %v6468_v12 }
 0x4c9   :  { %v3367_v23 = vsel %vm2869_vm9, %v3366_v28, %v3362_v0 }
 0x4ca   :  { %v3265_v40 = vpop.permute.xlu1 %3264 }
 0x4cb   :  { %v6818_v58 = vpop.permute.xlu0 %3297  ;;  %v3371_v44 = vrot.slane %v3265_v40, %v6473_v27 }
 0x4ce   :  { %v3268_v61 = vpop.permute.xlu1 %3267 }
 0x4cf   :  { %v3375_v6 = vrot.slane %v3268_v61, %v6468_v12  ;;  %v3304_v54 = vpop.permute.xlu0 %3303  ;;  %v3393_v61 = vrot.slane %v3280_v7, %v6468_v12  ;;  %v3411_v7 = vrot.slane %v3292_v41, %v6468_v12 }
 0x4d1   :  { %v3376_v18 = vsel %vm2869_vm9, %v3375_v6, %v3371_v44 }
 0x4d2   :  { %v3271_v33 = vpop.permute.xlu1 %3270 }
 0x4d3   :  { %v3380_v24 = vrot.slane %v3271_v33, %v6473_v27  ;;  %v3485_v33 = vsel %vm765_vm3, %v3358_v25, %v3349_v46  ;;  %v3310_v0 = vpop.permute.xlu0 %3309 }
 0x4d5   :  { %v3385_v35 = vsel %vm2869_vm9, %v3384_v55, %v3380_v24 }
 0x4d6   :  { %v3277_v2 = vpop.permute.xlu1 %3276 }
 0x4d7   :  { %v3389_v57 = vrot.slane %v3277_v2, %v6473_v27  ;;  %v3486_v2 = vsel %vm3007_vm10, %v3367_v23, %v3485_v33  ;;  %v3316_v23 = vpop.permute.xlu0 %3315 }
 0x4d8   :  { %v3487_v28 = vsel %vm3009_vm11, %v3376_v18, %v3486_v2 }
 0x4d9   :  { %v3394_v40 = vsel %vm2869_vm9, %v3393_v61, %v3389_v57  ;;  %v3488_v6 = vsel %vm3011_vm12, %v3385_v35, %v3487_v28 }
 0x4da   :  { %v3283_v11 = vpop.permute.xlu1 %3282  ;;  %v3489_v60 = vsel %vm3013_vm13, %v3394_v40, %v3488_v6  ;;  %v3429_v40 = vrot.slane %v3304_v54, %v6468_v12  ;;  %v3420_v6 = vrot.slane %v6818_v58, %v6468_v12 }
 0x4db   :  { %v3398_v52 = vrot.slane %v3283_v11, %v6473_v27  ;;  %v3322_v11 = vpop.permute.xlu0 %3321 }
 0x4dd   :  { %v3403_v45 = vsel %vm2869_vm9, %v3402_v34, %v3398_v52 }
 0x4de   :  { %v3289_v42 = vpop.permute.xlu1 %3288  ;;  %v3490_v24 = vsel %vm3015_vm14, %v3403_v45, %v3489_v60 }
 0x4df   :  { %v3407_v25 = vrot.slane %v3289_v42, %v6473_v27  ;;  %v3328_v61 = vpop.permute.xlu0 %3327  ;;  %v3438_v42 = vrot.slane %v3310_v0, %v6468_v12 }
 0x4e1   :  { %v3412_v55 = vsel %vm2869_vm9, %v3411_v7, %v3407_v25  ;;  %v3447_v25 = vrot.slane %v3316_v23, %v6468_v12 }
 0x4e2   :  { %v3295_v51 = vpop.permute.xlu1 %3294  ;;  %v3491_v44 = vsel %vm3017_vm15, %v3412_v55, %v3490_v24  ;;  %v3456_v24 = vrot.slane %v3322_v11, %v6468_v12 }
 0x4e3   :  { %v3501_v57 = vsel %vm3028_vm4, %v3491_v44, 0.0  ;;  %v3334_v34 = vpop.permute.xlu0 %3333  ;;  %v3416_v28 = vrot.slane %v3295_v51, %v6473_v27  ;;  %v3465_v44 = vrot.slane %v3328_v61, %v6468_v12 }
 0x4e4   :  { %3502 = vadd.xlane.f32.xlu1 %v3501_v57  ;;  %v3474_v58 = vrot.slane %v3334_v34, %v6468_v12 }
 0x4e5   :  { %v3421_v0 = vsel %vm2869_vm9, %v3420_v6, %v3416_v28 }
 0x4e6   :  { %v3301_v52 = vpop.permute.xlu1 %3300 }
 0x4e7   :  { %v3425_v33 = vrot.slane %v3301_v52, %v6473_v27 }
 0x4e9   :  { %v3430_v60 = vsel %vm2869_vm9, %v3429_v40, %v3425_v33 }
 0x4ea   :  { %v3307_v41 = vpop.permute.xlu1 %3306  ;;  %v3492_v23 = vsel %vm765_vm3, %v3430_v60, %v3421_v0 }
 0x4eb   :  { %v3434_v35 = vrot.slane %v3307_v41, %v6473_v27  ;;  %v3340_v41 = vpop.permute.xlu0 %3339 }
 0x4ed   :  { %v3439_v54 = vsel %vm2869_vm9, %v3438_v42, %v3434_v35 }
 0x4ee   :  { %v3313_v46 = vpop.permute.xlu1 %3312  ;;  %v3493_v11 = vsel %vm3007_vm10, %v3439_v54, %v3492_v23 }
 0x4ef   :  { %v3443_v45 = vrot.slane %v3313_v46, %v6473_v27 }
 0x4f1   :  { %v3448_v57 = vsel %vm2869_vm9, %v3447_v25, %v3443_v45 }
 0x4f2   :  { %v3319_v18 = vpop.permute.xlu1 %3318  ;;  %v3494_v33 = vsel %vm3009_vm11, %v3448_v57, %v3493_v11 }
 0x4f3   :  { %v3452_v7 = vrot.slane %v3319_v18, %v6473_v27 }
 0x4f5   :  { %v3457_v46 = vsel %vm2869_vm9, %v3456_v24, %v3452_v7 }
 0x4f6   :  { %v3325_v2 = vpop.permute.xlu1 %3324  ;;  %v3495_v40 = vsel %vm3011_vm12, %v3457_v46, %v3494_v33 }
 0x4f7   :  { %v3461_v55 = vrot.slane %v3325_v2, %v6473_v27  ;;  %v3483_v2 = vrot.slane %v3340_v41, %v6468_v12 }
 0x4f9   :  { %v3466_v18 = vsel %vm2869_vm9, %v3465_v44, %v3461_v55 }
 0x4fa   :  { %v3331_v51 = vpop.permute.xlu1 %3330  ;;  %v3496_v28 = vsel %vm3013_vm13, %v3466_v18, %v3495_v40 }
 0x4fb   :  { %v3470_v52 = vrot.slane %v3331_v51, %v6473_v27 }
 0x4fd   :  { %v3475_v61 = vsel %vm2869_vm9, %v3474_v58, %v3470_v52 }
 0x4fe   :  { %v3337_v35 = vpop.permute.xlu1 %3336  ;;  %v3497_v42 = vsel %vm3015_vm14, %v3475_v61, %v3496_v28 }
 0x4ff   :  { %v3479_v34 = vrot.slane %v3337_v35, %v6473_v27 }
 0x501   :  { %v3484_v45 = vsel %vm2869_vm9, %v3483_v2, %v3479_v34 }
 0x502   :  { %v3498_v7 = vsel %vm3017_vm15, %v3484_v45, %v3497_v42  ;;  %v7431_v45 = vld [vmem:[#allocation52_spill] sm:$0xff] }
 0x503   :  { %v3504_v6 = vsel %vm3028_vm4, %v3498_v7, 0.0 }
 0x504   :  { %3505 = vadd.xlane.f32.xlu0 %v3504_v6  ;;  %v7433_v6 = vld [vmem:[#allocation53_spill] sm:$0xff] }
 0x571   :  { %v3503_v25 = vpop.xlane.xlu1 %3502 }
 0x572   :  { %5112 = vrcp.f32 %v3503_v25 }
 0x57c   :  { %v5113_v60 = vpop.eup %5112 }
 0x57d   :  { %v3514_v55 = vrot.slane %v5113_v60, %v7424_v37  ;;  %v3518_v51 = vrot.slane %v5113_v60, %v6590_v20  ;;  %v3522_v57 = vrot.slane %v5113_v60, %v6609_v31 }
 0x57f   :  { %v3592_v24 = vmul.f32 %v6650_v22, %v3514_v55  ;;  %v3591_v54 = vmul.f32 %v6652_v10, %v3514_v55  ;;  %v3593_v44 = vmul.f32 %v6667_v21, %v3518_v51  ;;  %v3594_v0 = vmul.f32 %v6682_v8, %v3518_v51  ;;  %v7435_v55 = vld [vmem:[#allocation54_spill] sm:$0xff] }
 0x580   :  { %v3595_v52 = vmul.f32 %v6696_v29, %v3522_v57  ;;  %v3596_v58 = vmul.f32 %v6710_v32, %v3522_v57  ;;  %v3526_v22 = vrot.slane %v5113_v60, %v6636_v56  ;;  %v3530_v21 = vrot.slane %v5113_v60, %v6593_v4 }
 0x581   :  { %4129 = vperm.xlu1 %4843, %v3592_v24   ;;  %4126 = vperm.xlu0 %4842, %v3591_v54   ;;  %v3534_v29 = vrot.slane %v5113_v60, %v6596_v63  ;;  %v7437_v54 = vld [vmem:[#allocation31_spill] sm:$0xff] }
 0x582   :  { %v3597_v10 = vmul.f32 %v6724_v50, %v3526_v22  ;;  %v3598_v23 = vmul.f32 %v6738_v3, %v3526_v22  ;;  %v3599_v8 = vmul.f32 %v6750_v43, %v3530_v21  ;;  %v3600_v41 = vmul.f32 %v6669_v19, %v3530_v21 }
 0x583   :  { %v3601_v46 = vmul.f32 %v6759_v9, %v3534_v29  ;;  %v3602_v50 = vmul.f32 %v6684_v17, %v3534_v29  ;;  %v3538_v3 = vrot.slane %v5113_v60, %v6615_v15  ;;  %v3542_v19 = vrot.slane %v5113_v60, %v6624_v59 }
 0x585   :  { %4132 = vperm.xlu1 %4843, %v3593_v44   ;;  %4135 = vperm.xlu0 %4842, %v3594_v0   ;;  %v3603_v11 = vmul.f32 %v6767_v14, %v3538_v3  ;;  %v3604_v43 = vmul.f32 %v6698_v5, %v3538_v3  ;;  %v3605_v18 = vmul.f32 %v6775_v53, %v3542_v19  ;;  %v5192_v44 = vld [vmem:[%s7234_s14] ss:$0 sm:$0xff] }
 0x586   :  { %v3606_v33 = vmul.f32 %v6712_v62, %v3542_v19 }
 0x589   :  { %4138 = vperm.xlu1 %4843, %v3595_v52   ;;  %4141 = vperm.xlu0 %4842, %v3596_v58  }
 0x58d   :  { %4144 = vperm.xlu1 %4843, %v3597_v10   ;;  %4147 = vperm.xlu0 %4842, %v3598_v23  }
 0x591   :  { %4150 = vperm.xlu1 %4843, %v3599_v8   ;;  %4153 = vperm.xlu0 %4842, %v3600_v41   ;;  %v3506_v32 = vpop.xlane.xlu0 %3505 }
 0x592   :  { %5114 = vrcp.f32 %v3506_v32 }
 0x595   :  { %4156 = vperm.xlu1 %4843, %v3601_v46   ;;  %4159 = vperm.xlu0 %4842, %v3602_v50  }
 0x599   :  { %4162 = vperm.xlu1 %4843, %v3603_v11   ;;  %4165 = vperm.xlu0 %4842, %v3604_v43  }
 0x59c   :  { %v5115_v61 = vpop.eup %5114 }
 0x59d   :  { %4168 = vperm.xlu1 %4843, %v3605_v18   ;;  %4171 = vperm.xlu0 %4842, %v3606_v33   ;;  %v3546_v17 = vrot.slane %v5115_v61, %v7424_v37  ;;  %v3550_v14 = vrot.slane %v5115_v61, %v6590_v20  ;;  %v3554_v53 = vrot.slane %v5115_v61, %v6609_v31 }
 0x59f   :  { %v3608_v9 = vmul.f32 %v6726_v36, %v3546_v17  ;;  %v3607_v35 = vmul.f32 %v6783_v26, %v3546_v17  ;;  %v3610_v5 = vmul.f32 %v6740_v48, %v3550_v14  ;;  %v3609_v2 = vmul.f32 %v6791_v39, %v3550_v14 }
 0x5a0   :  { %v3612_v62 = vmul.f32 %v6752_v47, %v3554_v53  ;;  %v3611_v40 = vmul.f32 %v6799_v16, %v3554_v53  ;;  %v3558_v36 = vrot.slane %v5115_v61, %v6636_v56  ;;  %v3562_v48 = vrot.slane %v5115_v61, %v6593_v4 }
 0x5a1   :  { %4347 = vperm.xlu0 %4842, %v3608_v9   ;;  %4344 = vperm.xlu1 %4843, %v3607_v35   ;;  %v3566_v47 = vrot.slane %v5115_v61, %v6596_v63 }
 0x5a2   :  { %v3614_v26 = vmul.f32 %v6761_v30, %v3558_v36  ;;  %v3613_v34 = vmul.f32 %v6803_v38, %v3558_v36  ;;  %v3616_v39 = vmul.f32 %v6769_v1, %v3562_v48  ;;  %v3615_v28 = vmul.f32 %v6806_v13, %v3562_v48  ;;  %v7432_v38 = vld [vmem:[#allocation50_spill] sm:$0xff]  ;;  %v7434_v13 = vld [vmem:[#allocation51_spill] sm:$0xff] }
 0x5a3   :  { %v3618_v16 = vmul.f32 %v6777_v49, %v3566_v47  ;;  %v3617_v42 = vmul.f32 %v7431_v45, %v3566_v47  ;;  %v3570_v30 = vrot.slane %v5115_v61, %v6615_v15  ;;  %v3574_v1 = vrot.slane %v5115_v61, %v6624_v59  ;;  %v7436_v49 = vld [vmem:[#allocation32_spill] sm:$0xff] }
 0x5a4   :  { %5116 = vtanh.f32 %v7436_v49 }
 0x5a5   :  { %4353 = vperm.xlu0 %4842, %v3610_v5   ;;  %4350 = vperm.xlu1 %4843, %v3609_v2   ;;  %v3620_v7 = vmul.f32 %v7432_v38, %v3570_v30  ;;  %v3619_v25 = vmul.f32 %v7433_v6, %v3570_v30  ;;  %v3622_v60 = vmul.f32 %v7434_v13, %v3574_v1  ;;  %5118 = vtanh.f32 %v7437_v54 }
 0x5a6   :  { %v3621_v24 = vmul.f32 %v7435_v55, %v3574_v1 }
 0x5a9   :  { %4359 = vperm.xlu0 %4842, %v3612_v62   ;;  %4356 = vperm.xlu1 %4843, %v3611_v40  }
 0x5ad   :  { %4365 = vperm.xlu0 %4842, %v3614_v26   ;;  %4362 = vperm.xlu1 %4843, %v3613_v34  }
 0x5ae   :  { %v5117_v51 = vpop.eup %5116 }
 0x5af   :  { %v2819_v0 = vmul.f32 %v5192_v44, %v5117_v51  ;;  %v5119_v57 = vpop.eup %5118 }
 0x5b0   :  { %v2818_v58 = vmul.f32 %v5192_v44, %v5119_v57  ;;  %v7439_v57 = vld [vmem:[#allocation12_spill] sm:$0xff] }
 0x5b1   :  { %4371 = vperm.xlu0 %4842, %v3616_v39   ;;  %4368 = vperm.xlu1 %4843, %v3615_v28   ;;  %v2823_v52 = vsel %vm155_vm2, %v2819_v0, 0.0  ;;  %v7438_v0 = vld [vmem:[#allocation11_spill] sm:$0xff] }
 0x5b2   :  { %v2820_v22 = vsel %vm155_vm2, %v2818_v58, 0.0 }
 0x5b5   :  { %4377 = vperm.xlu0 %4842, %v3618_v16   ;;  %4374 = vperm.xlu1 %4843, %v3617_v42  }
 0x5b9   :  { %4383 = vperm.xlu0 %4842, %v3620_v7   ;;  %4380 = vperm.xlu1 %4843, %v3619_v25  }
 0x5bd   :  { %4389 = vperm.xlu0 %4842, %v3622_v60   ;;  %4386 = vperm.xlu1 %4843, %v3621_v24  }
 0x5dc   :  { %2824 = vadd.xlane.f32.xlu0 %v2823_v52  ;;  %v7440_v52 = vpack.c.bf16 %v7438_v0, %v7439_v57  ;;  %v7444_v57 = vld [vmem:[#allocation10_spill] sm:$0xff] }
 0x5e1   :  { %2821 = vadd.xlane.f32.xlu1 %v2820_v22  ;;  %v7442_v22 = vmov 0.0  }
 0x600   :  { %v4130_v10 = vpop.permute.xlu1 %4129  ;;  %v4127_v23 = vpop.permute.xlu0 %4126 }
 0x601   :  { %v4180_v17 = vrot.slane %v4130_v10, %v6468_v12  ;;  %v4176_v9 = vrot.slane %v4127_v23, %v6473_v27 }
 0x603   :  { %v4181_v48 = vsel %vm2869_vm9, %v4180_v17, %v4176_v9 }
 0x604   :  { %v4133_v21 = vpop.permute.xlu1 %4132  ;;  %v4136_v8 = vpop.permute.xlu0 %4135 }
 0x605   :  { %v4185_v11 = vrot.slane %v4133_v21, %v6473_v27  ;;  %v4189_v43 = vrot.slane %v4136_v8, %v6468_v12 }
 0x607   :  { %v4190_v53 = vsel %vm2869_vm9, %v4189_v43, %v4185_v11 }
 0x608   :  { %v4139_v41 = vpop.permute.xlu1 %4138  ;;  %v4142_v29 = vpop.permute.xlu0 %4141  ;;  %v4245_v16 = vsel %vm765_vm3, %v4190_v53, %v4181_v48 }
 0x609   :  { %v4194_v19 = vrot.slane %v4139_v41, %v6473_v27  ;;  %v4198_v18 = vrot.slane %v4142_v29, %v6468_v12 }
 0x60b   :  { %v4199_v36 = vsel %vm2869_vm9, %v4198_v18, %v4194_v19 }
 0x60c   :  { %v4145_v32 = vpop.permute.xlu1 %4144  ;;  %v4148_v46 = vpop.permute.xlu0 %4147  ;;  %v4246_v42 = vsel %vm3007_vm10, %v4199_v36, %v4245_v16 }
 0x60d   :  { %v4203_v35 = vrot.slane %v4145_v32, %v6473_v27  ;;  %v4207_v14 = vrot.slane %v4148_v46, %v6468_v12 }
 0x60f   :  { %v4208_v39 = vsel %vm2869_vm9, %v4207_v14, %v4203_v35 }
 0x610   :  { %v4151_v50 = vpop.permute.xlu1 %4150  ;;  %v4154_v3 = vpop.permute.xlu0 %4153  ;;  %v4247_v38 = vsel %vm3009_vm11, %v4208_v39, %v4246_v42 }
 0x611   :  { %v4212_v5 = vrot.slane %v4151_v50, %v6473_v27  ;;  %v4216_v2 = vrot.slane %v4154_v3, %v6468_v12 }
 0x613   :  { %v4217_v45 = vsel %vm2869_vm9, %v4216_v2, %v4212_v5 }
 0x614   :  { %v4157_v33 = vpop.permute.xlu1 %4156  ;;  %v4160_v61 = vpop.permute.xlu0 %4159  ;;  %v4248_v1 = vsel %vm3011_vm12, %v4217_v45, %v4247_v38 }
 0x615   :  { %v4221_v62 = vrot.slane %v4157_v33, %v6473_v27  ;;  %v4225_v40 = vrot.slane %v4160_v61, %v6468_v12 }
 0x617   :  { %v4226_v30 = vsel %vm2869_vm9, %v4225_v40, %v4221_v62 }
 0x618   :  { %v4163_v26 = vpop.permute.xlu1 %4162  ;;  %v4166_v34 = vpop.permute.xlu0 %4165  ;;  %v4249_v55 = vsel %vm3013_vm13, %v4226_v30, %v4248_v1 }
 0x619   :  { %v4230_v28 = vrot.slane %v4163_v26, %v6473_v27  ;;  %v4234_v47 = vrot.slane %v4166_v34, %v6468_v12 }
 0x61b   :  { %v4235_v7 = vsel %vm2869_vm9, %v4234_v47, %v4230_v28 }
 0x61c   :  { %v4169_v6 = vpop.permute.xlu1 %4168  ;;  %v4172_v25 = vpop.permute.xlu0 %4171  ;;  %v4250_v24 = vsel %vm3015_vm14, %v4235_v7, %v4249_v55 }
 0x61d   :  { %v4239_v13 = vrot.slane %v4169_v6, %v6473_v27  ;;  %v4243_v60 = vrot.slane %v4172_v25, %v6468_v12 }
 0x61f   :  { %v4244_v49 = vsel %vm2869_vm9, %v4243_v60, %v4239_v13 }
 0x620   :  { %v4345_v54 = vpop.permute.xlu1 %4344  ;;  %v4348_v51 = vpop.permute.xlu0 %4347  ;;  %v6971_v44 = vsel %vm3017_vm15, %v4244_v49, %v4250_v24 }
 0x621   :  { %4804 = vmatmul.mubr.msk.f32.vlgmr.msra.gmra.mrb[16].mxu1 %vm3028_vm4, %v6971_v44  ;;  %v4394_v33 = vrot.slane %v4345_v54, %v6473_v27  ;;  %v4398_v61 = vrot.slane %v4348_v51, %v6468_v12  ;;  %v7443_v51 = vld [vmem:[#allocation49_spill] sm:$0xff] }
 0x622   :  { %4826 = vmatpush3.bf16.msk.msra.mxu1 %vm5623_vm7, %v7440_v52  ;;  %4810 = vmatprep.mubr.msk.f32.mxu1 %vm5243_vm0, %v7442_v22  ;;  %vm4562_vm0 = vcmask 89088  }
 0x623   :  { %v4399_v26 = vsel %vm2869_vm9, %v4398_v61, %v4394_v33  ;;  %v7450_v61 = vld [vmem:[#allocation26_spill] sm:$0xff] }
 0x624   :  { %v4351_v10 = vpop.permute.xlu1 %4350  ;;  %v4354_v23 = vpop.permute.xlu0 %4353 }
 0x625   :  { %v4403_v50 = vrot.slane %v4351_v10, %v6473_v27  ;;  %v4407_v3 = vrot.slane %v4354_v23, %v6468_v12  ;;  %v7445_v10 = vld [vmem:[#allocation22_spill] sm:$0xff] }
 0x627   :  { %v4408_v5 = vsel %vm2869_vm9, %v4407_v3, %v4403_v50 }
 0x628   :  { %v4357_v21 = vpop.permute.xlu1 %4356  ;;  %v4360_v8 = vpop.permute.xlu0 %4359  ;;  %v4463_v28 = vsel %vm765_vm3, %v4408_v5, %v4399_v26 }
 0x629   :  { %v4412_v11 = vrot.slane %v4357_v21, %v6473_v27  ;;  %v4416_v43 = vrot.slane %v4360_v8, %v6468_v12  ;;  %v7446_v21 = vld [vmem:[#allocation28_spill] sm:$0xff] }
 0x62b   :  { %v4417_v62 = vsel %vm2869_vm9, %v4416_v43, %v4412_v11 }
 0x62c   :  { %v4363_v41 = vpop.permute.xlu1 %4362  ;;  %v4366_v29 = vpop.permute.xlu0 %4365  ;;  %v4464_v16 = vsel %vm3007_vm10, %v4417_v62, %v4463_v28 }
 0x62d   :  { %v4421_v17 = vrot.slane %v4363_v41, %v6473_v27  ;;  %v4425_v9 = vrot.slane %v4366_v29, %v6468_v12  ;;  %v7447_v29 = vld [vmem:[#allocation29_spill] sm:$0xff] }
 0x62f   :  { %v4426_v34 = vsel %vm2869_vm9, %v4425_v9, %v4421_v17 }
 0x630   :  { %v4369_v32 = vpop.permute.xlu1 %4368  ;;  %v4372_v46 = vpop.permute.xlu0 %4371  ;;  %v4465_v42 = vsel %vm3009_vm11, %v4426_v34, %v4464_v16  ;;  %v7454_v34 = vld [vmem:[#allocation34_spill] sm:$0xff]  ;;  %v7455_v16 = vld [vmem:[#allocation40_spill] sm:$0xff] }
 0x631   :  { %v4430_v35 = vrot.slane %v4369_v32, %v6473_v27  ;;  %v4434_v14 = vrot.slane %v4372_v46, %v6468_v12  ;;  %v7448_v46 = vld [vmem:[#allocation25_spill] sm:$0xff] }
 0x633   :  { %v4435_v47 = vsel %vm2869_vm9, %v4434_v14, %v4430_v35  ;;  %v7451_v35 = vld [vmem:[#allocation39_spill] sm:$0xff] }
 0x634   :  { %v4375_v19 = vpop.permute.xlu1 %4374  ;;  %v4378_v18 = vpop.permute.xlu0 %4377  ;;  %v4466_v6 = vsel %vm3011_vm12, %v4435_v47, %v4465_v42 }
 0x635   :  { %v4439_v2 = vrot.slane %v4375_v19, %v6473_v27  ;;  %v4443_v53 = vrot.slane %v4378_v18, %v6468_v12  ;;  %v7449_v19 = vld [vmem:[#allocation37_spill] sm:$0xff] }
 0x637   :  { %v4444_v45 = vsel %vm2869_vm9, %v4443_v53, %v4439_v2  ;;  %v7452_v2 = vld [vmem:[#allocation16_spill] sm:$0xff] }
 0x638   :  { %v4381_v40 = vpop.permute.xlu1 %4380  ;;  %v4384_v36 = vpop.permute.xlu0 %4383  ;;  %v4467_v13 = vsel %vm3013_vm13, %v4444_v45, %v4466_v6 }
 0x639   :  { %v4448_v48 = vrot.slane %v4381_v40, %v6473_v27  ;;  %v4452_v39 = vrot.slane %v4384_v36, %v6468_v12  ;;  %v7453_v40 = vld [vmem:[#allocation20_spill] sm:$0xff] }
 0x63b   :  { %v4453_v30 = vsel %vm2869_vm9, %v4452_v39, %v4448_v48 }
 0x63c   :  { %v4387_v38 = vpop.permute.xlu1 %4386  ;;  %v4390_v7 = vpop.permute.xlu0 %4389  ;;  %v4468_v60 = vsel %vm3015_vm14, %v4453_v30, %v4467_v13  ;;  %v7457_v13 = vld [vmem:[#allocation21_spill] sm:$0xff] }
 0x63d   :  { %v4457_v25 = vrot.slane %v4387_v38, %v6473_v27  ;;  %v4461_v1 = vrot.slane %v4390_v7, %v6468_v12 }
 0x63f   :  { %v4462_v55 = vsel %vm2869_vm9, %v4461_v1, %v4457_v25 }
 0x640   :  { %v7013_v24 = vsel %vm3017_vm15, %v4462_v55, %v4468_v60 }
 0x641   :  { %4811 = vmatmul.mubr.msk.f32.vlgmr.msra.gmra.mrb[18].mxu1 %vm3028_vm4, %v7013_v24 }
 0x669   :  { %v7019_v54 = vpop.xlane.xlu0 %2824 }
 0x66a   :  { %v7027_v52 = vmax.f32 %v7444_v57, %v7019_v54 }
 0x66c   :  { %v3668_v41 = vrot.slane %v7027_v52, %v7424_v37  ;;  %v3672_v43 = vrot.slane %v7027_v52, %v6590_v20  ;;  %v3680_v1 = vrot.slane %v7027_v52, %v6636_v56 }
 0x66e   :  { %v7017_v49 = vpop.xlane.xlu1 %2821  ;;  %v3729_v18 = vsub.f32 %v7449_v19, %v3668_v41  ;;  %v3730_v17 = vsub.f32 %v7450_v61, %v3668_v41  ;;  %v3731_v14 = vsub.f32 %v7451_v35, %v3672_v43  ;;  %v3732_v53 = vsub.f32 %v7452_v2, %v3672_v43  ;;  %v7460_v41 = vld [vmem:[#allocation19_spill] sm:$0xff]  ;;  %v7463_v35 = vld [vmem:[#allocation44_spill] sm:$0xff] }
 0x66f   :  { %v7023_v0 = vmax.f32 %v7443_v51, %v7017_v49  ;;  %v7458_v51 = vld [vmem:[#allocation36_spill] sm:$0xff] }
 0x670   :  { %v3777_v5 = vmul.f32 1.442695, %v3729_v18  ;;  %v3779_v62 = vmul.f32 1.442695, %v3730_v17  ;;  %v3781_v26 = vmul.f32 1.442695, %v3731_v14 }
 0x671   :  { %v3636_v58 = vrot.slane %v7023_v0, %v7424_v37  ;;  %v3640_v22 = vrot.slane %v7023_v0, %v6590_v20  ;;  %v3644_v37 = vrot.slane %v7023_v0, %v6609_v31  ;;  %v3676_v20 = vrot.slane %v7027_v52, %v6609_v31  ;;  %v7456_v31 = vld [vmem:[#allocation18_spill] sm:$0xff] }
 0x672   :  { %v3783_v39 = vmul.f32 1.442695, %v3732_v53  ;;  %v3648_v42 = vrot.slane %v7023_v0, %v6636_v56  ;;  %v7462_v18 = vld [vmem:[#allocation38_spill] sm:$0xff] }
 0x673   :  { %v3714_v23 = vsub.f32 %v7445_v10, %v3636_v58  ;;  %v3713_v8 = vsub.f32 %v7446_v21, %v3636_v58  ;;  %v3715_v32 = vsub.f32 %v7447_v29, %v3640_v22  ;;  %v3716_v50 = vsub.f32 %v7448_v46, %v3640_v22 }
 0x674   :  { %v3717_v36 = vsub.f32 %v7453_v40, %v3644_v37  ;;  %v3718_v48 = vsub.f32 %v7454_v34, %v3644_v37  ;;  %v3733_v45 = vsub.f32 %v7455_v16, %v3676_v20  ;;  %v3734_v38 = vsub.f32 %v7456_v31, %v3676_v20  ;;  %v7468_v31 = vld [vmem:[#allocation30_spill] sm:$0xff] }
 0x675   :  { %v3747_v3 = vmul.f32 1.442695, %v3714_v23  ;;  %v3745_v11 = vmul.f32 1.442695, %v3713_v8  ;;  %v3749_v33 = vmul.f32 1.442695, %v3715_v32  ;;  %v3719_v60 = vsub.f32 %v7457_v13, %v3648_v42 }
 0x676   :  { %v3751_v9 = vmul.f32 1.442695, %v3716_v50  ;;  %v3753_v30 = vmul.f32 1.442695, %v3717_v36  ;;  %v3755_v7 = vmul.f32 1.442695, %v3718_v48  ;;  %v3720_v57 = vsub.f32 %v7458_v51, %v3648_v42 }
 0x677   :  { %5120 = vpow2.f32 %v3747_v3  ;;  %v3785_v55 = vmul.f32 1.442695, %v3733_v45  ;;  %v3787_v58 = vmul.f32 1.442695, %v3734_v38  ;;  %v7459_v23 = vld [vmem:[#allocation42_spill] sm:$0xff]  ;;  %v3652_v8 = vrot.slane %v7023_v0, %v6593_v4  ;;  %v7465_v36 = vld [vmem:[#allocation24_spill] sm:$0xff] }
 0x678   :  { %5122 = vpow2.f32 %v3745_v11  ;;  %v3735_v21 = vsub.f32 %v7459_v23, %v3680_v1  ;;  %v3757_v56 = vmul.f32 1.442695, %v3719_v60  ;;  %v3736_v29 = vsub.f32 %v7460_v41, %v3680_v1  ;;  %v7461_v11 = vld [vmem:[#allocation23_spill] sm:$0xff]  ;;  %v7466_v48 = vld [vmem:[#allocation9_spill] sm:$0xff]  ;;  %v7471_v23 = vld [vmem:[#allocation46_spill] sm:$0xff] }
 0x679   :  { %5124 = vpow2.f32 %v3749_v33  ;;  %v3759_v32 = vmul.f32 1.442695, %v3720_v57  ;;  %v3684_v3 = vrot.slane %v7027_v52, %v6593_v4  ;;  %v3721_v43 = vsub.f32 %v7461_v11, %v3652_v8  ;;  %v7467_v45 = vld [vmem:[#allocation45_spill] sm:$0xff] }
 0x67a   :  { %5126 = vpow2.f32 %v3751_v9  ;;  %v3789_v19 = vmul.f32 1.442695, %v3735_v21  ;;  %v3722_v33 = vsub.f32 %v7462_v18, %v3652_v8  ;;  %v3791_v61 = vmul.f32 1.442695, %v3736_v29  ;;  %v7469_v13 = vld [vmem:[#allocation33_spill] sm:$0xff] }
 0x67b   :  { %5128 = vpow2.f32 %v3777_v5  ;;  %v3737_v14 = vsub.f32 %v7463_v35, %v3684_v3  ;;  %v3656_v37 = vrot.slane %v7023_v0, %v6596_v63  ;;  %v3761_v4 = vmul.f32 1.442695, %v3721_v43  ;;  %v7464_v5 = vld [vmem:[#allocation17_spill] sm:$0xff] }
 0x67c   :  { %5130 = vpow2.f32 %v3779_v62  ;;  %v3738_v2 = vsub.f32 %v7464_v5, %v3684_v3  ;;  %v3763_v53 = vmul.f32 1.442695, %v3722_v33  ;;  %v3688_v40 = vrot.slane %v7027_v52, %v6596_v63  ;;  %v7470_v51 = vld [vmem:[#allocation41_spill] sm:$0xff]  ;;  %v7473_v3 = vld [vmem:[#allocation35_spill] sm:$0xff] }
 0x67d   :  { %5132 = vpow2.f32 %v3781_v26  ;;  %v3723_v26 = vsub.f32 %v7465_v36, %v3656_v37  ;;  %v3793_v34 = vmul.f32 1.442695, %v3737_v14  ;;  %v3692_v1 = vrot.slane %v7027_v52, %v6615_v15 }
 0x67e   :  { %5134 = vpow2.f32 %v3783_v39  ;;  %v3724_v39 = vsub.f32 %v7466_v48, %v3656_v37  ;;  %v3739_v42 = vsub.f32 %v7467_v45, %v3688_v40  ;;  %v3740_v38 = vsub.f32 %v7468_v31, %v3688_v40  ;;  %v7476_v37 = vld [vmem:[#allocation47_spill] sm:$0xff] }
 0x67f   :  { %5136 = vpow2.f32 %v3753_v30  ;;  %v3660_v30 = vrot.slane %v7023_v0, %v6615_v15  ;;  %v3765_v63 = vmul.f32 1.442695, %v3723_v26  ;;  %v3741_v21 = vsub.f32 %v7471_v23, %v3692_v1 }
 0x680   :  { %5138 = vpow2.f32 %v3755_v7  ;;  %v3767_v7 = vmul.f32 1.442695, %v3724_v39  ;;  %v3664_v8 = vrot.slane %v7023_v0, %v6624_v59 }
 0x681   :  { %v5121_v28 = vpop.eup %5120  ;;  %5140 = vpow2.f32 %v3785_v55  ;;  %v3725_v60 = vsub.f32 %v7469_v13, %v3660_v30  ;;  %v3797_v55 = vmul.f32 1.442695, %v3739_v42  ;;  %v3726_v57 = vsub.f32 %v7470_v51, %v3660_v30 }
 0x682   :  { %v5123_v47 = vpop.eup %5122  ;;  %3845 = vperm.xlu1 %4843, %v5121_v28   ;;  %5142 = vpow2.f32 %v3787_v58  ;;  %v3795_v28 = vmul.f32 1.442695, %v3738_v2  ;;  %v3799_v58 = vmul.f32 1.442695, %v3740_v38  ;;  %v3727_v11 = vsub.f32 %v7473_v3, %v3664_v8 }
 0x683   :  { %3842 = vperm.xlu0 %4842, %v5123_v47   ;;  %v5125_v6 = vpop.eup %5124  ;;  %5144 = vpow2.f32 %v3757_v56  ;;  %v3769_v15 = vmul.f32 1.442695, %v3725_v60  ;;  %v7472_v56 = vld [vmem:[#allocation27_spill] sm:$0xff]  ;;  %v3771_v29 = vmul.f32 1.442695, %v3726_v57 }
 0x684   :  { %v5127_v25 = vpop.eup %5126  ;;  %5146 = vpow2.f32 %v3759_v32  ;;  %v3742_v41 = vsub.f32 %v7472_v56, %v3692_v1  ;;  %v3801_v43 = vmul.f32 1.442695, %v3741_v21  ;;  %v3773_v14 = vmul.f32 1.442695, %v3727_v11 }
 0x685   :  { %v5129_v22 = vpop.eup %5128  ;;  %5148 = vpow2.f32 %v3789_v19  ;;  %v7474_v19 = vld [vmem:[#allocation43_spill] sm:$0xff] }
 0x686   :  { %3848 = vperm.xlu1 %4843, %v5125_v6   ;;  %v5131_v10 = vpop.eup %5130  ;;  %5150 = vpow2.f32 %v3791_v61  ;;  %v3728_v18 = vsub.f32 %v7474_v19, %v3664_v8  ;;  %v3803_v33 = vmul.f32 1.442695, %v3742_v41 }
 0x687   :  { %3851 = vperm.xlu0 %4842, %v5127_v25   ;;  %v5133_v46 = vpop.eup %5132  ;;  %5152 = vpow2.f32 %v3761_v4 }
 0x688   :  { %v5135_v50 = vpop.eup %5134  ;;  %5154 = vpow2.f32 %v3763_v53 }
 0x689   :  { %v5137_v17 = vpop.eup %5136  ;;  %5156 = vpow2.f32 %v3793_v34 }
 0x68a   :  { %3890 = vperm.xlu1 %4843, %v5129_v22   ;;  %v5139_v9 = vpop.eup %5138  ;;  %5158 = vpow2.f32 %v3795_v28 }
 0x68b   :  { %3893 = vperm.xlu0 %4842, %v5131_v10   ;;  %v5141_v62 = vpop.eup %5140  ;;  %5160 = vpow2.f32 %v3765_v63 }
 0x68c   :  { %v5143_v20 = vpop.eup %5142  ;;  %5162 = vpow2.f32 %v3767_v7 }
 0x68d   :  { %v5145_v47 = vpop.eup %5144  ;;  %5164 = vpow2.f32 %v3797_v55 }
 0x68e   :  { %3896 = vperm.xlu1 %4843, %v5133_v46   ;;  %v5147_v16 = vpop.eup %5146  ;;  %5166 = vpow2.f32 %v3799_v58 }
 0x68f   :  { %3899 = vperm.xlu0 %4842, %v5135_v50   ;;  %v5149_v6 = vpop.eup %5148  ;;  %v3696_v50 = vrot.slane %v7027_v52, %v6624_v59  ;;  %5168 = vpow2.f32 %v3769_v15  ;;  %v3775_v59 = vmul.f32 1.442695, %v3728_v18 }
 0x690   :  { %v5151_v25 = vpop.eup %5150  ;;  %5170 = vpow2.f32 %v3771_v29 }
 0x691   :  { %v5153_v22 = vpop.eup %5152  ;;  %5172 = vpow2.f32 %v3801_v43  ;;  %v3744_v4 = vsub.f32 %v7476_v37, %v3696_v50 }
 0x692   :  { %3854 = vperm.xlu1 %4843, %v5137_v17   ;;  %v5155_v10 = vpop.eup %5154  ;;  %5174 = vpow2.f32 %v3803_v33 }
 0x693   :  { %3857 = vperm.xlu0 %4842, %v5139_v9   ;;  %v5157_v32 = vpop.eup %5156  ;;  %v7475_v9 = vld [vmem:[#allocation48_spill] sm:$0xff]  ;;  %5176 = vpow2.f32 %v3773_v14 }
 0x694   :  { %v5159_v46 = vpop.eup %5158  ;;  %v3743_v35 = vsub.f32 %v7475_v9, %v3696_v50  ;;  %5178 = vpow2.f32 %v3775_v59 }
 0x695   :  { %v5161_v61 = vpop.eup %5160 }
 0x696   :  { %3902 = vperm.xlu1 %4843, %v5141_v62   ;;  %v5163_v17 = vpop.eup %5162  ;;  %v3805_v53 = vmul.f32 1.442695, %v3743_v35  ;;  %v3807_v62 = vmul.f32 1.442695, %v3744_v4 }
 0x697   :  { %3905 = vperm.xlu0 %4842, %v5143_v20   ;;  %v5165_v5 = vpop.eup %5164 }
 0x698   :  { %v5167_v2 = vpop.eup %5166  ;;  %5180 = vpow2.f32 %v3805_v53 }
 0x699   :  { %v5169_v20 = vpop.eup %5168  ;;  %5182 = vpow2.f32 %v3807_v62 }
 0x69a   :  { %3860 = vperm.xlu1 %4843, %v5145_v47   ;;  %v5171_v40 = vpop.eup %5170 }
 0x69b   :  { %3863 = vperm.xlu0 %4842, %v5147_v16   ;;  %v5173_v36 = vpop.eup %5172 }
 0x69c   :  { %v5175_v26 = vpop.eup %5174 }
 0x69d   :  { %v5177_v34 = vpop.eup %5176 }
 0x69e   :  { %3908 = vperm.xlu1 %4843, %v5149_v6   ;;  %v5179_v48 = vpop.eup %5178 }
 0x69f   :  { %3911 = vperm.xlu0 %4842, %v5151_v25  }
 0x6a2   :  { %3866 = vperm.xlu1 %4843, %v5153_v22   ;;  %v5181_v39 = vpop.eup %5180 }
 0x6a3   :  { %3869 = vperm.xlu0 %4842, %v5155_v10   ;;  %v5183_v28 = vpop.eup %5182 }
 0x6a6   :  { %3914 = vperm.xlu1 %4843, %v5157_v32  }
 0x6a7   :  { %3917 = vperm.xlu0 %4842, %v5159_v46  }
 0x6aa   :  { %3872 = vperm.xlu1 %4843, %v5161_v61  }
 0x6ab   :  { %3875 = vperm.xlu0 %4842, %v5163_v17  }
 0x6ae   :  { %3920 = vperm.xlu1 %4843, %v5165_v5  }
 0x6af   :  { %3923 = vperm.xlu0 %4842, %v5167_v2  }
 0x6b2   :  { %3878 = vperm.xlu1 %4843, %v5169_v20  }
 0x6b3   :  { %3881 = vperm.xlu0 %4842, %v5171_v40  }
 0x6b6   :  { %3926 = vperm.xlu1 %4843, %v5173_v36  }
 0x6b7   :  { %3929 = vperm.xlu0 %4842, %v5175_v26  }
 0x6ba   :  { %3884 = vperm.xlu1 %4843, %v5177_v34  }
 0x6bb   :  { %3887 = vperm.xlu0 %4842, %v5179_v48  }
 0x6be   :  { %3932 = vperm.xlu1 %4843, %v5181_v39  }
 0x6bf   :  { %3935 = vperm.xlu0 %4842, %v5183_v28  }
 0x6f4   :  { %v7093_v47 = vpop.f32.mrb[16].mxu1 }
 0x6f5   :  { %v4805_v16 = vpop.f32.mrb[17].mxu1 }
 0x701   :  { %v3846_v45 = vpop.permute.xlu1 %3845 }
 0x702   :  { %v3843_v42 = vpop.permute.xlu0 %3842  ;;  %v3944_v3 = vrot.slane %v3846_v45, %v6468_v12 }
 0x703   :  { %v3940_v11 = vrot.slane %v3843_v42, %v6473_v27 }
 0x705   :  { %v3849_v30 = vpop.permute.xlu1 %3848  ;;  %v3945_v35 = vsel %vm2869_vm9, %v3944_v3, %v3940_v11 }
 0x706   :  { %v3852_v63 = vpop.permute.xlu0 %3851  ;;  %v3949_v32 = vrot.slane %v3849_v30, %v6473_v27 }
 0x707   :  { %v3953_v46 = vrot.slane %v3852_v63, %v6468_v12 }
 0x709   :  { %v7095_v31 = vpop.permute.xlu1 %3890  ;;  %v3954_v33 = vsel %vm2869_vm9, %v3953_v46, %v3949_v32 }
 0x70a   :  { %v7097_v38 = vpop.permute.xlu0 %3893  ;;  %v4081_v62 = vsel %vm765_vm3, %v3954_v33, %v3945_v35  ;;  %v4012_v20 = vrot.slane %v7095_v31, %v6473_v27 }
 0x70b   :  { %v4016_v34 = vrot.slane %v7097_v38, %v6468_v12 }
 0x70d   :  { %v3897_v7 = vpop.permute.xlu1 %3896 }
 0x70e   :  { %v3900_v6 = vpop.permute.xlu0 %3899  ;;  %v4021_v14 = vrot.slane %v3897_v7, %v6473_v27 }
 0x70f   :  { %v4025_v37 = vrot.slane %v3900_v6, %v6468_v12 }
 0x711   :  { %v3855_v13 = vpop.permute.xlu1 %3854  ;;  %v4026_v45 = vsel %vm2869_vm9, %v4025_v37, %v4021_v14 }
 0x712   :  { %v3858_v60 = vpop.permute.xlu0 %3857  ;;  %v3958_v43 = vrot.slane %v3855_v13, %v6473_v27 }
 0x713   :  { %v3962_v19 = vrot.slane %v3858_v60, %v6468_v12 }
 0x714   :  { %v7099_v25 = vpop.f32.mrb[18].mxu1 }
 0x715   :  { %v4812_v1 = vpop.f32.mrb[19].mxu1  ;;  %v3903_v55 = vpop.permute.xlu1 %3902  ;;  %v3963_v4 = vsel %vm2869_vm9, %v3962_v19, %v3958_v43 }
 0x716   :  { %v3906_v51 = vpop.permute.xlu0 %3905  ;;  %v4030_v59 = vrot.slane %v3903_v55, %v6473_v27  ;;  %v4082_v42 = vsel %vm3007_vm10, %v3963_v4, %v4081_v62 }
 0x717   :  { %v4034_v5 = vrot.slane %v3906_v51, %v6468_v12 }
 0x719   :  { %v3861_v57 = vpop.permute.xlu1 %3860  ;;  %v4035_v31 = vsel %vm2869_vm9, %v4034_v5, %v4030_v59 }
 0x71a   :  { %v3864_v58 = vpop.permute.xlu0 %3863  ;;  %v3967_v61 = vrot.slane %v3861_v57, %v6473_v27 }
 0x71b   :  { %v3971_v17 = vrot.slane %v3864_v58, %v6468_v12 }
 0x71d   :  { %v3909_v22 = vpop.permute.xlu1 %3908  ;;  %v3972_v48 = vsel %vm2869_vm9, %v3971_v17, %v3967_v61 }
 0x71e   :  { %v3912_v10 = vpop.permute.xlu0 %3911  ;;  %v4039_v30 = vrot.slane %v3909_v22, %v6473_v27  ;;  %v4083_v1 = vsel %vm3009_vm11, %v3972_v48, %v4082_v42 }
 0x71f   :  { %v4043_v63 = vrot.slane %v3912_v10, %v6468_v12 }
 0x721   :  { %v3867_v23 = vpop.permute.xlu1 %3866 }
 0x722   :  { %v3870_v21 = vpop.permute.xlu0 %3869  ;;  %v3976_v2 = vrot.slane %v3867_v23, %v6473_v27 }
 0x723   :  { %v3980_v53 = vrot.slane %v3870_v21, %v6468_v12  ;;  %v4017_v21 = vsel %vm2869_vm9, %v4016_v34, %v4012_v20 }
 0x725   :  { %v3915_v8 = vpop.permute.xlu1 %3914  ;;  %v3981_v7 = vsel %vm2869_vm9, %v3980_v53, %v3976_v2  ;;  %v4857_v2 = vld [vmem:[%s7235_s15] sm:$0xff]   ;;  %v3626_v53 = vsub.f32 %v7019_v54, %v7027_v52 }
 0x726   :  { %v3918_v15 = vpop.permute.xlu0 %3917  ;;  %v4048_v38 = vrot.slane %v3915_v8, %v6473_v27  ;;  %v4044_v8 = vsel %vm2869_vm9, %v4043_v63, %v4039_v30  ;;  %4814 = vmatpush3.bf16.msra.mxu0 %v4857_v2  ;;  %v5193_v52 = vld [vmem:[%s7320_s8] sm:$0xff]   ;;  %v7477_v30 = vld [vmem:[#allocation14_spill] sm:$0xff] }
 0x727   :  { %v4052_v6 = vrot.slane %v3918_v15, %v6468_v12  ;;  %v4084_v15 = vsel %vm3011_vm12, %v3981_v7, %v4083_v1  ;;  %v3629_v20 = vmul.f32 1.442695, %v3626_v53  ;;  %v4552_v42 = vunpack.c.l.bf16 %v5193_v52 }
 0x729   :  { %v3873_v56 = vpop.permute.xlu1 %3872 }
 0x72a   :  { %v3876_v41 = vpop.permute.xlu0 %3875  ;;  %v3985_v40 = vrot.slane %v3873_v56, %v6473_v27 }
 0x72b   :  { %v3989_v36 = vrot.slane %v3876_v41, %v6468_v12  ;;  %v4088_v41 = vsel %vm765_vm3, %v4026_v45, %v4017_v21 }
 0x72c   :  { %v4089_v46 = vsel %vm3007_vm10, %v4035_v31, %v4088_v41 }
 0x72d   :  { %v3921_v29 = vpop.permute.xlu1 %3920  ;;  %v3990_v13 = vsel %vm2869_vm9, %v3989_v36, %v3985_v40  ;;  %v4090_v19 = vsel %vm3009_vm11, %v4044_v8, %v4089_v46 }
 0x72e   :  { %v3924_v50 = vpop.permute.xlu0 %3923  ;;  %v4057_v60 = vrot.slane %v3921_v29, %v6473_v27  ;;  %v4053_v29 = vsel %vm2869_vm9, %v4052_v6, %v4048_v38  ;;  %v4085_v32 = vsel %vm3013_vm13, %v3990_v13, %v4084_v15 }
 0x72f   :  { %v4061_v55 = vrot.slane %v3924_v50, %v6468_v12 }
 0x731   :  { %v3879_v18 = vpop.permute.xlu1 %3878  ;;  %v4062_v50 = vsel %vm2869_vm9, %v4061_v55, %v4057_v60  ;;  %v7478_v55 = vld [vmem:[#allocation13_spill] sm:$0xff] }
 0x732   :  { %v3882_v9 = vpop.permute.xlu0 %3881  ;;  %v3994_v39 = vrot.slane %v3879_v18, %v6473_v27 }
 0x733   :  { %v3998_v28 = vrot.slane %v3882_v9, %v6468_v12  ;;  %v4091_v9 = vsel %vm3011_vm12, %v4053_v29, %v4090_v19 }
 0x734   :  { %v4092_v37 = vsel %vm3013_vm13, %v4062_v50, %v4091_v9 }
 0x735   :  { %v3927_v26 = vpop.permute.xlu1 %3926  ;;  %v3999_v57 = vsel %vm2869_vm9, %v3998_v28, %v3994_v39 }
 0x736   :  { %v3930_v16 = vpop.permute.xlu0 %3929  ;;  %v4066_v58 = vrot.slane %v3927_v26, %v6473_v27  ;;  %v4086_v43 = vsel %vm3015_vm14, %v3999_v57, %v4085_v32 }
 0x737   :  { %v4070_v22 = vrot.slane %v3930_v16, %v6468_v12 }
 0x739   :  { %v3885_v51 = vpop.permute.xlu1 %3884  ;;  %v4071_v18 = vsel %vm2869_vm9, %v4070_v22, %v4066_v58 }
 0x73a   :  { %v4003_v10 = vrot.slane %v3885_v51, %v6473_v27  ;;  %v3888_v23 = vpop.permute.xlu0 %3887  ;;  %v4093_v59 = vsel %vm3015_vm14, %v4071_v18, %v4092_v37 }
 0x73b   :  { %v4007_v56 = vrot.slane %v3888_v23, %v6468_v12 }
 0x73d   :  { %v3933_v3 = vpop.permute.xlu1 %3932  ;;  %v4008_v11 = vsel %vm2869_vm9, %v4007_v56, %v4003_v10 }
 0x73e   :  { %v4075_v33 = vrot.slane %v3933_v3, %v6473_v27  ;;  %v3936_v61 = vpop.permute.xlu0 %3935  ;;  %v4087_v17 = vsel %vm3017_vm15, %v4008_v11, %v4086_v43 }
 0x73f   :  { %v4079_v35 = vrot.slane %v3936_v61, %v6468_v12  ;;  %v4097_v14 = vsel %vm3028_vm4, %v4087_v17, 0.0  ;;  %v3625_v12 = vsub.f32 %v7017_v49, %v7023_v0 }
 0x740   :  { %4098 = vadd.xlane.f32.xlu1 %v4097_v14 }
 0x741   :  { %v4080_v4 = vsel %vm2869_vm9, %v4079_v35, %v4075_v33  ;;  %v3627_v62 = vmul.f32 1.442695, %v3625_v12 }
 0x742   :  { %v4094_v5 = vsel %vm3017_vm15, %v4080_v4, %v4093_v59 }
 0x743   :  { %v4100_v27 = vsel %vm3028_vm4, %v4094_v5, 0.0  ;;  %5184 = vpow2.f32 %v3627_v62 }
 0x744   :  { %4101 = vadd.xlane.f32.xlu0 %v4100_v27  ;;  %5186 = vpow2.f32 %v3629_v20 }
 0x74d   :  { %v5185_v40 = vpop.eup %5184 }
 0x74e   :  { %v5187_v34 = vpop.eup %5186 }
 0x7cd   :  { %v4099_v36 = vpop.xlane.xlu1 %4098 }
 0x7ce   :  { %v4103_v26 = vadd.f32 %v5185_v40, %v4099_v36 }
 0x7d0   :  { %5188 = vrcp.f32 %v4103_v26 }
 0x7d1   :  { %v4102_v48 = vpop.xlane.xlu0 %4101 }
 0x7d2   :  { %v4104_v39 = vadd.f32 %v5187_v34, %v4102_v48 }
 0x7d4   :  { %5190 = vrcp.f32 %v4104_v39 }
 0x7da   :  { %v5189_v28 = vpop.eup %5188 }
 0x7db   :  { %v4107_v16 = vmul.f32 %v5189_v28, %v5185_v40 }
 0x7dd   :  { %v4546_v45 = vsub.f32 1.0, %v4107_v16  ;;  %v4560_v49 = vsel %vm3028_vm4, %v6971_v44, %v4107_v16  ;;  %v4544_v63 = vmul.f32 %v4107_v16, %v7477_v30  ;;  %v4553_v44 = vunpack.c.h.bf16 %v5193_v52 }
 0x7de   :  { %v5191_v54 = vpop.eup %5190  ;;  %v4563_v0 = vsel %vm4562_vm0, %v4560_v49, 0.0 }
 0x7df   :  { %v4548_v31 = vmul.f32 %v4546_v45, %v7093_v47  ;;  %v4108_v7 = vmul.f32 %v5191_v54, %v5187_v34  ;;  %4565 = vst [vmem:[#allocation5] sm:$0xff] %v4563_v0 }
 0x7e1   :  { %v4550_v38 = vadd.f32 %v4548_v31, %v4544_v63  ;;  %v4547_v6 = vsub.f32 1.0, %v4108_v7  ;;  %v4561_v1 = vsel %vm3028_vm4, %v7013_v24, %v4108_v7  ;;  %v4545_v51 = vmul.f32 %v4108_v7, %v7478_v55 }
 0x7e2   :  { %v4564_v13 = vsel %vm4562_vm0, %v4561_v1, 0.0 }
 0x7e3   :  { %v4554_v60 = vadd.f32 %v4552_v42, %v4550_v38  ;;  %v4549_v57 = vmul.f32 %v4547_v6, %v7099_v25  ;;  %4566 = vst [vmem:[#allocation5 + $0x8] sm:$0xff] %v4564_v13 }
 0x7e5   :  { %v4551_v58 = vadd.f32 %v4549_v57, %v4545_v51 }
 0x7e7   :  { %v4555_v22 = vadd.f32 %v4553_v44, %v4551_v58 }
 0x7e9   :  { %v4556_v10 = vpack.c.bf16 %v4555_v22, %v4554_v60 }
 0x7eb   :  { %4557 = vst.msk [vmem:[#allocation2] sm:$0xff] %vm93_vm1, %v4556_v10 }
 0x7f2   :  { %v4567_v47 = vld [vmem:[#allocation2] sm:$0xff] }
 0x7f3   :  { %4816 = vmatmul.mubr.msk.bf16.vlgmr.msra.gmra.mrb[12].mxu0 %vm93_vm1, %v4567_v47 }
 0x7f4   :  { %5205 = shalt.err (!%p5202_p4)
}
 0x7f5   :  { %s5206_s30 = scalar_lea.hbm %s7238_s18, 256 }
 0x7f6   :  { %p5207_p5 = scmp.ne.s32.totalorder %s7238_s18, %s5206_s30  ;;  %p5210_p6 = scmp.lt.u32.totalorder %s5206_s30, %s7238_s18 }
 0x7f8   :  { %p5212_p7 = pnand %p5210_p6, %p5207_p5 }
 0x7fa   :  { %5215 = shalt.err (!%p5212_p7)
}
 0x7fb   :  { %s5250_s21 = smov 128   ;;  %s5251_s1 = smov 8   ;;  %v4711_v24 = vld [vmem:[%s7236_s16] ss:$0 sm:$0xff] }
 0x7fc   :  { %4653 = dma.vmem_to_hbm [thread:$0]  %s4648_s28, 256, %s7238_s18, [#allocation6], %s5250_s21, %s5250_s21, %s5251_s1  }
 0x7fd   :  { %s5252_s4 = smov [#allocation3]  }
 0x7fe   :  { %s4635_s24 = sshll.u32 %s5252_s4, 4  ;;  %s4636_s24 = int_to_ptr.vmem [resolvable:$true] %s4635_s24 }
 0x7ff   :  { %s5216_s19 = scalar_lea.vmem %s4636_s24, 256  ;;  %p5221_p9 = scmp.lt.s32.totalorder %s4636_s24, %s4636_s24 }
 0x800   :  { %p5217_p8 = scmp.ne.s32.totalorder %s4636_s24, %s5216_s19  ;;  %p5222_p10 = scmp.lt.s32.totalorder %s5216_s19, %s5216_s19 }
 0x802   :  { %p5223_p11 = por %p5222_p10, %p5221_p9 }
 0x804   :  { %p5224_p12 = pnand %p5223_p11, %p5217_p8 }
 0x8c6   :  { %v4621_v25 = vpop.f32.mrb[12].mxu0 }
 0x8c7   :  { %v4622_v23 = vadd.f32 %v4711_v24, %v4621_v25  ;;  %v4817_v21 = vpop.f32.mrb[13].mxu0 }
 0x8c8   :  { %v4624_v8 = vpop.f32.mrb[14].mxu0 }
 0x8c9   :  { %4628 = vst [vmem:[#allocation3] sm:$0xff] %v4622_v23  ;;  %v4625_v15 = vadd.f32 %v4711_v24, %v4624_v8  ;;  %v4818_v56 = vpop.f32.mrb[15].mxu0 }
 0x8cb   :  { %4629 = vst [vmem:[#allocation3 + $0x8] sm:$0xff] %v4625_v15 }
 0x8cc   :  { %5227 = shalt.err (!%p5224_p12)
}
 0x8cd   :  { %s5228_s25 = scalar_lea.hbm %s7237_s17, 256 }
 0x8ce   :  { %p5229_p13 = scmp.ne.s32.totalorder %s7237_s17, %s5228_s25  ;;  %p5232_p0 = scmp.lt.u32.totalorder %s5228_s25, %s7237_s17 }
 0x8d0   :  { %p5234_p1 = pnand %p5232_p0, %p5229_p13 }
 0x8d2   :  { %5237 = shalt.err (!%p5234_p1)
}
 0x8d3   :  { %4641 = dma.vmem_to_hbm [thread:$0]  %s4636_s24, 256, %s7237_s17, [#allocation4], %s5250_s21, %s5250_s21, %s5251_s1  }
 0x8d4   :  { %5238 = dma.done.wait [#allocation4], 256  }
 0x8d5   :  { %5239 = vsyncadd [#allocation4], 4294967040 }
 0x8d6   :  { %5240 = dma.done.wait [#allocation6], 256  }
 0x8d7   :  { %5241 = vsyncadd [#allocation6], 4294967040 }
 0x8d8   :  { %4664 = vsyncpa [#allocation4], 1 }
 0x8d9   :  { %4665 = vsyncpa [#allocation6], 1 }

</bundles_post_ra>
